<compile_context>
chip_gen: v7x
topology: tpu7x:2x2x1
jax: 0.10.0
libtpu: 0.0.40
codegen_flags: <defaults>
</compile_context>

<pallas_src>
import functools

import numpy as np

import jax
import jax.numpy as jnp
from jax.experimental import pallas as pl
from jax.experimental.pallas import tpu as pltpu

TM = 128  # row tile for the hoisted conv1 GEMM


def _round_up(n, m):
    return ((n + m - 1) // m) * m


def _leaky_update(mem, cur, beta, threshold):
    """snn.Leaky, reset-by-subtraction (reset uses the previous membrane)."""
    reset = (mem > threshold).astype(jnp.float32)
    mem_new = beta * mem + cur - reset * threshold
    spk = (mem_new > threshold).astype(jnp.float32)
    return spk, mem_new


# ------------------------------------------------- conv1 GEMM (hoisted over T)
def _matmul_bias_kernel(a_ref, w_ref, b_ref, o_ref):
    o_ref[...] = (
        jnp.dot(a_ref[...], w_ref[...], preferred_element_type=jnp.float32)
        + b_ref[...]
    )


def matmul_bias(a, w, b, *, tm=TM):
    """a: [M, K] (M % tm == 0), w: [K, N], b: [1, N] -> [M, N] float32."""
    M, K = a.shape
    N = w.shape[1]
    return pl.pallas_call(
        _matmul_bias_kernel,
        out_shape=jax.ShapeDtypeStruct((M, N), jnp.float32),
        grid=(M // tm,),
        in_specs=[
            pl.BlockSpec((tm, K), lambda i: (i, 0)),
            pl.BlockSpec((K, N), lambda i: (0, 0)),
            pl.BlockSpec((1, N), lambda i: (0, 0)),
        ],
        out_specs=pl.BlockSpec((tm, N), lambda i: (i, 0)),
        compiler_params=pltpu.CompilerParams(dimension_semantics=("parallel",)),
    )(a, w, b)


# ----------------------- fused recurrent time loop: one pallas_call, grid=(T,)
def _fused_step_kernel(pre_ref, sel2_ref, w2_ref, b2_ref, sel3_ref, w3_ref,
                       b3_ref, wa_ref, ba_ref, w1_ref, b1_ref, wf2_ref,
                       bf2_ref, out_ref,
                       mem1_ref, rec_ref, mem2_ref, mem3_ref, mem4_ref,
                       mem5_ref,
                       *, beta, threshold, k, decay, m2, m3, n_sp, batch):
    f32 = jnp.float32
    t = pl.program_id(0)

    # persistent state (VMEM scratch) zeroed on the first time step only
    @pl.when(t == 0)
    def _():
        mem1_ref[...] = jnp.zeros_like(mem1_ref)
        rec_ref[...] = jnp.zeros_like(rec_ref)
        mem2_ref[...] = jnp.zeros_like(mem2_ref)
        mem3_ref[...] = jnp.zeros_like(mem3_ref)
        mem4_ref[...] = jnp.zeros_like(mem4_ref)
        mem5_ref[...] = jnp.zeros_like(mem5_ref)

    # ---- stage A: leaky1 + binary k-WTA + recurrent add (+ next-step rec)
    spk, mem1_new = _leaky_update(mem1_ref[...], pre_ref[0], beta, threshold)
    mem1_ref[...] = mem1_new
    # spk is strictly 0/1, so the k-th largest channel value (torch.topk incl.
    # ties) is 1 iff at least k channels fired; relu(spk - kth) keeps the
    # spikes iff fewer than k channels fired.  Exact-equivalent binary count.
    cnt = jnp.sum(spk, axis=-1, keepdims=True)
    kth = (cnt >= k).astype(f32)
    spike1 = jnp.maximum(spk - kth, 0.0) + rec_ref[...]
    # TODO(synk): nn.Dropout(0.3) in training mode has no deterministic Pallas
    # equivalent here; treated as eval-mode identity before the decay factor.
    rec_ref[...] = spike1 * decay

    # ---- stage B: conv2 (in-kernel im2col via one 0/1-selection GEMM) + leaky2
    # p2[9*m2, 32]: tap kk of output row m is p2[kk*m2 + m, :]
    p2 = jnp.dot(sel2_ref[...], spike1, preferred_element_type=f32)
    patches2 = jnp.concatenate(
        [p2[kk * m2:(kk + 1) * m2, :] for kk in range(9)], axis=-1)  # [m2,288]
    cur2 = (jnp.dot(patches2, w2_ref[...], preferred_element_type=f32)
            + b2_ref[...])
    spike2, mem2_new = _leaky_update(mem2_ref[...], cur2, beta, threshold)
    mem2_ref[...] = mem2_new

    # ---- stage C: conv3 + leaky3 (rows kept in (spatial, batch) order)
    p3 = jnp.dot(sel3_ref[...], spike2, preferred_element_type=f32)  # [9*m3,32]
    patches3 = jnp.concatenate(
        [p3[kk * m3:(kk + 1) * m3, :] for kk in range(9)], axis=-1)  # [m3,288]
    cur3 = (jnp.dot(patches3, w3_ref[...], preferred_element_type=f32)
            + b3_ref[...])
    spike3, mem3_new = _leaky_update(mem3_ref[...], cur3, beta, threshold)
    mem3_ref[...] = mem3_new

    # channel attention: softmax(Linear(spike3)) over the 32 channels.
    # Exact divide (not approx reciprocal): values feed threshold compares.
    logits = (jnp.dot(spike3, wa_ref[...], preferred_element_type=f32)
              + ba_ref[...])
    z = logits - jnp.max(logits, axis=-1, keepdims=True)
    e = jnp.exp(z)
    attn = e / jnp.sum(e, axis=-1, keepdims=True)
    gated = spike3 * attn                          # [m3, 32], (spatial, batch)

    # fc1 as ONE K = n_sp*32 GEMM: pack [n_sp*B, 32] -> [B, n_sp*32] via a
    # lane concat of contiguous row slices (rows are spatial-major).
    gated_wide = jnp.concatenate(
        [gated[s * batch:(s + 1) * batch, :] for s in range(n_sp)],
        axis=-1)                                   # [B, n_sp*32]
    h = (jnp.dot(gated_wide, w1_ref[...], preferred_element_type=f32)
         + b1_ref[...])
    spike4, mem4_new = _leaky_update(mem4_ref[...], h, beta, threshold)
    mem4_ref[...] = mem4_new

    # fc2 + leaky_out (classes padded to 128 lanes; padded columns stay zero)
    outv = (jnp.dot(spike4, wf2_ref[...], preferred_element_type=f32)
            + bf2_ref[...])
    spike_out, mem5_new = _leaky_update(mem5_ref[...], outv, beta, threshold)
    mem5_ref[...] = mem5_new
    out_ref[...] = spike_out                       # last step's write survives


def fused_time_loop(pre1_all, params, *, beta, threshold, k, decay, n_sp, batch):
    T, M1p, C1 = pre1_all.shape
    sel2, sel3 = params["sel2"], params["sel3"]
    m2 = sel2.shape[0] // 9
    m3 = sel3.shape[0] // 9
    NC = params["fc2_b"].shape[1]
    H4 = params["fc1_b"].shape[1]

    def const(a):  # weights / selectors: loaded once, resident across steps
        return pl.BlockSpec(a.shape, lambda t: (0, 0))

    kern = functools.partial(
        _fused_step_kernel, beta=beta, threshold=threshold, k=k, decay=decay,
        m2=m2, m3=m3, n_sp=n_sp, batch=batch)

    return pl.pallas_call(
        kern,
        out_shape=jax.ShapeDtypeStruct((batch, NC), jnp.float32),
        grid=(T,),
        in_specs=[
            pl.BlockSpec((1, M1p, C1), lambda t: (t, 0, 0)),
            const(sel2), const(params["conv2_w"]), const(params["conv2_b"]),
            const(sel3), const(params["conv3_w"]), const(params["conv3_b"]),
            const(params["attn_w"]), const(params["attn_b"]),
            const(params["fc1_w"]), const(params["fc1_b"]),
            const(params["fc2_w"]), const(params["fc2_b"]),
        ],
        out_specs=pl.BlockSpec((batch, NC), lambda t: (0, 0)),
        scratch_shapes=[
            pltpu.VMEM((M1p, C1), jnp.float32),   # mem1
            pltpu.VMEM((M1p, C1), jnp.float32),   # recurrent spike
            pltpu.VMEM((m2, 32), jnp.float32),    # mem2
            pltpu.VMEM((m3, 32), jnp.float32),    # mem3
            pltpu.VMEM((batch, H4), jnp.float32),  # mem4
            pltpu.VMEM((batch, NC), jnp.float32),  # mem5
        ],
        compiler_params=pltpu.CompilerParams(dimension_semantics=("arbitrary",)),
    )(pre1_all, sel2, params["conv2_w"], params["conv2_b"],
      sel3, params["conv3_w"], params["conv3_b"],
      params["attn_w"], params["attn_b"],
      params["fc1_w"], params["fc1_b"],
      params["fc2_w"], params["fc2_b"])


# ----------------------------------------------------------- im2col (XLA glue)
def im2col_nhwc(x, kh, kw, stride):
    """x: [N, H, W, C] -> [N*Ho*Wo, kh*kw*C], column order (kh, kw, C)."""
    N, H, W, C = x.shape
    Ho = (H - kh) // stride + 1
    Wo = (W - kw) // stride + 1
    cols = []
    for di in range(kh):
        for dj in range(kw):
            cols.append(x[:, di:di + stride * Ho:stride,
                          dj:dj + stride * Wo:stride, :])
    p = jnp.stack(cols, axis=3)                 # [N, Ho, Wo, kh*kw, C]
    return p.reshape(N * Ho * Wo, kh * kw * C)


def build_im2col_select(B, Hin, Win, src_rows_pad, kh, kw, stride,
                        spatial_major):
    """0/1 gather matrix: [kh*kw*B*Ho*Wo, src_rows_pad].

    Tap (di,dj) of output patch row m is row (di*kw+dj)*B*Ho*Wo + m.  Output
    rows are (batch, i, j) order if spatial_major=False, else ((i,j), batch).
    """
    Ho = (Hin - kh) // stride + 1
    Wo = (Win - kw) // stride + 1
    n_out = B * Ho * Wo
    sel = np.zeros((kh * kw * n_out, src_rows_pad), np.float32)
    for di in range(kh):
        for dj in range(kw):
            kidx = di * kw + dj
            for b in range(B):
                for i in range(Ho):
                    for j in range(Wo):
                        if spatial_major:
                            m = (i * Wo + j) * B + b
                        else:
                            m = b * Ho * Wo + i * Wo + j
                        src = b * Hin * Win + (stride * i + di) * Win \
                            + (stride * j + dj)
                        sel[kidx * n_out + m, src] = 1.0
    return jnp.asarray(sel)


# ------------------------------------------------------------------ parameters
def init_params(key, *, num_classes, n_spatial, nc_pad=128):
    ks = jax.random.split(key, 12)

    def nrm(k_, shape, scale=0.1):
        return scale * jax.random.normal(k_, shape, dtype=jnp.float32)

    p = {}
    # conv weights stored as GEMM matrices [kh*kw*Cin, Cout], row order
    # ((kh,kw)-tap major, then Cin) to match the in-kernel patch lane order.
    p["conv1_w"] = nrm(ks[0], (5 * 5 * 1, 32))
    p["conv1_b"] = nrm(ks[1], (1, 32))
    p["conv2_w"] = nrm(ks[2], (3 * 3 * 32, 32))
    p["conv2_b"] = nrm(ks[3], (1, 32))
    p["conv3_w"] = nrm(ks[4], (3 * 3 * 32, 32))
    p["conv3_b"] = nrm(ks[5], (1, 32))
    p["attn_w"] = nrm(ks[6], (32, 32))
    p["attn_b"] = nrm(ks[7], (1, 32))
    # fc1 stored as [n_spatial*32, 256]; row s*32+c == W_torch.T[c*n_spatial+s]
    # (one-time permutation of the NCHW-flatten weight so the kernel only does
    #  a contiguous lane-pack, never a transpose).
    p["fc1_w"] = nrm(ks[8], (n_spatial * 32, 256))
    p["fc1_b"] = nrm(ks[9], (1, 256))
    # fc2 padded from num_classes to nc_pad lanes; dummy classes stay zero.
    w2 = nrm(ks[10], (256, num_classes))
    b2 = nrm(ks[11], (1, num_classes))
    p["fc2_w"] = jnp.pad(w2, ((0, 0), (0, nc_pad - num_classes)))
    p["fc2_b"] = jnp.pad(b2, ((0, 0), (0, nc_pad - num_classes)))
    return p


# ---------------------------------------------------------------- forward pass
def recurrent_snn_v5_forward(x, params, *, beta=0.9, decay_factor=0.7,
                             sparsity_level=0.6, threshold=1.0, num_classes=10):
    """x: [num_steps, B, 1, H, W] (PyTorch NCHW per-step inputs)."""
    T, B, _, H, W = x.shape
    x = jnp.transpose(x, (0, 1, 3, 4, 2)).astype(jnp.float32)  # [T, B, H, W, 1]

    H1, W1 = (H - 5) // 2 + 1, (W - 5) // 2 + 1    # conv1: 5x5 / stride 2
    H2, W2 = (H1 - 3) // 2 + 1, (W1 - 3) // 2 + 1  # conv2: 3x3 / stride 2
    H3, W3 = (H2 - 3) // 2 + 1, (W2 - 3) // 2 + 1  # conv3: 3x3 / stride 2
    S = H3 * W3
    M1 = B * H1 * W1
    C1 = params["conv1_w"].shape[1]                # 32
    k = max(1, min(C1, int(sparsity_level * C1)))  # k-WTA over 32 channels

    # ---- conv1 hoisted over all time steps (its input is state-independent)
    patches1 = im2col_nhwc(x.reshape(T * B, H, W, 1), 5, 5, 2)   # [T*M1, 25]
    M1p = _round_up(M1, TM)                 # pad rows once, before the loop
    patches1 = patches1.reshape(T, M1, 25)
    patches1 = jnp.pad(patches1, ((0, 0), (0, M1p - M1), (0, 0)))
    pre1_all = matmul_bias(patches1.reshape(T * M1p, 25),
                           params["conv1_w"], params["conv1_b"], tm=TM)
    pre1_all = pre1_all.reshape(T, M1p, C1)
    # (padded rows carry harmless state; the conv2 selection matrix only ever
    #  gathers the first M1 real rows, so nothing downstream reads past M1.)

    # ---- fused recurrent kernel over all T steps
    spike_out = fused_time_loop(
        pre1_all, params, beta=beta, threshold=threshold, k=k,
        decay=decay_factor, n_sp=S, batch=B)
    return spike_out[:, :num_classes]


if __name__ == "__main__":
    num_steps, B, H, W = 4, 2, 29, 29
    num_classes = 10

    H1, W1 = (H - 5) // 2 + 1, (W - 5) // 2 + 1
    H2, W2 = (H1 - 3) // 2 + 1, (W1 - 3) // 2 + 1
    H3, W3 = (H2 - 3) // 2 + 1, (W2 - 3) // 2 + 1
    M1p = _round_up(B * H1 * W1, TM)

    key = jax.random.PRNGKey(0)
    kx, kp = jax.random.split(key)
    x = jax.random.normal(kx, (num_steps, B, 1, H, W), dtype=jnp.float32)
    params = init_params(kp, num_classes=num_classes, n_spatial=H3 * W3)
    # 0/1 im2col selection matrices (built once; loaded into VMEM once).
    params["sel2"] = build_im2col_select(B, H1, W1, M1p, 3, 3, 2,
                                         spatial_major=False)
    params["sel3"] = build_im2col_select(B, H2, W2, B * H2 * W2, 3, 3, 2,
                                         spatial_major=True)

    fwd = jax.jit(functools.partial(
        recurrent_snn_v5_forward, beta=0.9, decay_factor=0.7,
        sparsity_level=0.6, threshold=1.0, num_classes=num_classes))
    spike_out = jax.block_until_ready(fwd(x, params))
    assert spike_out.shape == (B, num_classes)
    print("KERNEL_OK")
</pallas_src>

<mosaic_0001>
module attributes {stable_mosaic.version = 11 : i64} {
  func.func @_matmul_bias_kernel(%arg0: i32, %arg1: memref<128x25xf32, #tpu.memory_space<vmem>>, %arg2: memref<25x32xf32, #tpu.memory_space<vmem>>, %arg3: memref<1x32xf32, #tpu.memory_space<vmem>>, %arg4: memref<128x32xf32, #tpu.memory_space<vmem>>) attributes {dimension_semantics = [#tpu.dimension_semantics<parallel>], iteration_bounds = array<i64: 12>, scalar_prefetch = 0 : i64, scratch_operands = 0 : i64, tpu.core_type = #tpu.core_type<tc>, window_params = [{transform_indices = @transform_0, window_bounds = array<i64: 128, 25>}, {pipeline_mode = #tpu.pipeline_mode<synchronous>, transform_indices = @transform_1, window_bounds = array<i64: 25, 32>}, {pipeline_mode = #tpu.pipeline_mode<synchronous>, transform_indices = @transform_2, window_bounds = array<i64: 1, 32>}, {transform_indices = @transform_3, window_bounds = array<i64: 128, 32>}]} {
    %c0 = arith.constant 0 : index
    %c0_0 = arith.constant 0 : index
    %0 = vector.load %arg1[%c0, %c0_0] : memref<128x25xf32, #tpu.memory_space<vmem>>, vector<128x25xf32>
    %c0_1 = arith.constant 0 : index
    %c0_2 = arith.constant 0 : index
    %1 = vector.load %arg2[%c0_1, %c0_2] : memref<25x32xf32, #tpu.memory_space<vmem>>, vector<25x32xf32>
    %cst = arith.constant dense<0.000000e+00> : vector<128x32xf32>
    %2 = tpu.matmul %0, %1, %cst {dimension_numbers = #tpu.dot_dimension_numbers<[1], [0], [0], [1], [0, 0, 1, 1], [], []>} : vector<128x25xf32>, vector<25x32xf32>, vector<128x32xf32> -> vector<128x32xf32>
    %c0_3 = arith.constant 0 : index
    %c0_4 = arith.constant 0 : index
    %3 = vector.load %arg3[%c0_3, %c0_4] : memref<1x32xf32, #tpu.memory_space<vmem>>, vector<1x32xf32>
    %4 = vector.broadcast %3 : vector<1x32xf32> to vector<128x32xf32>
    %5 = arith.addf %2, %4 : vector<128x32xf32>
    %c0_5 = arith.constant 0 : index
    %c0_6 = arith.constant 0 : index
    %6 = vector.load %arg4[%c0_5, %c0_6] : memref<128x32xf32, #tpu.memory_space<vmem>>, vector<128x32xf32>
    tpu.vector_store %arg4[%c0_5, %c0_6], %5 {strides = array<i32>} : memref<128x32xf32, #tpu.memory_space<vmem>>, vector<128x32xf32>,
    return
  }
  func.func @transform_0(%arg0: i32) -> (i32, i32) {
    %c0_i32 = arith.constant 0 : i32
    %c0_i32_0 = arith.constant 0 : i32
    return %arg0, %c0_i32 : i32, i32
  }
  func.func @transform_1(%arg0: i32) -> (i32, i32) {
    %c0_i32 = arith.constant 0 : i32
    %c0_i32_0 = arith.constant 0 : i32
    %c0_i32_1 = arith.constant 0 : i32
    return %c0_i32, %c0_i32_0 : i32, i32
  }
  func.func @transform_2(%arg0: i32) -> (i32, i32) {
    %c0_i32 = arith.constant 0 : i32
    %c0_i32_0 = arith.constant 0 : i32
    %c0_i32_1 = arith.constant 0 : i32
    return %c0_i32, %c0_i32_0 : i32, i32
  }
  func.func @transform_3(%arg0: i32) -> (i32, i32) {
    %c0_i32 = arith.constant 0 : i32
    %c0_i32_0 = arith.constant 0 : i32
    return %arg0, %c0_i32 : i32, i32
  }
}

module attributes {stable_mosaic.version = 11 : i64} {
  func.func @_fused_step_kernel(%arg0: i32, %arg1: memref<1x384x32xf32, #tpu.memory_space<vmem>>, %arg2: memref<648x384xf32, #tpu.memory_space<vmem>>, %arg3: memref<288x32xf32, #tpu.memory_space<vmem>>, %arg4: memref<1x32xf32, #tpu.memory_space<vmem>>, %arg5: memref<72x72xf32, #tpu.memory_space<vmem>>, %arg6: memref<288x32xf32, #tpu.memory_space<vmem>>, %arg7: memref<1x32xf32, #tpu.memory_space<vmem>>, %arg8: memref<32x32xf32, #tpu.memory_space<vmem>>, %arg9: memref<1x32xf32, #tpu.memory_space<vmem>>, %arg10: memref<128x256xf32, #tpu.memory_space<vmem>>, %arg11: memref<1x256xf32, #tpu.memory_space<vmem>>, %arg12: memref<256x128xf32, #tpu.memory_space<vmem>>, %arg13: memref<1x128xf32, #tpu.memory_space<vmem>>, %arg14: memref<2x128xf32, #tpu.memory_space<vmem>>, %arg15: memref<384x32xf32, #tpu.memory_space<vmem>>, %arg16: memref<384x32xf32, #tpu.memory_space<vmem>>, %arg17: memref<72x32xf32, #tpu.memory_space<vmem>>, %arg18: memref<8x32xf32, #tpu.memory_space<vmem>>, %arg19: memref<2x256xf32, #tpu.memory_space<vmem>>, %arg20: memref<2x128xf32, #tpu.memory_space<vmem>>) attributes {dimension_semantics = [#tpu.dimension_semantics<arbitrary>], iteration_bounds = array<i64: 4>, scalar_prefetch = 0 : i64, scratch_operands = 6 : i64, tpu.core_type = #tpu.core_type<tc>, window_params = [{transform_indices = @transform_0, window_bounds = array<i64: 1, 384, 32>}, {pipeline_mode = #tpu.pipeline_mode<synchronous>, transform_indices = @transform_1, window_bounds = array<i64: 648, 384>}, {pipeline_mode = #tpu.pipeline_mode<synchronous>, transform_indices = @transform_2, window_bounds = array<i64: 288, 32>}, {pipeline_mode = #tpu.pipeline_mode<synchronous>, transform_indices = @transform_3, window_bounds = array<i64: 1, 32>}, {pipeline_mode = #tpu.pipeline_mode<synchronous>, transform_indices = @transform_4, window_bounds = array<i64: 72, 72>}, {pipeline_mode = #tpu.pipeline_mode<synchronous>, transform_indices = @transform_5, window_bounds = array<i64: 288, 32>}, {pipeline_mode = #tpu.pipeline_mode<synchronous>, transform_indices = @transform_6, window_bounds = array<i64: 1, 32>}, {pipeline_mode = #tpu.pipeline_mode<synchronous>, transform_indices = @transform_7, window_bounds = array<i64: 32, 32>}, {pipeline_mode = #tpu.pipeline_mode<synchronous>, transform_indices = @transform_8, window_bounds = array<i64: 1, 32>}, {pipeline_mode = #tpu.pipeline_mode<synchronous>, transform_indices = @transform_9, window_bounds = array<i64: 128, 256>}, {pipeline_mode = #tpu.pipeline_mode<synchronous>, transform_indices = @transform_10, window_bounds = array<i64: 1, 256>}, {pipeline_mode = #tpu.pipeline_mode<synchronous>, transform_indices = @transform_11, window_bounds = array<i64: 256, 128>}, {pipeline_mode = #tpu.pipeline_mode<synchronous>, transform_indices = @transform_12, window_bounds = array<i64: 1, 128>}, {pipeline_mode = #tpu.pipeline_mode<synchronous>, transform_indices = @transform_13, window_bounds = array<i64: 2, 128>}]} {
    %c0_i32 = arith.constant 0 : i32
    %0 = arith.cmpi eq, %arg0, %c0_i32 : i32
    %1 = arith.extui %0 : i1 to i32
    %c0_i32_0 = arith.constant 0 : i32
    %2 = arith.cmpi ne, %1, %c0_i32_0 : i32
    scf.if %2 {
      %cst_85 = arith.constant 0.000000e+00 : f32
      %165 = vector.broadcast %cst_85 : f32 to vector<384x32xf32>
      %c0_86 = arith.constant 0 : index
      %c0_87 = arith.constant 0 : index
      %166 = vector.load %arg15[%c0_86, %c0_87] : memref<384x32xf32, #tpu.memory_space<vmem>>, vector<384x32xf32>
      tpu.vector_store %arg15[%c0_86, %c0_87], %165 {strides = array<i32>} : memref<384x32xf32, #tpu.memory_space<vmem>>, vector<384x32xf32>,
      %cst_88 = arith.constant 0.000000e+00 : f32
      %167 = vector.broadcast %cst_88 : f32 to vector<384x32xf32>
      %c0_89 = arith.constant 0 : index
      %c0_90 = arith.constant 0 : index
      %168 = vector.load %arg16[%c0_89, %c0_90] : memref<384x32xf32, #tpu.memory_space<vmem>>, vector<384x32xf32>
      tpu.vector_store %arg16[%c0_89, %c0_90], %167 {strides = array<i32>} : memref<384x32xf32, #tpu.memory_space<vmem>>, vector<384x32xf32>,
      %cst_91 = arith.constant 0.000000e+00 : f32
      %169 = vector.broadcast %cst_91 : f32 to vector<72x32xf32>
      %c0_92 = arith.constant 0 : index
      %c0_93 = arith.constant 0 : index
      %170 = vector.load %arg17[%c0_92, %c0_93] : memref<72x32xf32, #tpu.memory_space<vmem>>, vector<72x32xf32>
      tpu.vector_store %arg17[%c0_92, %c0_93], %169 {strides = array<i32>} : memref<72x32xf32, #tpu.memory_space<vmem>>, vector<72x32xf32>,
      %cst_94 = arith.constant 0.000000e+00 : f32
      %171 = vector.broadcast %cst_94 : f32 to vector<8x32xf32>
      %c0_95 = arith.constant 0 : index
      %c0_96 = arith.constant 0 : index
      %172 = vector.load %arg18[%c0_95, %c0_96] : memref<8x32xf32, #tpu.memory_space<vmem>>, vector<8x32xf32>
      tpu.vector_store %arg18[%c0_95, %c0_96], %171 {strides = array<i32>} : memref<8x32xf32, #tpu.memory_space<vmem>>, vector<8x32xf32>,
      %cst_97 = arith.constant 0.000000e+00 : f32
      %173 = vector.broadcast %cst_97 : f32 to vector<2x256xf32>
      %c0_98 = arith.constant 0 : index
      %c0_99 = arith.constant 0 : index
      %174 = vector.load %arg19[%c0_98, %c0_99] : memref<2x256xf32, #tpu.memory_space<vmem>>, vector<2x256xf32>
      tpu.vector_store %arg19[%c0_98, %c0_99], %173 {strides = array<i32>} : memref<2x256xf32, #tpu.memory_space<vmem>>, vector<2x256xf32>,
      %cst_100 = arith.constant 0.000000e+00 : f32
      %175 = vector.broadcast %cst_100 : f32 to vector<2x128xf32>
      %c0_101 = arith.constant 0 : index
      %c0_102 = arith.constant 0 : index
      %176 = vector.load %arg20[%c0_101, %c0_102] : memref<2x128xf32, #tpu.memory_space<vmem>>, vector<2x128xf32>
      tpu.vector_store %arg20[%c0_101, %c0_102], %175 {strides = array<i32>} : memref<2x128xf32, #tpu.memory_space<vmem>>, vector<2x128xf32>,
    } else {
    }
    %c0 = arith.constant 0 : index
    %c0_1 = arith.constant 0 : index
    %3 = vector.load %arg15[%c0, %c0_1] : memref<384x32xf32, #tpu.memory_space<vmem>>, vector<384x32xf32>
    %c0_2 = arith.constant 0 : index
    %c0_3 = arith.constant 0 : index
    %c0_4 = arith.constant 0 : index
    %4 = vector.load %arg1[%c0_2, %c0_3, %c0_4] : memref<1x384x32xf32, #tpu.memory_space<vmem>>, vector<1x384x32xf32>
    %5 = vector.shape_cast %4 : vector<1x384x32xf32> to vector<384x32xf32>
    %cst = arith.constant 1.000000e+00 : f32
    %6 = vector.broadcast %cst : f32 to vector<384x32xf32>
    %7 = arith.cmpf ogt, %3, %6 : vector<384x32xf32>
    %8 = arith.extui %7 : vector<384x32xi1> to vector<384x32xi32>
    %9 = arith.sitofp %8 : vector<384x32xi32> to vector<384x32xf32>
    %cst_5 = arith.constant 0.899999976 : f32
    %10 = vector.broadcast %cst_5 : f32 to vector<384x32xf32>
    %11 = arith.mulf %10, %3 : vector<384x32xf32>
    %12 = arith.addf %11, %5 : vector<384x32xf32>
    %cst_6 = arith.constant 1.000000e+00 : f32
    %13 = vector.broadcast %cst_6 : f32 to vector<384x32xf32>
    %14 = arith.mulf %9, %13 : vector<384x32xf32>
    %15 = arith.subf %12, %14 : vector<384x32xf32>
    %cst_7 = arith.constant 1.000000e+00 : f32
    %16 = vector.broadcast %cst_7 : f32 to vector<384x32xf32>
    %17 = arith.cmpf ogt, %15, %16 : vector<384x32xf32>
    %18 = arith.extui %17 : vector<384x32xi1> to vector<384x32xi32>
    %19 = arith.sitofp %18 : vector<384x32xi32> to vector<384x32xf32>
    %c0_8 = arith.constant 0 : index
    %c0_9 = arith.constant 0 : index
    %20 = vector.load %arg15[%c0_8, %c0_9] : memref<384x32xf32, #tpu.memory_space<vmem>>, vector<384x32xf32>
    tpu.vector_store %arg15[%c0_8, %c0_9], %15 {strides = array<i32>} : memref<384x32xf32, #tpu.memory_space<vmem>>, vector<384x32xf32>,
    %cst_10 = arith.constant dense<0.000000e+00> : vector<384xf32>
    %21 = vector.multi_reduction <add>, %19, %cst_10 [1] : vector<384x32xf32> to vector<384xf32>
    %22 = vector.shape_cast %21 : vector<384xf32> to vector<384x1xf32>
    %cst_11 = arith.constant 1.900000e+01 : f32
    %23 = vector.broadcast %cst_11 : f32 to vector<384x1xf32>
    %24 = arith.cmpf oge, %22, %23 : vector<384x1xf32>
    %25 = arith.extui %24 : vector<384x1xi1> to vector<384x1xi32>
    %26 = arith.sitofp %25 : vector<384x1xi32> to vector<384x1xf32>
    %27 = vector.broadcast %26 : vector<384x1xf32> to vector<384x32xf32>
    %28 = arith.subf %19, %27 : vector<384x32xf32>
    %cst_12 = arith.constant 0.000000e+00 : f32
    %29 = vector.broadcast %cst_12 : f32 to vector<384x32xf32>
    %30 = arith.maximumf %28, %29 : vector<384x32xf32>
    %c0_13 = arith.constant 0 : index
    %c0_14 = arith.constant 0 : index
    %31 = vector.load %arg16[%c0_13, %c0_14] : memref<384x32xf32, #tpu.memory_space<vmem>>, vector<384x32xf32>
    %32 = arith.addf %30, %31 : vector<384x32xf32>
    %cst_15 = arith.constant 0.699999988 : f32
    %33 = vector.broadcast %cst_15 : f32 to vector<384x32xf32>
    %34 = arith.mulf %32, %33 : vector<384x32xf32>
    %c0_16 = arith.constant 0 : index
    %c0_17 = arith.constant 0 : index
    %35 = vector.load %arg16[%c0_16, %c0_17] : memref<384x32xf32, #tpu.memory_space<vmem>>, vector<384x32xf32>
    tpu.vector_store %arg16[%c0_16, %c0_17], %34 {strides = array<i32>} : memref<384x32xf32, #tpu.memory_space<vmem>>, vector<384x32xf32>,
    %c0_18 = arith.constant 0 : index
    %c0_19 = arith.constant 0 : index
    %36 = vector.load %arg2[%c0_18, %c0_19] : memref<648x384xf32, #tpu.memory_space<vmem>>, vector<648x384xf32>
    %cst_20 = arith.constant dense<0.000000e+00> : vector<648x32xf32>
    %37 = tpu.matmul %36, %32, %cst_20 {dimension_numbers = #tpu.dot_dimension_numbers<[1], [0], [0], [1], [0, 0, 1, 1], [], []>} : vector<648x384xf32>, vector<384x32xf32>, vector<648x32xf32> -> vector<648x32xf32>
    %38 = vector.extract_strided_slice %37 {offsets = [0, 0], sizes = [72, 32], strides = [1, 1]} : vector<648x32xf32> to vector<72x32xf32>
    %39 = vector.extract_strided_slice %37 {offsets = [72, 0], sizes = [72, 32], strides = [1, 1]} : vector<648x32xf32> to vector<72x32xf32>
    %40 = vector.extract_strided_slice %37 {offsets = [144, 0], sizes = [72, 32], strides = [1, 1]} : vector<648x32xf32> to vector<72x32xf32>
    %41 = vector.extract_strided_slice %37 {offsets = [216, 0], sizes = [72, 32], strides = [1, 1]} : vector<648x32xf32> to vector<72x32xf32>
    %42 = vector.extract_strided_slice %37 {offsets = [288, 0], sizes = [72, 32], strides = [1, 1]} : vector<648x32xf32> to vector<72x32xf32>
    %43 = vector.extract_strided_slice %37 {offsets = [360, 0], sizes = [72, 32], strides = [1, 1]} : vector<648x32xf32> to vector<72x32xf32>
    %44 = vector.extract_strided_slice %37 {offsets = [432, 0], sizes = [72, 32], strides = [1, 1]} : vector<648x32xf32> to vector<72x32xf32>
    %45 = vector.extract_strided_slice %37 {offsets = [504, 0], sizes = [72, 32], strides = [1, 1]} : vector<648x32xf32> to vector<72x32xf32>
    %46 = vector.extract_strided_slice %37 {offsets = [576, 0], sizes = [72, 32], strides = [1, 1]} : vector<648x32xf32> to vector<72x32xf32>
    %47 = tpu.concatenate %38, %39, %40, %41, %42, %43, %44, %45, %46 in 1 : vector<72x32xf32>, vector<72x32xf32>, vector<72x32xf32>, vector<72x32xf32>, vector<72x32xf32>, vector<72x32xf32>, vector<72x32xf32>, vector<72x32xf32>, vector<72x32xf32> -> vector<72x288xf32>
    %c0_21 = arith.constant 0 : index
    %c0_22 = arith.constant 0 : index
    %48 = vector.load %arg3[%c0_21, %c0_22] : memref<288x32xf32, #tpu.memory_space<vmem>>, vector<288x32xf32>
    %cst_23 = arith.constant dense<0.000000e+00> : vector<72x32xf32>
    %49 = tpu.matmul %47, %48, %cst_23 {dimension_numbers = #tpu.dot_dimension_numbers<[1], [0], [0], [1], [0, 0, 1, 1], [], []>} : vector<72x288xf32>, vector<288x32xf32>, vector<72x32xf32> -> vector<72x32xf32>
    %c0_24 = arith.constant 0 : index
    %c0_25 = arith.constant 0 : index
    %50 = vector.load %arg4[%c0_24, %c0_25] : memref<1x32xf32, #tpu.memory_space<vmem>>, vector<1x32xf32>
    %51 = vector.broadcast %50 : vector<1x32xf32> to vector<72x32xf32>
    %52 = arith.addf %49, %51 : vector<72x32xf32>
    %c0_26 = arith.constant 0 : index
    %c0_27 = arith.constant 0 : index
    %53 = vector.load %arg17[%c0_26, %c0_27] : memref<72x32xf32, #tpu.memory_space<vmem>>, vector<72x32xf32>
    %cst_28 = arith.constant 1.000000e+00 : f32
    %54 = vector.broadcast %cst_28 : f32 to vector<72x32xf32>
    %55 = arith.cmpf ogt, %53, %54 : vector<72x32xf32>
    %56 = arith.extui %55 : vector<72x32xi1> to vector<72x32xi32>
    %57 = arith.sitofp %56 : vector<72x32xi32> to vector<72x32xf32>
    %cst_29 = arith.constant 0.899999976 : f32
    %58 = vector.broadcast %cst_29 : f32 to vector<72x32xf32>
    %59 = arith.mulf %58, %53 : vector<72x32xf32>
    %60 = arith.addf %59, %52 : vector<72x32xf32>
    %cst_30 = arith.constant 1.000000e+00 : f32
    %61 = vector.broadcast %cst_30 : f32 to vector<72x32xf32>
    %62 = arith.mulf %57, %61 : vector<72x32xf32>
    %63 = arith.subf %60, %62 : vector<72x32xf32>
    %cst_31 = arith.constant 1.000000e+00 : f32
    %64 = vector.broadcast %cst_31 : f32 to vector<72x32xf32>
    %65 = arith.cmpf ogt, %63, %64 : vector<72x32xf32>
    %66 = arith.extui %65 : vector<72x32xi1> to vector<72x32xi32>
    %67 = arith.sitofp %66 : vector<72x32xi32> to vector<72x32xf32>
    %c0_32 = arith.constant 0 : index
    %c0_33 = arith.constant 0 : index
    %68 = vector.load %arg17[%c0_32, %c0_33] : memref<72x32xf32, #tpu.memory_space<vmem>>, vector<72x32xf32>
    tpu.vector_store %arg17[%c0_32, %c0_33], %63 {strides = array<i32>} : memref<72x32xf32, #tpu.memory_space<vmem>>, vector<72x32xf32>,
    %c0_34 = arith.constant 0 : index
    %c0_35 = arith.constant 0 : index
    %69 = vector.load %arg5[%c0_34, %c0_35] : memref<72x72xf32, #tpu.memory_space<vmem>>, vector<72x72xf32>
    %cst_36 = arith.constant dense<0.000000e+00> : vector<72x32xf32>
    %70 = tpu.matmul %69, %67, %cst_36 {dimension_numbers = #tpu.dot_dimension_numbers<[1], [0], [0], [1], [0, 0, 1, 1], [], []>} : vector<72x72xf32>, vector<72x32xf32>, vector<72x32xf32> -> vector<72x32xf32>
    %71 = vector.extract_strided_slice %70 {offsets = [0, 0], sizes = [8, 32], strides = [1, 1]} : vector<72x32xf32> to vector<8x32xf32>
    %72 = vector.extract_strided_slice %70 {offsets = [8, 0], sizes = [8, 32], strides = [1, 1]} : vector<72x32xf32> to vector<8x32xf32>
    %73 = vector.extract_strided_slice %70 {offsets = [16, 0], sizes = [8, 32], strides = [1, 1]} : vector<72x32xf32> to vector<8x32xf32>
    %74 = vector.extract_strided_slice %70 {offsets = [24, 0], sizes = [8, 32], strides = [1, 1]} : vector<72x32xf32> to vector<8x32xf32>
    %75 = vector.extract_strided_slice %70 {offsets = [32, 0], sizes = [8, 32], strides = [1, 1]} : vector<72x32xf32> to vector<8x32xf32>
    %76 = vector.extract_strided_slice %70 {offsets = [40, 0], sizes = [8, 32], strides = [1, 1]} : vector<72x32xf32> to vector<8x32xf32>
    %77 = vector.extract_strided_slice %70 {offsets = [48, 0], sizes = [8, 32], strides = [1, 1]} : vector<72x32xf32> to vector<8x32xf32>
    %78 = vector.extract_strided_slice %70 {offsets = [56, 0], sizes = [8, 32], strides = [1, 1]} : vector<72x32xf32> to vector<8x32xf32>
    %79 = vector.extract_strided_slice %70 {offsets = [64, 0], sizes = [8, 32], strides = [1, 1]} : vector<72x32xf32> to vector<8x32xf32>
    %80 = tpu.concatenate %71, %72, %73, %74, %75, %76, %77, %78, %79 in 1 : vector<8x32xf32>, vector<8x32xf32>, vector<8x32xf32>, vector<8x32xf32>, vector<8x32xf32>, vector<8x32xf32>, vector<8x32xf32>, vector<8x32xf32>, vector<8x32xf32> -> vector<8x288xf32>
    %c0_37 = arith.constant 0 : index
    %c0_38 = arith.constant 0 : index
    %81 = vector.load %arg6[%c0_37, %c0_38] : memref<288x32xf32, #tpu.memory_space<vmem>>, vector<288x32xf32>
    %cst_39 = arith.constant dense<0.000000e+00> : vector<8x32xf32>
    %82 = tpu.matmul %80, %81, %cst_39 {dimension_numbers = #tpu.dot_dimension_numbers<[1], [0], [0], [1], [0, 0, 1, 1], [], []>} : vector<8x288xf32>, vector<288x32xf32>, vector<8x32xf32> -> vector<8x32xf32>
    %c0_40 = arith.constant 0 : index
    %c0_41 = arith.constant 0 : index
    %83 = vector.load %arg7[%c0_40, %c0_41] : memref<1x32xf32, #tpu.memory_space<vmem>>, vector<1x32xf32>
    %84 = vector.broadcast %83 : vector<1x32xf32> to vector<8x32xf32>
    %85 = arith.addf %82, %84 : vector<8x32xf32>
    %c0_42 = arith.constant 0 : index
    %c0_43 = arith.constant 0 : index
    %86 = vector.load %arg18[%c0_42, %c0_43] : memref<8x32xf32, #tpu.memory_space<vmem>>, vector<8x32xf32>
    %cst_44 = arith.constant 1.000000e+00 : f32
    %87 = vector.broadcast %cst_44 : f32 to vector<8x32xf32>
    %88 = arith.cmpf ogt, %86, %87 : vector<8x32xf32>
    %89 = arith.extui %88 : vector<8x32xi1> to vector<8x32xi32>
    %90 = arith.sitofp %89 : vector<8x32xi32> to vector<8x32xf32>
    %cst_45 = arith.constant 0.899999976 : f32
    %91 = vector.broadcast %cst_45 : f32 to vector<8x32xf32>
    %92 = arith.mulf %91, %86 : vector<8x32xf32>
    %93 = arith.addf %92, %85 : vector<8x32xf32>
    %cst_46 = arith.constant 1.000000e+00 : f32
    %94 = vector.broadcast %cst_46 : f32 to vector<8x32xf32>
    %95 = arith.mulf %90, %94 : vector<8x32xf32>
    %96 = arith.subf %93, %95 : vector<8x32xf32>
    %cst_47 = arith.constant 1.000000e+00 : f32
    %97 = vector.broadcast %cst_47 : f32 to vector<8x32xf32>
    %98 = arith.cmpf ogt, %96, %97 : vector<8x32xf32>
    %99 = arith.extui %98 : vector<8x32xi1> to vector<8x32xi32>
    %100 = arith.sitofp %99 : vector<8x32xi32> to vector<8x32xf32>
    %c0_48 = arith.constant 0 : index
    %c0_49 = arith.constant 0 : index
    %101 = vector.load %arg18[%c0_48, %c0_49] : memref<8x32xf32, #tpu.memory_space<vmem>>, vector<8x32xf32>
    tpu.vector_store %arg18[%c0_48, %c0_49], %96 {strides = array<i32>} : memref<8x32xf32, #tpu.memory_space<vmem>>, vector<8x32xf32>,
    %c0_50 = arith.constant 0 : index
    %c0_51 = arith.constant 0 : index
    %102 = vector.load %arg8[%c0_50, %c0_51] : memref<32x32xf32, #tpu.memory_space<vmem>>, vector<32x32xf32>
    %cst_52 = arith.constant dense<0.000000e+00> : vector<8x32xf32>
    %103 = tpu.matmul %100, %102, %cst_52 {dimension_numbers = #tpu.dot_dimension_numbers<[1], [0], [0], [1], [0, 0, 1, 1], [], []>} : vector<8x32xf32>, vector<32x32xf32>, vector<8x32xf32> -> vector<8x32xf32>
    %c0_53 = arith.constant 0 : index
    %c0_54 = arith.constant 0 : index
    %104 = vector.load %arg9[%c0_53, %c0_54] : memref<1x32xf32, #tpu.memory_space<vmem>>, vector<1x32xf32>
    %105 = vector.broadcast %104 : vector<1x32xf32> to vector<8x32xf32>
    %106 = arith.addf %103, %105 : vector<8x32xf32>
    %cst_55 = arith.constant dense<0xFF800000> : vector<8xf32>
    %107 = vector.multi_reduction <maximumf>, %106, %cst_55 [1] : vector<8x32xf32> to vector<8xf32>
    %108 = vector.shape_cast %107 : vector<8xf32> to vector<8x1xf32>
    %109 = vector.broadcast %108 : vector<8x1xf32> to vector<8x32xf32>
    %110 = arith.subf %106, %109 : vector<8x32xf32>
    %111 = math.exp %110 : vector<8x32xf32>
    %cst_56 = arith.constant dense<0.000000e+00> : vector<8xf32>
    %112 = vector.multi_reduction <add>, %111, %cst_56 [1] : vector<8x32xf32> to vector<8xf32>
    %113 = vector.shape_cast %112 : vector<8xf32> to vector<8x1xf32>
    %114 = vector.broadcast %113 : vector<8x1xf32> to vector<8x32xf32>
    %115 = arith.divf %111, %114 : vector<8x32xf32>
    %116 = arith.mulf %100, %115 : vector<8x32xf32>
    %117 = vector.extract_strided_slice %116 {offsets = [0, 0], sizes = [2, 32], strides = [1, 1]} : vector<8x32xf32> to vector<2x32xf32>
    %118 = vector.extract_strided_slice %116 {offsets = [2, 0], sizes = [2, 32], strides = [1, 1]} : vector<8x32xf32> to vector<2x32xf32>
    %119 = vector.extract_strided_slice %116 {offsets = [4, 0], sizes = [2, 32], strides = [1, 1]} : vector<8x32xf32> to vector<2x32xf32>
    %120 = vector.extract_strided_slice %116 {offsets = [6, 0], sizes = [2, 32], strides = [1, 1]} : vector<8x32xf32> to vector<2x32xf32>
    %121 = tpu.concatenate %117, %118, %119, %120 in 1 : vector<2x32xf32>, vector<2x32xf32>, vector<2x32xf32>, vector<2x32xf32> -> vector<2x128xf32>
    %c0_57 = arith.constant 0 : index
    %c0_58 = arith.constant 0 : index
    %122 = vector.load %arg10[%c0_57, %c0_58] : memref<128x256xf32, #tpu.memory_space<vmem>>, vector<128x256xf32>
    %cst_59 = arith.constant dense<0.000000e+00> : vector<2x256xf32>
    %123 = tpu.matmul %121, %122, %cst_59 {dimension_numbers = #tpu.dot_dimension_numbers<[1], [0], [0], [1], [0, 0, 1, 1], [], []>} : vector<2x128xf32>, vector<128x256xf32>, vector<2x256xf32> -> vector<2x256xf32>
    %c0_60 = arith.constant 0 : index
    %c0_61 = arith.constant 0 : index
    %124 = vector.load %arg11[%c0_60, %c0_61] : memref<1x256xf32, #tpu.memory_space<vmem>>, vector<1x256xf32>
    %125 = vector.broadcast %124 : vector<1x256xf32> to vector<2x256xf32>
    %126 = arith.addf %123, %125 : vector<2x256xf32>
    %c0_62 = arith.constant 0 : index
    %c0_63 = arith.constant 0 : index
    %127 = vector.load %arg19[%c0_62, %c0_63] : memref<2x256xf32, #tpu.memory_space<vmem>>, vector<2x256xf32>
    %cst_64 = arith.constant 1.000000e+00 : f32
    %128 = vector.broadcast %cst_64 : f32 to vector<2x256xf32>
    %129 = arith.cmpf ogt, %127, %128 : vector<2x256xf32>
    %130 = arith.extui %129 : vector<2x256xi1> to vector<2x256xi32>
    %131 = arith.sitofp %130 : vector<2x256xi32> to vector<2x256xf32>
    %cst_65 = arith.constant 0.899999976 : f32
    %132 = vector.broadcast %cst_65 : f32 to vector<2x256xf32>
    %133 = arith.mulf %132, %127 : vector<2x256xf32>
    %134 = arith.addf %133, %126 : vector<2x256xf32>
    %cst_66 = arith.constant 1.000000e+00 : f32
    %135 = vector.broadcast %cst_66 : f32 to vector<2x256xf32>
    %136 = arith.mulf %131, %135 : vector<2x256xf32>
    %137 = arith.subf %134, %136 : vector<2x256xf32>
    %cst_67 = arith.constant 1.000000e+00 : f32
    %138 = vector.broadcast %cst_67 : f32 to vector<2x256xf32>
    %139 = arith.cmpf ogt, %137, %138 : vector<2x256xf32>
    %140 = arith.extui %139 : vector<2x256xi1> to vector<2x256xi32>
    %141 = arith.sitofp %140 : vector<2x256xi32> to vector<2x256xf32>
    %c0_68 = arith.constant 0 : index
    %c0_69 = arith.constant 0 : index
    %142 = vector.load %arg19[%c0_68, %c0_69] : memref<2x256xf32, #tpu.memory_space<vmem>>, vector<2x256xf32>
    tpu.vector_store %arg19[%c0_68, %c0_69], %137 {strides = array<i32>} : memref<2x256xf32, #tpu.memory_space<vmem>>, vector<2x256xf32>,
    %c0_70 = arith.constant 0 : index
    %c0_71 = arith.constant 0 : index
    %143 = vector.load %arg12[%c0_70, %c0_71] : memref<256x128xf32, #tpu.memory_space<vmem>>, vector<256x128xf32>
    %cst_72 = arith.constant dense<0.000000e+00> : vector<2x128xf32>
    %144 = tpu.matmul %141, %143, %cst_72 {dimension_numbers = #tpu.dot_dimension_numbers<[1], [0], [0], [1], [0, 0, 1, 1], [], []>} : vector<2x256xf32>, vector<256x128xf32>, vector<2x128xf32> -> vector<2x128xf32>
    %c0_73 = arith.constant 0 : index
    %c0_74 = arith.constant 0 : index
    %145 = vector.load %arg13[%c0_73, %c0_74] : memref<1x128xf32, #tpu.memory_space<vmem>>, vector<1x128xf32>
    %146 = vector.broadcast %145 : vector<1x128xf32> to vector<2x128xf32>
    %147 = arith.addf %144, %146 : vector<2x128xf32>
    %c0_75 = arith.constant 0 : index
    %c0_76 = arith.constant 0 : index
    %148 = vector.load %arg20[%c0_75, %c0_76] : memref<2x128xf32, #tpu.memory_space<vmem>>, vector<2x128xf32>
    %cst_77 = arith.constant 1.000000e+00 : f32
    %149 = vector.broadcast %cst_77 : f32 to vector<2x128xf32>
    %150 = arith.cmpf ogt, %148, %149 : vector<2x128xf32>
    %151 = arith.extui %150 : vector<2x128xi1> to vector<2x128xi32>
    %152 = arith.sitofp %151 : vector<2x128xi32> to vector<2x128xf32>
    %cst_78 = arith.constant 0.899999976 : f32
    %153 = vector.broadcast %cst_78 : f32 to vector<2x128xf32>
    %154 = arith.mulf %153, %148 : vector<2x128xf32>
    %155 = arith.addf %154, %147 : vector<2x128xf32>
    %cst_79 = arith.constant 1.000000e+00 : f32
    %156 = vector.broadcast %cst_79 : f32 to vector<2x128xf32>
    %157 = arith.mulf %152, %156 : vector<2x128xf32>
    %158 = arith.subf %155, %157 : vector<2x128xf32>
    %cst_80 = arith.constant 1.000000e+00 : f32
    %159 = vector.broadcast %cst_80 : f32 to vector<2x128xf32>
    %160 = arith.cmpf ogt, %158, %159 : vector<2x128xf32>
    %161 = arith.extui %160 : vector<2x128xi1> to vector<2x128xi32>
    %162 = arith.sitofp %161 : vector<2x128xi32> to vector<2x128xf32>
    %c0_81 = arith.constant 0 : index
    %c0_82 = arith.constant 0 : index
    %163 = vector.load %arg20[%c0_81, %c0_82] : memref<2x128xf32, #tpu.memory_space<vmem>>, vector<2x128xf32>
    tpu.vector_store %arg20[%c0_81, %c0_82], %158 {strides = array<i32>} : memref<2x128xf32, #tpu.memory_space<vmem>>, vector<2x128xf32>,
    %c0_83 = arith.constant 0 : index
    %c0_84 = arith.constant 0 : index
    %164 = vector.load %arg14[%c0_83, %c0_84] : memref<2x128xf32, #tpu.memory_space<vmem>>, vector<2x128xf32>
    tpu.vector_store %arg14[%c0_83, %c0_84], %162 {strides = array<i32>} : memref<2x128xf32, #tpu.memory_space<vmem>>, vector<2x128xf32>,
    return
  }
  func.func @transform_0(%arg0: i32) -> (i32, i32, i32) {
    %c0_i32 = arith.constant 0 : i32
    %c0_i32_0 = arith.constant 0 : i32
    %c0_i32_1 = arith.constant 0 : i32
    return %arg0, %c0_i32, %c0_i32_0 : i32, i32, i32
  }
  func.func @transform_1(%arg0: i32) -> (i32, i32) {
    %c0_i32 = arith.constant 0 : i32
    %c0_i32_0 = arith.constant 0 : i32
    %c0_i32_1 = arith.constant 0 : i32
    return %c0_i32, %c0_i32_0 : i32, i32
  }
  func.func @transform_2(%arg0: i32) -> (i32, i32) {
    %c0_i32 = arith.constant 0 : i32
    %c0_i32_0 = arith.constant 0 : i32
    %c0_i32_1 = arith.constant 0 : i32
    return %c0_i32, %c0_i32_0 : i32, i32
  }
  func.func @transform_3(%arg0: i32) -> (i32, i32) {
    %c0_i32 = arith.constant 0 : i32
    %c0_i32_0 = arith.constant 0 : i32
    %c0_i32_1 = arith.constant 0 : i32
    return %c0_i32, %c0_i32_0 : i32, i32
  }
  func.func @transform_4(%arg0: i32) -> (i32, i32) {
    %c0_i32 = arith.constant 0 : i32
    %c0_i32_0 = arith.constant 0 : i32
    %c0_i32_1 = arith.constant 0 : i32
    return %c0_i32, %c0_i32_0 : i32, i32
  }
  func.func @transform_5(%arg0: i32) -> (i32, i32) {
    %c0_i32 = arith.constant 0 : i32
    %c0_i32_0 = arith.constant 0 : i32
    %c0_i32_1 = arith.constant 0 : i32
    return %c0_i32, %c0_i32_0 : i32, i32
  }
  func.func @transform_6(%arg0: i32) -> (i32, i32) {
    %c0_i32 = arith.constant 0 : i32
    %c0_i32_0 = arith.constant 0 : i32
    %c0_i32_1 = arith.constant 0 : i32
    return %c0_i32, %c0_i32_0 : i32, i32
  }
  func.func @transform_7(%arg0: i32) -> (i32, i32) {
    %c0_i32 = arith.constant 0 : i32
    %c0_i32_0 = arith.constant 0 : i32
    %c0_i32_1 = arith.constant 0 : i32
    return %c0_i32, %c0_i32_0 : i32, i32
  }
  func.func @transform_8(%arg0: i32) -> (i32, i32) {
    %c0_i32 = arith.constant 0 : i32
    %c0_i32_0 = arith.constant 0 : i32
    %c0_i32_1 = arith.constant 0 : i32
    return %c0_i32, %c0_i32_0 : i32, i32
  }
  func.func @transform_9(%arg0: i32) -> (i32, i32) {
    %c0_i32 = arith.constant 0 : i32
    %c0_i32_0 = arith.constant 0 : i32
    %c0_i32_1 = arith.constant 0 : i32
    return %c0_i32, %c0_i32_0 : i32, i32
  }
  func.func @transform_10(%arg0: i32) -> (i32, i32) {
    %c0_i32 = arith.constant 0 : i32
    %c0_i32_0 = arith.constant 0 : i32
    %c0_i32_1 = arith.constant 0 : i32
    return %c0_i32, %c0_i32_0 : i32, i32
  }
  func.func @transform_11(%arg0: i32) -> (i32, i32) {
    %c0_i32 = arith.constant 0 : i32
    %c0_i32_0 = arith.constant 0 : i32
    %c0_i32_1 = arith.constant 0 : i32
    return %c0_i32, %c0_i32_0 : i32, i32
  }
  func.func @transform_12(%arg0: i32) -> (i32, i32) {
    %c0_i32 = arith.constant 0 : i32
    %c0_i32_0 = arith.constant 0 : i32
    %c0_i32_1 = arith.constant 0 : i32
    return %c0_i32, %c0_i32_0 : i32, i32
  }
  func.func @transform_13(%arg0: i32) -> (i32, i32) {
    %c0_i32 = arith.constant 0 : i32
    %c0_i32_0 = arith.constant 0 : i32
    %c0_i32_1 = arith.constant 0 : i32
    return %c0_i32, %c0_i32_0 : i32, i32
  }
}

</mosaic_0001>

<bundles_post_ra>
// kernel: recurrent_snn_v5_forward.2
= control target key start
LH: loop header
LB: loop body
LE: loop exit
PB: predicated region body
PF: predicated region fallthrough
CT: control target
= control target key end

     0   :  { %s605_s12 = smov 0   ;;  %s712_s0 = inlined_call_operand.vmem [shape: f32[1536,25], index: 0, kind: input, shape index: {}]   ;;  %s713_s1 = inlined_call_operand.vmem [shape: f32[25,32], index: 1, kind: input, shape index: {}]   ;;  %s714_s2 = inlined_call_operand.vmem [shape: f32[1,32], index: 2, kind: input, shape index: {}]   ;;  %s715_s3 = inlined_call_operand.vmem [shape: f32[1536,32], index: 3, kind: output, shape index: {}]  }
   0x1 LB: > { %s472_s13 = sadd.s32 4294967295, %s582_s12   ;;  %p476_p0 = scmp.ge.s32.totalorder %s582_s12, 1  ;;  %s582_s12 = sphi %s605_s12, %s13_s12  }
   0x2   : > { %p138_p1 = scmp.lt.s32.totalorder %s582_s12, 13 }
   0x4   : > { %p139_p2 = pnand %p476_p0, %p138_p1 }
   0x5   : > { %v190_v0 = vld [vmem:[%s713_s1] sm:$0xff] (!%p139_p2)  ;;  %v191_v1 = vld [vmem:[%s713_s1 + $0x8] sm:$0xff] (!%p139_p2)  ;;  %v192_v2 = vld [vmem:[%s713_s1 + $0x10] sm:$0xff] (!%p139_p2)  ;;  %vm250_vm0 = vcmask (!%p139_p2), 1040384   ;;  %s477_s20 = sshll.u32 (!%p139_p2), %s472_s13, 4  ;;  %vm584_vm1 = vmmov (!%p139_p2), 1  }
   0x6   : > { %142 = sbr.rel (%p139_p2) target bundleno = 247 (0xf7), region = 32  ;;  %v553_v3 = vpack.c.bf16 (!%p139_p2), %v191_v1, %v190_v0  ;;  %v193_v4 = vld [vmem:[%s713_s1 + $0x18] sm:$0x1] (!%p139_p2)  ;;  %p163_p3 = scmp.lt.s32.totalorder (!%p139_p2), %s477_s20, 191  ;;  %vm558_vm2 = vmpackc.low (!%p139_p2), %vm250_vm0, %vm584_vm1  ;;  %vm201_vm3 = vcmask (!%p139_p2), 203776   ;;  %vm399_vm4 = vcmask (!%p139_p2), 261120  }
   0x7   : > { %v557_v5 = vpack.c.bf16 (!%p139_p2), %v193_v4, %v192_v2  ;;  %v481_v22 = vld [vmem:[%s714_s2] ss:$0 sm:$0xff] (!%p139_p2) }
   0x8   : > { %554 = vmatprep.subr.bf16.mxu0 (!%p139_p2), %v553_v3  ;;  %563 = vmatprep.subr.bf16.mxu1 (!%p139_p2), %v553_v3 }
   0x9   : > { %556 = vmatpush3.bf16.msra.mxu0 (!%p139_p2), %v553_v3  ;;  %565 = vmatpush3.bf16.msra.mxu1 (!%p139_p2), %v553_v3 }
   0xa   : > { %559 = vmatprep.subr.msk.bf16.mxu0 (!%p139_p2), %vm558_vm2, %v557_v5  ;;  %564 = vmatprep.subr.msk.bf16.mxu1 (!%p139_p2), %vm558_vm2, %v557_v5 }
   0xd   : > { %s717_s20 = smov (!%p163_p3, %s477_s20), 191  ;;  %562 = vmatpush3.bf16.msk.msra.mxu0 %vm558_vm2, %v557_v5  ;;  %566 = vmatpush3.bf16.msk.msra.mxu1 %vm558_vm2, %v557_v5 }
   0xe   : > { %s478_s23 = sshll.u32 %s717_s20, 3 }
   0xf   : > { %s633_s26 = scalar_lea.vmem %s712_s0, %s478_s23  ;;  %s675_s4 = scalar_lea.vmem %s715_s3, %s478_s23 }
  0x10   : > { %v174_v6 = vld [vmem:[%s633_s26] sm:$0xff]  ;;  %v175_v8 = vld [vmem:[%s633_s26 + $0x8] sm:$0xff]  ;;  %v176_v10 = vld [vmem:[%s633_s26 + $0x10] sm:$0xff] }
  0x11   : > { %v182_v7 = vld [vmem:[%s633_s26 + $0x40] sm:$0xff]  ;;  %v183_v9 = vld [vmem:[%s633_s26 + $0x48] sm:$0xff]  ;;  %529 = vmatprep.mubr.msk.f32.mxu0 %vm201_vm3, %v174_v6  ;;  %v184_v11 = vld [vmem:[%s633_s26 + $0x50] sm:$0xff] }
  0x12   : > { %541 = vmatprep.mubr.msk.f32.mxu1 %vm201_vm3, %v182_v7  ;;  %530 = vmatmul.mubr.msk.f32.vlgmr.msra.gmra.mrb[0].mxu0 %vm201_vm3, %v175_v8  ;;  %v177_v12 = vld [vmem:[%s633_s26 + $0x18] sm:$0xff]  ;;  %v178_v14 = vld [vmem:[%s633_s26 + $0x20] sm:$0xff]  ;;  %v179_v16 = vld [vmem:[%s633_s26 + $0x28] sm:$0xff] }
  0x13   : > { %542 = vmatmul.mubr.msk.f32.vlgmr.msra.gmra.mrb[0].mxu1 %vm201_vm3, %v183_v9  ;;  %532 = vmatprep.mubr.msk.f32.mxu0 %vm201_vm3, %v176_v10  ;;  %v185_v13 = vld [vmem:[%s633_s26 + $0x58] sm:$0xff]  ;;  %v186_v15 = vld [vmem:[%s633_s26 + $0x60] sm:$0xff]  ;;  %v187_v17 = vld [vmem:[%s633_s26 + $0x68] sm:$0xff] }
  0x14   : > { %544 = vmatprep.mubr.msk.f32.mxu1 %vm201_vm3, %v184_v11  ;;  %v180_v18 = vld [vmem:[%s633_s26 + $0x30] sm:$0xff]  ;;  %v181_v20 = vld [vmem:[%s633_s26 + $0x38] sm:$0xff] }
  0x15   : > { %v188_v19 = vld [vmem:[%s633_s26 + $0x70] sm:$0xff]  ;;  %v189_v21 = vld [vmem:[%s633_s26 + $0x78] sm:$0xff] }
  0x16   : > { %533 = vmatmul.mubr.msk.f32.gmra.mrb[2].mxu0 %vm201_vm3, %v177_v12 }
  0x17   : > { %545 = vmatmul.mubr.msk.f32.gmra.mrb[2].mxu1 %vm201_vm3, %v185_v13  ;;  %535 = vmatprep.mubr.msk.f32.mxu0 %vm201_vm3, %v178_v14 }
  0x18   : > { %547 = vmatprep.mubr.msk.f32.mxu1 %vm201_vm3, %v186_v15 }
  0x1a   : > { %536 = vmatmul.mubr.msk.f32.gmra.mrb[4].mxu0 %vm201_vm3, %v179_v16 }
  0x1b   : > { %548 = vmatmul.mubr.msk.f32.gmra.mrb[4].mxu1 %vm201_vm3, %v187_v17  ;;  %538 = vmatprep.mubr.msk.f32.mxu0 %vm201_vm3, %v180_v18 }
  0x1c   : > { %550 = vmatprep.mubr.msk.f32.mxu1 %vm201_vm3, %v188_v19 }
  0x1e   : > { %539 = vmatmul.mubr.msk.f32.gmra.mrb[6].mxu0 %vm201_vm3, %v181_v20 }
  0x1f   : > { %551 = vmatmul.mubr.msk.f32.gmra.mrb[6].mxu1 %vm201_vm3, %v189_v21 }
  0xe5   : > { %v531_v23 = vpop.f32.mrb[0].mxu0 }
  0xe6   : > { %v543_v24 = vpop.f32.mrb[0].mxu1  ;;  %v326_v25 = vadd.f32 %v531_v23, %v481_v22  ;;  %v320_v27 = vpop.f32.mrb[1].mxu0 }
  0xe7   : > { %v366_v26 = vadd.f32 %v543_v24, %v481_v22  ;;  %v360_v28 = vpop.f32.mrb[1].mxu1  ;;  %v321_v29 = vadd.f32 %v481_v22, %v320_v27 }
  0xe8   : > { %v361_v30 = vadd.f32 %v481_v22, %v360_v28  ;;  %401 = vst.msk [vmem:[%s675_s4 + $0x8] sm:$0xff] %vm399_vm4, %v326_v25 }
  0xe9   : > { %409 = vst.msk [vmem:[%s675_s4 + $0x48] sm:$0xff] %vm399_vm4, %v366_v26  ;;  %400 = vst.msk [vmem:[%s675_s4] sm:$0xff] %vm399_vm4, %v321_v29  ;;  %v534_v31 = vpop.f32.mrb[2].mxu0 }
  0xea   : > { %408 = vst.msk [vmem:[%s675_s4 + $0x40] sm:$0xff] %vm399_vm4, %v361_v30  ;;  %v546_v32 = vpop.f32.mrb[2].mxu1  ;;  %v336_v33 = vadd.f32 %v534_v31, %v481_v22  ;;  %v330_v35 = vpop.f32.mrb[3].mxu0 }
  0xeb   : > { %v376_v34 = vadd.f32 %v546_v32, %v481_v22  ;;  %v370_v36 = vpop.f32.mrb[3].mxu1  ;;  %v331_v37 = vadd.f32 %v481_v22, %v330_v35 }
  0xec   : > { %v371_v38 = vadd.f32 %v481_v22, %v370_v36  ;;  %403 = vst.msk [vmem:[%s675_s4 + $0x18] sm:$0xff] %vm399_vm4, %v336_v33 }
  0xed   : > { %411 = vst.msk [vmem:[%s675_s4 + $0x58] sm:$0xff] %vm399_vm4, %v376_v34  ;;  %402 = vst.msk [vmem:[%s675_s4 + $0x10] sm:$0xff] %vm399_vm4, %v331_v37  ;;  %v537_v39 = vpop.f32.mrb[4].mxu0 }
  0xee   : > { %410 = vst.msk [vmem:[%s675_s4 + $0x50] sm:$0xff] %vm399_vm4, %v371_v38  ;;  %v549_v40 = vpop.f32.mrb[4].mxu1  ;;  %v346_v41 = vadd.f32 %v537_v39, %v481_v22  ;;  %v340_v43 = vpop.f32.mrb[5].mxu0 }
  0xef   : > { %v386_v42 = vadd.f32 %v549_v40, %v481_v22  ;;  %v380_v44 = vpop.f32.mrb[5].mxu1  ;;  %v341_v45 = vadd.f32 %v481_v22, %v340_v43 }
  0xf0   : > { %v381_v46 = vadd.f32 %v481_v22, %v380_v44  ;;  %405 = vst.msk [vmem:[%s675_s4 + $0x28] sm:$0xff] %vm399_vm4, %v346_v41 }
  0xf1   : > { %413 = vst.msk [vmem:[%s675_s4 + $0x68] sm:$0xff] %vm399_vm4, %v386_v42  ;;  %404 = vst.msk [vmem:[%s675_s4 + $0x20] sm:$0xff] %vm399_vm4, %v341_v45  ;;  %v540_v47 = vpop.f32.mrb[6].mxu0 }
  0xf2   : > { %412 = vst.msk [vmem:[%s675_s4 + $0x60] sm:$0xff] %vm399_vm4, %v381_v46  ;;  %v552_v48 = vpop.f32.mrb[6].mxu1  ;;  %v356_v49 = vadd.f32 %v540_v47, %v481_v22  ;;  %v350_v51 = vpop.f32.mrb[7].mxu0 }
  0xf3   : > { %v396_v50 = vadd.f32 %v552_v48, %v481_v22  ;;  %v390_v52 = vpop.f32.mrb[7].mxu1  ;;  %v351_v53 = vadd.f32 %v481_v22, %v350_v51 }
  0xf4   : > { %v391_v54 = vadd.f32 %v481_v22, %v390_v52  ;;  %407 = vst.msk [vmem:[%s675_s4 + $0x38] sm:$0xff] %vm399_vm4, %v356_v49 }
  0xf5   : > { %415 = vst.msk [vmem:[%s675_s4 + $0x78] sm:$0xff] %vm399_vm4, %v396_v50  ;;  %406 = vst.msk [vmem:[%s675_s4 + $0x30] sm:$0xff] %vm399_vm4, %v351_v53 }
  0xf6   : > { %414 = vst.msk [vmem:[%s675_s4 + $0x70] sm:$0xff] %vm399_vm4, %v391_v54 }
  0xf7 PF: > { %s13_s12 = sadd.s32 1, %s582_s12  }
  0xf8   : > { %p10_p4 = scmp.ge.s32.totalorder %s13_s12, 14  }
  0xfa   :  { %12 = sbr.rel (!%p10_p4) target bundleno = 1 (0x1), region = 62 }

// kernel: recurrent_snn_v5_forward.3
= control target key start
LH: loop header
LB: loop body
LE: loop exit
PB: predicated region body
PF: predicated region fallthrough
CT: control target
= control target key end

     0   :  { %18 = vsyncpa [#allocation9], 0  ;;  %s5839_s25 = smov 0   ;;  %s8674_s0 = inlined_call_operand.vmem [shape: f32[4,384,32], index: 0, kind: input, shape index: {}]   ;;  %s8675_s1 = inlined_call_operand.vmem [shape: f32[648,384], index: 1, kind: input, shape index: {}]   ;;  %s8676_s2 = inlined_call_operand.vmem [shape: f32[288,32], index: 2, kind: input, shape index: {}]   ;;  %s8677_s3 = inlined_call_operand.vmem [shape: f32[1,32], index: 3, kind: input, shape index: {}]   ;;  %s8678_s4 = inlined_call_operand.vmem [shape: f32[72,72], index: 4, kind: input, shape index: {}]   ;;  %s8679_s5 = inlined_call_operand.vmem [shape: f32[288,32], index: 5, kind: input, shape index: {}]   ;;  %s8680_s6 = inlined_call_operand.vmem [shape: f32[1,32], index: 6, kind: input, shape index: {}]   ;;  %s8681_s7 = inlined_call_operand.vmem [shape: f32[32,32], index: 7, kind: input, shape index: {}]   ;;  %s8682_s8 = inlined_call_operand.vmem [shape: f32[1,32], index: 8, kind: input, shape index: {}]   ;;  %s8683_s9 = inlined_call_operand.vmem [shape: f32[128,256], index: 9, kind: input, shape index: {}]   ;;  %s8684_s10 = inlined_call_operand.vmem [shape: f32[1,256], index: 10, kind: input, shape index: {}]   ;;  %s8685_s11 = inlined_call_operand.vmem [shape: f32[256,128], index: 11, kind: input, shape index: {}]   ;;  %s8686_s12 = inlined_call_operand.vmem [shape: f32[1,128], index: 12, kind: input, shape index: {}]   ;;  %s8687_s13 = inlined_call_operand.hbm [shape: f32[2,128], index: 13, kind: output, shape index: {}]  }
   0x1 LB: > { %s5845_s26 = sadd.s32 4294967295, %s5756_s25   ;;  %p4341_p0 = scmp.ge.s32.totalorder %s5756_s25, 1  ;;  %s5756_s25 = sphi %s5839_s25, %s24_s25  }
   0x2   : > { %p383_p1 = scmp.lt.s32.totalorder %s5756_s25, 5 }
   0x4   : > { %p384_p2 = pnand %p4341_p0, %p383_p1 }
   0x6   : > { %387 = sbr.rel (%p384_p2) target bundleno = 3031 (0xbd7), region = 72 }
   0xd   : > { %p422_p3 = scmp.lt.s32.totalorder %s5845_s26, 3  ;;  %p4343_p4 = scmp.ne.s32.totalorder %s5845_s26, 0 }
   0xe   : > { %vm431_vm0 = vcmask (!%p4343_p4), 261120   ;;  %v5758_v0 = vmov (!%p4343_p4), 0.0  }
   0xf   : > { %s423_s27 = scalar_select %p422_p3, %s5845_s26, 3 }
  0x10   : > { %430 = sbr.rel (%p4343_p4) target bundleno = 70 (0x46), region = 76  ;;  %432 = vst.msk [vmem:[#allocation2] sm:$0xff] (!%p4343_p4), %vm431_vm0, %v5758_v0  ;;  %433 = vst.msk [vmem:[#allocation2 + $0x8] sm:$0xff] (!%p4343_p4), %vm431_vm0, %v5758_v0 }
  0x11   : > { %s5540_s28 = smul.u32 384, %s423_s27  ;;  %434 = vst.msk [vmem:[#allocation2 + $0x10] sm:$0xff] (!%p4343_p4), %vm431_vm0, %v5758_v0  ;;  %435 = vst.msk [vmem:[#allocation2 + $0x18] sm:$0xff] (!%p4343_p4), %vm431_vm0, %v5758_v0 }
  0x12   : > { %436 = vst.msk [vmem:[#allocation2 + $0x20] sm:$0xff] (!%p4343_p4), %vm431_vm0, %v5758_v0  ;;  %437 = vst.msk [vmem:[#allocation2 + $0x28] sm:$0xff] (!%p4343_p4), %vm431_vm0, %v5758_v0 }
  0x13   : > { %s5854_s14 = scalar_lea.vmem %s8674_s0, %s5540_s28  ;;  %438 = vst.msk [vmem:[#allocation2 + $0x30] sm:$0xff] (!%p4343_p4), %vm431_vm0, %v5758_v0  ;;  %439 = vst.msk [vmem:[#allocation2 + $0x38] sm:$0xff] (!%p4343_p4), %vm431_vm0, %v5758_v0 }
  0x14   : > { %440 = vst.msk [vmem:[#allocation2 + $0x40] sm:$0xff] (!%p4343_p4), %vm431_vm0, %v5758_v0  ;;  %441 = vst.msk [vmem:[#allocation2 + $0x48] sm:$0xff] (!%p4343_p4), %vm431_vm0, %v5758_v0 }
  0x15   : > { %442 = vst.msk [vmem:[#allocation2 + $0x50] sm:$0xff] (!%p4343_p4), %vm431_vm0, %v5758_v0  ;;  %443 = vst.msk [vmem:[#allocation2 + $0x58] sm:$0xff] (!%p4343_p4), %vm431_vm0, %v5758_v0 }
  0x16   : > { %444 = vst.msk [vmem:[#allocation2 + $0x60] sm:$0xff] (!%p4343_p4), %vm431_vm0, %v5758_v0  ;;  %445 = vst.msk [vmem:[#allocation2 + $0x68] sm:$0xff] (!%p4343_p4), %vm431_vm0, %v5758_v0 }
  0x17   : > { %446 = vst.msk [vmem:[#allocation2 + $0x70] sm:$0xff] %vm431_vm0, %v5758_v0  ;;  %447 = vst.msk [vmem:[#allocation2 + $0x78] sm:$0xff] %vm431_vm0, %v5758_v0 }
  0x18   : > { %448 = vst.msk [vmem:[#allocation2 + $0x80] sm:$0xff] %vm431_vm0, %v5758_v0  ;;  %449 = vst.msk [vmem:[#allocation2 + $0x88] sm:$0xff] %vm431_vm0, %v5758_v0 }
  0x19   : > { %450 = vst.msk [vmem:[#allocation2 + $0x90] sm:$0xff] %vm431_vm0, %v5758_v0  ;;  %451 = vst.msk [vmem:[#allocation2 + $0x98] sm:$0xff] %vm431_vm0, %v5758_v0 }
  0x1a   : > { %452 = vst.msk [vmem:[#allocation2 + $0xa0] sm:$0xff] %vm431_vm0, %v5758_v0  ;;  %453 = vst.msk [vmem:[#allocation2 + $0xa8] sm:$0xff] %vm431_vm0, %v5758_v0 }
  0x1b   : > { %454 = vst.msk [vmem:[#allocation2 + $0xb0] sm:$0xff] %vm431_vm0, %v5758_v0  ;;  %455 = vst.msk [vmem:[#allocation2 + $0xb8] sm:$0xff] %vm431_vm0, %v5758_v0 }
  0x1c   : > { %456 = vst.msk [vmem:[#allocation2 + $0xc0] sm:$0xff] %vm431_vm0, %v5758_v0  ;;  %457 = vst.msk [vmem:[#allocation2 + $0xc8] sm:$0xff] %vm431_vm0, %v5758_v0 }
  0x1d   : > { %458 = vst.msk [vmem:[#allocation2 + $0xd0] sm:$0xff] %vm431_vm0, %v5758_v0  ;;  %459 = vst.msk [vmem:[#allocation2 + $0xd8] sm:$0xff] %vm431_vm0, %v5758_v0 }
  0x1e   : > { %460 = vst.msk [vmem:[#allocation2 + $0xe0] sm:$0xff] %vm431_vm0, %v5758_v0  ;;  %461 = vst.msk [vmem:[#allocation2 + $0xe8] sm:$0xff] %vm431_vm0, %v5758_v0 }
  0x1f   : > { %462 = vst.msk [vmem:[#allocation2 + $0xf0] sm:$0xff] %vm431_vm0, %v5758_v0  ;;  %463 = vst.msk [vmem:[#allocation2 + $0xf8] sm:$0xff] %vm431_vm0, %v5758_v0 }
  0x20   : > { %464 = vst.msk [vmem:[#allocation2 + $0x100] sm:$0xff] %vm431_vm0, %v5758_v0  ;;  %465 = vst.msk [vmem:[#allocation2 + $0x108] sm:$0xff] %vm431_vm0, %v5758_v0 }
  0x21   : > { %466 = vst.msk [vmem:[#allocation2 + $0x110] sm:$0xff] %vm431_vm0, %v5758_v0  ;;  %467 = vst.msk [vmem:[#allocation2 + $0x118] sm:$0xff] %vm431_vm0, %v5758_v0 }
  0x22   : > { %468 = vst.msk [vmem:[#allocation2 + $0x120] sm:$0xff] %vm431_vm0, %v5758_v0  ;;  %469 = vst.msk [vmem:[#allocation2 + $0x128] sm:$0xff] %vm431_vm0, %v5758_v0 }
  0x23   : > { %470 = vst.msk [vmem:[#allocation2 + $0x130] sm:$0xff] %vm431_vm0, %v5758_v0  ;;  %471 = vst.msk [vmem:[#allocation2 + $0x138] sm:$0xff] %vm431_vm0, %v5758_v0 }
  0x24   : > { %472 = vst.msk [vmem:[#allocation2 + $0x140] sm:$0xff] %vm431_vm0, %v5758_v0  ;;  %473 = vst.msk [vmem:[#allocation2 + $0x148] sm:$0xff] %vm431_vm0, %v5758_v0 }
  0x25   : > { %474 = vst.msk [vmem:[#allocation2 + $0x150] sm:$0xff] %vm431_vm0, %v5758_v0  ;;  %475 = vst.msk [vmem:[#allocation2 + $0x158] sm:$0xff] %vm431_vm0, %v5758_v0 }
  0x26   : > { %476 = vst.msk [vmem:[#allocation2 + $0x160] sm:$0xff] %vm431_vm0, %v5758_v0  ;;  %477 = vst.msk [vmem:[#allocation2 + $0x168] sm:$0xff] %vm431_vm0, %v5758_v0 }
  0x27   : > { %478 = vst.msk [vmem:[#allocation2 + $0x170] sm:$0xff] %vm431_vm0, %v5758_v0  ;;  %479 = vst.msk [vmem:[#allocation2 + $0x178] sm:$0xff] %vm431_vm0, %v5758_v0 }
  0x28   : > { %480 = vst.msk [vmem:[#allocation3] sm:$0xff] %vm431_vm0, %v5758_v0  ;;  %481 = vst.msk [vmem:[#allocation3 + $0x8] sm:$0xff] %vm431_vm0, %v5758_v0 }
  0x29   : > { %482 = vst.msk [vmem:[#allocation3 + $0x10] sm:$0xff] %vm431_vm0, %v5758_v0  ;;  %483 = vst.msk [vmem:[#allocation3 + $0x18] sm:$0xff] %vm431_vm0, %v5758_v0 }
  0x2a   : > { %484 = vst.msk [vmem:[#allocation3 + $0x20] sm:$0xff] %vm431_vm0, %v5758_v0  ;;  %485 = vst.msk [vmem:[#allocation3 + $0x28] sm:$0xff] %vm431_vm0, %v5758_v0 }
  0x2b   : > { %486 = vst.msk [vmem:[#allocation3 + $0x30] sm:$0xff] %vm431_vm0, %v5758_v0  ;;  %487 = vst.msk [vmem:[#allocation3 + $0x38] sm:$0xff] %vm431_vm0, %v5758_v0 }
  0x2c   : > { %488 = vst.msk [vmem:[#allocation3 + $0x40] sm:$0xff] %vm431_vm0, %v5758_v0  ;;  %489 = vst.msk [vmem:[#allocation3 + $0x48] sm:$0xff] %vm431_vm0, %v5758_v0 }
  0x2d   : > { %490 = vst.msk [vmem:[#allocation3 + $0x50] sm:$0xff] %vm431_vm0, %v5758_v0  ;;  %491 = vst.msk [vmem:[#allocation3 + $0x58] sm:$0xff] %vm431_vm0, %v5758_v0 }
  0x2e   : > { %492 = vst.msk [vmem:[#allocation3 + $0x60] sm:$0xff] %vm431_vm0, %v5758_v0  ;;  %493 = vst.msk [vmem:[#allocation3 + $0x68] sm:$0xff] %vm431_vm0, %v5758_v0 }
  0x2f   : > { %494 = vst.msk [vmem:[#allocation3 + $0x70] sm:$0xff] %vm431_vm0, %v5758_v0  ;;  %495 = vst.msk [vmem:[#allocation3 + $0x78] sm:$0xff] %vm431_vm0, %v5758_v0 }
  0x30   : > { %496 = vst.msk [vmem:[#allocation3 + $0x80] sm:$0xff] %vm431_vm0, %v5758_v0  ;;  %497 = vst.msk [vmem:[#allocation3 + $0x88] sm:$0xff] %vm431_vm0, %v5758_v0 }
  0x31   : > { %498 = vst.msk [vmem:[#allocation3 + $0x90] sm:$0xff] %vm431_vm0, %v5758_v0  ;;  %499 = vst.msk [vmem:[#allocation3 + $0x98] sm:$0xff] %vm431_vm0, %v5758_v0 }
  0x32   : > { %500 = vst.msk [vmem:[#allocation3 + $0xa0] sm:$0xff] %vm431_vm0, %v5758_v0  ;;  %501 = vst.msk [vmem:[#allocation3 + $0xa8] sm:$0xff] %vm431_vm0, %v5758_v0 }
  0x33   : > { %502 = vst.msk [vmem:[#allocation3 + $0xb0] sm:$0xff] %vm431_vm0, %v5758_v0  ;;  %503 = vst.msk [vmem:[#allocation3 + $0xb8] sm:$0xff] %vm431_vm0, %v5758_v0 }
  0x34   : > { %504 = vst.msk [vmem:[#allocation3 + $0xc0] sm:$0xff] %vm431_vm0, %v5758_v0  ;;  %505 = vst.msk [vmem:[#allocation3 + $0xc8] sm:$0xff] %vm431_vm0, %v5758_v0 }
  0x35   : > { %506 = vst.msk [vmem:[#allocation3 + $0xd0] sm:$0xff] %vm431_vm0, %v5758_v0  ;;  %507 = vst.msk [vmem:[#allocation3 + $0xd8] sm:$0xff] %vm431_vm0, %v5758_v0 }
  0x36   : > { %508 = vst.msk [vmem:[#allocation3 + $0xe0] sm:$0xff] %vm431_vm0, %v5758_v0  ;;  %509 = vst.msk [vmem:[#allocation3 + $0xe8] sm:$0xff] %vm431_vm0, %v5758_v0 }
  0x37   : > { %510 = vst.msk [vmem:[#allocation3 + $0xf0] sm:$0xff] %vm431_vm0, %v5758_v0  ;;  %511 = vst.msk [vmem:[#allocation3 + $0xf8] sm:$0xff] %vm431_vm0, %v5758_v0 }
  0x38   : > { %512 = vst.msk [vmem:[#allocation3 + $0x100] sm:$0xff] %vm431_vm0, %v5758_v0  ;;  %513 = vst.msk [vmem:[#allocation3 + $0x108] sm:$0xff] %vm431_vm0, %v5758_v0 }
  0x39   : > { %514 = vst.msk [vmem:[#allocation3 + $0x110] sm:$0xff] %vm431_vm0, %v5758_v0  ;;  %515 = vst.msk [vmem:[#allocation3 + $0x118] sm:$0xff] %vm431_vm0, %v5758_v0 }
  0x3a   : > { %516 = vst.msk [vmem:[#allocation3 + $0x120] sm:$0xff] %vm431_vm0, %v5758_v0  ;;  %517 = vst.msk [vmem:[#allocation3 + $0x128] sm:$0xff] %vm431_vm0, %v5758_v0 }
  0x3b   : > { %518 = vst.msk [vmem:[#allocation3 + $0x130] sm:$0xff] %vm431_vm0, %v5758_v0  ;;  %519 = vst.msk [vmem:[#allocation3 + $0x138] sm:$0xff] %vm431_vm0, %v5758_v0 }
  0x3c   : > { %520 = vst.msk [vmem:[#allocation3 + $0x140] sm:$0xff] %vm431_vm0, %v5758_v0  ;;  %521 = vst.msk [vmem:[#allocation3 + $0x148] sm:$0xff] %vm431_vm0, %v5758_v0 }
  0x3d   : > { %522 = vst.msk [vmem:[#allocation3 + $0x150] sm:$0xff] %vm431_vm0, %v5758_v0  ;;  %523 = vst.msk [vmem:[#allocation3 + $0x158] sm:$0xff] %vm431_vm0, %v5758_v0 }
  0x3e   : > { %524 = vst.msk [vmem:[#allocation3 + $0x160] sm:$0xff] %vm431_vm0, %v5758_v0  ;;  %525 = vst.msk [vmem:[#allocation3 + $0x168] sm:$0xff] %vm431_vm0, %v5758_v0 }
  0x3f   : > { %526 = vst.msk [vmem:[#allocation3 + $0x170] sm:$0xff] %vm431_vm0, %v5758_v0  ;;  %527 = vst.msk [vmem:[#allocation3 + $0x178] sm:$0xff] %vm431_vm0, %v5758_v0 }
  0x40   : > { %528 = vst.msk [vmem:[#allocation4] sm:$0xff] %vm431_vm0, %v5758_v0  ;;  %529 = vst.msk [vmem:[#allocation4 + $0x8] sm:$0xff] %vm431_vm0, %v5758_v0 }
  0x41   : > { %530 = vst.msk [vmem:[#allocation4 + $0x10] sm:$0xff] %vm431_vm0, %v5758_v0  ;;  %531 = vst.msk [vmem:[#allocation4 + $0x18] sm:$0xff] %vm431_vm0, %v5758_v0 }
  0x42   : > { %532 = vst.msk [vmem:[#allocation4 + $0x20] sm:$0xff] %vm431_vm0, %v5758_v0  ;;  %533 = vst.msk [vmem:[#allocation4 + $0x28] sm:$0xff] %vm431_vm0, %v5758_v0 }
  0x43   : > { %534 = vst.msk [vmem:[#allocation4 + $0x30] sm:$0xff] %vm431_vm0, %v5758_v0  ;;  %535 = vst.msk [vmem:[#allocation4 + $0x38] sm:$0xff] %vm431_vm0, %v5758_v0 }
  0x44   : > { %536 = vst.msk [vmem:[#allocation4 + $0x40] sm:$0xff] %vm431_vm0, %v5758_v0  ;;  %537 = vst.msk [vmem:[#allocation5] sm:$0xff] %vm431_vm0, %v5758_v0 }
  0x45   : > { %538 = vst [vmem:[#allocation6] sm:$0xf] %v5758_v0  ;;  %539 = vst [vmem:[#allocation7] sm:$0x3] %v5758_v0 }
  0x46 PF: > { %v590_v2 = vld [vmem:[%s5854_s14 + $0x10] sm:$0xff]  ;;  %vm1068_vm1 = vcmask 261120   ;;  %v540_v3 = vld [vmem:[#allocation2] sm:$0xff]  ;;  %v8693_v7 = vmov 0.0   ;;  %v591_v11 = vld [vmem:[%s5854_s14 + $0x18] sm:$0xff]  ;;  %s5762_s15 = smov 64  }
  0x47   : > { %v542_v1 = vld [vmem:[#allocation2 + $0x10] sm:$0xff]  ;;  %v588_v5 = vld [vmem:[%s5854_s14] sm:$0xff]  ;;  %vm636_vm3 = vcmp.gt.f32.partialorder %v540_v3, 1.0  ;;  %v543_v6 = vld [vmem:[#allocation2 + $0x18] sm:$0xff]  ;;  %v780_v10 = vmul.f32 0.9, %v540_v3 }
  0x48   : > { %vm638_vm2 = vcmp.gt.f32.partialorder %v542_v1, 1.0  ;;  %v782_v4 = vmul.f32 0.9, %v542_v1  ;;  %v4344_v9 = vsel %vm636_vm3, 1.0, %v8693_v7  ;;  %vm639_vm4 = vcmp.gt.f32.partialorder %v543_v6, 1.0  ;;  %v541_v15 = vld [vmem:[#allocation2 + $0x8] sm:$0xff] }
  0x49   : > { %v4346_v8 = vsel %vm638_vm2, 1.0, %v8693_v7  ;;  %v4347_v13 = vsel %vm639_vm4, 1.0, %v8693_v7  ;;  %v783_v14 = vmul.f32 0.9, %v543_v6  ;;  %v589_v16 = vld [vmem:[%s5854_s14 + $0x8] sm:$0xff]  ;;  %v828_v18 = vadd.f32 %v780_v10, %v588_v5  ;;  %v544_v20 = vld [vmem:[#allocation2 + $0x20] sm:$0xff] }
  0x4a   : > { %v830_v12 = vadd.f32 %v782_v4, %v590_v2  ;;  %v545_v17 = vld [vmem:[#allocation2 + $0x28] sm:$0xff]  ;;  %vm637_vm5 = vcmp.gt.f32.partialorder %v541_v15, 1.0  ;;  %v781_v19 = vmul.f32 0.9, %v541_v15  ;;  %v592_v29 = vld [vmem:[%s5854_s14 + $0x20] sm:$0xff]  ;;  %vm640_vm7 = vcmp.gt.f32.partialorder %v544_v20, 1.0 }
  0x4b   : > { %vm641_vm6 = vcmp.gt.f32.partialorder %v545_v17, 1.0  ;;  %v831_v22 = vadd.f32 %v783_v14, %v591_v11  ;;  %v4345_v23 = vsel %vm637_vm5, 1.0, %v8693_v7  ;;  %v593_v24 = vld [vmem:[%s5854_s14 + $0x28] sm:$0xff]  ;;  %v876_v26 = vsub.f32 %v828_v18, %v4344_v9  ;;  %v547_v39 = vld [vmem:[#allocation2 + $0x38] sm:$0xff]  ;;  %v546_v43 = vld [vmem:[#allocation2 + $0x30] sm:$0xff]  ;;  %s5763_s24 = smov 96  }
  0x4c   : > { %v878_v21 = vsub.f32 %v830_v12, %v4346_v8  ;;  %v4349_v25 = vsel %vm641_vm6, 1.0, %v8693_v7  ;;  %v829_v27 = vadd.f32 %v781_v19, %v589_v16  ;;  %v785_v28 = vmul.f32 0.9, %v545_v17  ;;  %v595_v47 = vld [vmem:[%s5854_s14 + $0x38] sm:$0xff]  ;;  %v594_v48 = vld [vmem:[%s5854_s14 + $0x30] sm:$0xff]  ;;  %v549_v52 = vld [vmem:[#allocation2 + $0x48] sm:$0xff] }
  0x4d   : > { %v879_v30 = vsub.f32 %v831_v22, %v4347_v13  ;;  %v4348_v31 = vsel %vm640_vm7, 1.0, %v8693_v7  ;;  %v784_v32 = vmul.f32 0.9, %v544_v20  ;;  %vm924_vm9 = vcmp.gt.f32.partialorder %v876_v26, 1.0  ;;  %1069 = vst.msk [vmem:[#allocation2] sm:$0xff] %vm1068_vm1, %v876_v26  ;;  %v548_v55 = vld [vmem:[#allocation2 + $0x40] sm:$0xff] }
  0x4e   : > { %vm926_vm8 = vcmp.gt.f32.partialorder %v878_v21, 1.0  ;;  %1071 = vst.msk [vmem:[#allocation2 + $0x10] sm:$0xff] %vm1068_vm1, %v878_v21  ;;  %v877_v34 = vsub.f32 %v829_v27, %v4345_v23  ;;  %v833_v35 = vadd.f32 %v785_v28, %v593_v24  ;;  %v6091_v37 = vsel %vm924_vm9, 1.0, %v8693_v7  ;;  %v597_v60 = vld [vmem:[%s5854_s14 + $0x48] sm:$0xff]  ;;  %v596_v0 = vld [vmem:[%s5854_s14 + $0x40] sm:$0xff]  ;;  %v551_v1 = vld [vmem:[#allocation2 + $0x58] sm:$0xff] }
  0x4f   : > { %v6085_v33 = vsel %vm926_vm8, 1.0, %v8693_v7  ;;  %vm927_vm10 = vcmp.gt.f32.partialorder %v879_v30, 1.0  ;;  %1072 = vst.msk [vmem:[#allocation2 + $0x18] sm:$0xff] %vm1068_vm1, %v879_v30  ;;  %v832_v38 = vadd.f32 %v784_v32, %v592_v29  ;;  %v1117_v40 = vsel %vm1068_vm1, %v6091_v37, 0.0  ;;  %v599_v9 = vld [vmem:[%s5854_s14 + $0x58] sm:$0xff]  ;;  %v550_v13 = vld [vmem:[#allocation2 + $0x50] sm:$0xff] }
  0x50   : > { %v1123_v36 = vsel %vm1068_vm1, %v6085_v33, 0.0  ;;  %v6097_v41 = vsel %vm927_vm10, 1.0, %v8693_v7  ;;  %vm925_vm11 = vcmp.gt.f32.partialorder %v877_v34, 1.0  ;;  %1070 = vst.msk [vmem:[#allocation2 + $0x8] sm:$0xff] %vm1068_vm1, %v877_v34  ;;  %v881_v42 = vsub.f32 %v833_v35, %v4349_v25  ;;  %1118 = vadd.xlane.f32.xlu0 %v1117_v40  ;;  %v598_v20 = vld [vmem:[%s5854_s14 + $0x50] sm:$0xff]  ;;  %v553_v24 = vld [vmem:[#allocation2 + $0x68] sm:$0xff] }
  0x51   : > { %1124 = vadd.xlane.f32.xlu1 %v1123_v36  ;;  %v1126_v44 = vsel %vm1068_vm1, %v6097_v41, 0.0  ;;  %v6103_v45 = vsel %vm925_vm11, 1.0, %v8693_v7  ;;  %v880_v46 = vsub.f32 %v832_v38, %v4348_v31  ;;  %vm643_vm12 = vcmp.gt.f32.partialorder %v547_v39, 1.0  ;;  %v552_v27 = vld [vmem:[#allocation2 + $0x60] sm:$0xff]  ;;  %v601_v31 = vld [vmem:[%s5854_s14 + $0x68] sm:$0xff]  ;;  %v555_v34 = vld [vmem:[#allocation2 + $0x78] sm:$0xff] }
  0x52   : > { %v1120_v49 = vsel %vm1068_vm1, %v6103_v45, 0.0  ;;  %vm929_vm13 = vcmp.gt.f32.partialorder %v881_v42, 1.0  ;;  %1074 = vst.msk [vmem:[#allocation2 + $0x28] sm:$0xff] %vm1068_vm1, %v881_v42  ;;  %v4351_v50 = vsel %vm643_vm12, 1.0, %v8693_v7  ;;  %v787_v51 = vmul.f32 0.9, %v547_v39 }
  0x53   : > { %v6112_v53 = vsel %vm929_vm13, 1.0, %v8693_v7  ;;  %vm928_vm14 = vcmp.gt.f32.partialorder %v880_v46, 1.0  ;;  %1073 = vst.msk [vmem:[#allocation2 + $0x20] sm:$0xff] %vm1068_vm1, %v880_v46  ;;  %vm642_vm15 = vcmp.gt.f32.partialorder %v546_v43, 1.0  ;;  %v786_v54 = vmul.f32 0.9, %v546_v43 }
  0x54   : > { %v1132_v56 = vsel %vm1068_vm1, %v6112_v53, 0.0  ;;  %v6118_v57 = vsel %vm928_vm14, 1.0, %v8693_v7  ;;  %v835_v58 = vadd.f32 %v787_v51, %v595_v47  ;;  %v4350_v59 = vsel %vm642_vm15, 1.0, %v8693_v7  ;;  %1121 = vadd.xlane.f32.xlu0 %v1120_v49  ;;  %v600_v38 = vld [vmem:[%s5854_s14 + $0x60] sm:$0xff]  ;;  %v554_v49 = vld [vmem:[#allocation2 + $0x70] sm:$0xff]  ;;  %s5768_s22 = smov [#allocation8]  }
  0x55   : > { %1127 = vadd.xlane.f32.xlu1 %v1126_v44  ;;  %v1129_v61 = vsel %vm1068_vm1, %v6118_v57, 0.0  ;;  %v834_v62 = vadd.f32 %v786_v54, %v594_v48  ;;  %vm645_vm0 = vcmp.gt.f32.partialorder %v549_v52, 1.0  ;;  %v789_v63 = vmul.f32 0.9, %v549_v52  ;;  %v603_v44 = vld [vmem:[%s5854_s14 + $0x78] sm:$0xff]  ;;  %v557_v52 = vld [vmem:[#allocation2 + $0x88] sm:$0xff] }
  0x56   : > { %v883_v2 = vsub.f32 %v835_v58, %v4351_v50  ;;  %v4353_v3 = vsel %vm645_vm0, 1.0, %v8693_v7  ;;  %vm644_vm2 = vcmp.gt.f32.partialorder %v548_v55, 1.0  ;;  %v788_v4 = vmul.f32 0.9, %v548_v55  ;;  %v602_v58 = vld [vmem:[%s5854_s14 + $0x70] sm:$0xff]  ;;  %s4299_s23 = sshll.u32 %s5768_s22, 4  ;;  %s4300_s23 = int_to_ptr.vmem [resolvable:$true] %s4299_s23 }
  0x57   : > { %v882_v5 = vsub.f32 %v834_v62, %v4350_v59  ;;  %v837_v6 = vadd.f32 %v789_v63, %v597_v60  ;;  %v4352_v8 = vsel %vm644_vm2, 1.0, %v8693_v7  ;;  %vm647_vm3 = vcmp.gt.f32.partialorder %v551_v1, 1.0  ;;  %v605_v63 = vld [vmem:[%s5854_s14 + $0x88] sm:$0xff]  ;;  %p5545_p5 = scmp.eq.s32.totalorder %s5845_s26, 3  ;;  %p5727_p9 = scmp.lt.s32.totalorder %s4300_s23, %s4300_s23 }
  0x58   : > { %vm931_vm4 = vcmp.gt.f32.partialorder %v883_v2, 1.0  ;;  %1076 = vst.msk [vmem:[#allocation2 + $0x38] sm:$0xff] %vm1068_vm1, %v883_v2  ;;  %v836_v10 = vadd.f32 %v788_v4, %v596_v0  ;;  %v4355_v11 = vsel %vm647_vm3, 1.0, %v8693_v7  ;;  %v791_v12 = vmul.f32 0.9, %v551_v1  ;;  %1130 = vadd.xlane.f32.xlu0 %v1129_v61 }
  0x59   : > { %1133 = vadd.xlane.f32.xlu1 %v1132_v56  ;;  %v6131_v14 = vsel %vm931_vm4, 1.0, %v8693_v7  ;;  %vm930_vm5 = vcmp.gt.f32.partialorder %v882_v5, 1.0  ;;  %1075 = vst.msk [vmem:[#allocation2 + $0x30] sm:$0xff] %vm1068_vm1, %v882_v5  ;;  %v885_v15 = vsub.f32 %v837_v6, %v4353_v3  ;;  %vm646_vm6 = vcmp.gt.f32.partialorder %v550_v13, 1.0  ;;  %v556_v3 = vld [vmem:[#allocation2 + $0x80] sm:$0xff] }
  0x5a   : > { %v1138_v16 = vsel %vm1068_vm1, %v6131_v14, 0.0  ;;  %v6137_v17 = vsel %vm930_vm5, 1.0, %v8693_v7  ;;  %v884_v18 = vsub.f32 %v836_v10, %v4352_v8  ;;  %v839_v19 = vadd.f32 %v791_v12, %v599_v9  ;;  %v559_v10 = vld [vmem:[#allocation2 + $0x98] sm:$0xff] }
  0x5b   : > { %v1135_v21 = vsel %vm1068_vm1, %v6137_v17, 0.0  ;;  %vm933_vm7 = vcmp.gt.f32.partialorder %v885_v15, 1.0  ;;  %1078 = vst.msk [vmem:[#allocation2 + $0x48] sm:$0xff] %vm1068_vm1, %v885_v15  ;;  %v4354_v22 = vsel %vm646_vm6, 1.0, %v8693_v7  ;;  %v790_v23 = vmul.f32 0.9, %v550_v13 }
  0x5c   : > { %v6145_v25 = vsel %vm933_vm7, 1.0, %v8693_v7  ;;  %vm932_vm8 = vcmp.gt.f32.partialorder %v884_v18, 1.0  ;;  %1077 = vst.msk [vmem:[#allocation2 + $0x40] sm:$0xff] %vm1068_vm1, %v884_v18  ;;  %v887_v26 = vsub.f32 %v839_v19, %v4355_v11  ;;  %vm649_vm9 = vcmp.gt.f32.partialorder %v553_v24, 1.0  ;;  %1136 = vadd.xlane.f32.xlu0 %v1135_v21  ;;  %v604_v15 = vld [vmem:[%s5854_s14 + $0x80] sm:$0xff]  ;;  %v607_v21 = vld [vmem:[%s5854_s14 + $0x98] sm:$0xff] }
  0x5d   : > { %1139 = vadd.xlane.f32.xlu1 %v1138_v16  ;;  %v1144_v28 = vsel %vm1068_vm1, %v6145_v25, 0.0  ;;  %v6151_v29 = vsel %vm932_vm8, 1.0, %v8693_v7  ;;  %v838_v30 = vadd.f32 %v790_v23, %v598_v20  ;;  %v4357_v32 = vsel %vm649_vm9, 1.0, %v8693_v7 }
  0x5e   : > { %v1141_v35 = vsel %vm1068_vm1, %v6151_v29, 0.0  ;;  %vm935_vm10 = vcmp.gt.f32.partialorder %v887_v26, 1.0  ;;  %1080 = vst.msk [vmem:[#allocation2 + $0x58] sm:$0xff] %vm1068_vm1, %v887_v26  ;;  %v793_v36 = vmul.f32 0.9, %v553_v24  ;;  %vm648_vm11 = vcmp.gt.f32.partialorder %v552_v27, 1.0 }
  0x5f   : > { %v6160_v39 = vsel %vm935_vm10, 1.0, %v8693_v7  ;;  %v886_v40 = vsub.f32 %v838_v30, %v4354_v22  ;;  %v4356_v42 = vsel %vm648_vm11, 1.0, %v8693_v7  ;;  %v792_v43 = vmul.f32 0.9, %v552_v27  ;;  %v558_v22 = vld [vmem:[#allocation2 + $0x90] sm:$0xff]  ;;  %v561_v26 = vld [vmem:[#allocation2 + $0xa8] sm:$0xff] }
  0x60   : > { %v1150_v46 = vsel %vm1068_vm1, %v6160_v39, 0.0  ;;  %v841_v47 = vadd.f32 %v793_v36, %v601_v31  ;;  %vm651_vm12 = vcmp.gt.f32.partialorder %v555_v34, 1.0  ;;  %v795_v48 = vmul.f32 0.9, %v555_v34  ;;  %1142 = vadd.xlane.f32.xlu0 %v1141_v35  ;;  %v606_v30 = vld [vmem:[%s5854_s14 + $0x90] sm:$0xff] }
  0x61   : > { %1145 = vadd.xlane.f32.xlu1 %v1144_v28  ;;  %vm934_vm13 = vcmp.gt.f32.partialorder %v886_v40, 1.0  ;;  %1079 = vst.msk [vmem:[#allocation2 + $0x50] sm:$0xff] %vm1068_vm1, %v886_v40  ;;  %v840_v50 = vadd.f32 %v792_v43, %v600_v38  ;;  %v4359_v51 = vsel %vm651_vm12, 1.0, %v8693_v7  ;;  %vm650_vm14 = vcmp.gt.f32.partialorder %v554_v49, 1.0  ;;  %v609_v38 = vld [vmem:[%s5854_s14 + $0xa8] sm:$0xff]  ;;  %v560_v40 = vld [vmem:[#allocation2 + $0xa0] sm:$0xff] }
  0x62   : > { %v6169_v54 = vsel %vm934_vm13, 1.0, %v8693_v7  ;;  %v889_v55 = vsub.f32 %v841_v47, %v4357_v32  ;;  %v843_v56 = vadd.f32 %v795_v48, %v603_v44  ;;  %v4358_v59 = vsel %vm650_vm14, 1.0, %v8693_v7 }
  0x63   : > { %v1147_v60 = vsel %vm1068_vm1, %v6169_v54, 0.0  ;;  %v888_v61 = vsub.f32 %v840_v50, %v4356_v42  ;;  %v794_v62 = vmul.f32 0.9, %v554_v49  ;;  %vm653_vm15 = vcmp.gt.f32.partialorder %v557_v52, 1.0  ;;  %v608_v49 = vld [vmem:[%s5854_s14 + $0xa0] sm:$0xff] }
  0x64   : > { %vm937_vm0 = vcmp.gt.f32.partialorder %v889_v55, 1.0  ;;  %1082 = vst.msk [vmem:[#allocation2 + $0x68] sm:$0xff] %vm1068_vm1, %v889_v55  ;;  %v891_v0 = vsub.f32 %v843_v56, %v4359_v51  ;;  %v4361_v1 = vsel %vm653_vm15, 1.0, %v8693_v7  ;;  %v797_v2 = vmul.f32 0.9, %v557_v52  ;;  %1148 = vadd.xlane.f32.xlu0 %v1147_v60  ;;  %v563_v55 = vld [vmem:[#allocation2 + $0xb8] sm:$0xff] }
  0x65   : > { %1151 = vadd.xlane.f32.xlu1 %v1150_v46  ;;  %v6179_v4 = vsel %vm937_vm0, 1.0, %v8693_v7  ;;  %vm936_vm2 = vcmp.gt.f32.partialorder %v888_v61, 1.0  ;;  %1081 = vst.msk [vmem:[#allocation2 + $0x60] sm:$0xff] %vm1068_vm1, %v888_v61  ;;  %v842_v5 = vadd.f32 %v794_v62, %v602_v58  ;;  %vm652_vm3 = vcmp.gt.f32.partialorder %v556_v3, 1.0 }
  0x66   : > { %v1156_v6 = vsel %vm1068_vm1, %v6179_v4, 0.0  ;;  %v6185_v8 = vsel %vm936_vm2, 1.0, %v8693_v7  ;;  %vm939_vm4 = vcmp.gt.f32.partialorder %v891_v0, 1.0  ;;  %1084 = vst.msk [vmem:[#allocation2 + $0x78] sm:$0xff] %vm1068_vm1, %v891_v0  ;;  %v845_v9 = vadd.f32 %v797_v2, %v605_v63  ;;  %v611_v63 = vld [vmem:[%s5854_s14 + $0xb8] sm:$0xff] }
  0x67   : > { %v1153_v11 = vsel %vm1068_vm1, %v6185_v8, 0.0  ;;  %v6191_v12 = vsel %vm939_vm4, 1.0, %v8693_v7  ;;  %v890_v13 = vsub.f32 %v842_v5, %v4358_v59  ;;  %v4360_v16 = vsel %vm652_vm3, 1.0, %v8693_v7 }
  0x68   : > { %v1162_v18 = vsel %vm1068_vm1, %v6191_v12, 0.0  ;;  %v893_v19 = vsub.f32 %v845_v9, %v4361_v1  ;;  %v796_v20 = vmul.f32 0.9, %v556_v3  ;;  %vm655_vm5 = vcmp.gt.f32.partialorder %v559_v10, 1.0  ;;  %1154 = vadd.xlane.f32.xlu0 %v1153_v11  ;;  %v562_v3 = vld [vmem:[#allocation2 + $0xb0] sm:$0xff]  ;;  %v565_v9 = vld [vmem:[#allocation2 + $0xc8] sm:$0xff] }
  0x69   : > { %1157 = vadd.xlane.f32.xlu1 %v1156_v6  ;;  %vm938_vm6 = vcmp.gt.f32.partialorder %v890_v13, 1.0  ;;  %1083 = vst.msk [vmem:[#allocation2 + $0x70] sm:$0xff] %vm1068_vm1, %v890_v13  ;;  %v4363_v23 = vsel %vm655_vm5, 1.0, %v8693_v7  ;;  %v799_v24 = vmul.f32 0.9, %v559_v10  ;;  %vm654_vm7 = vcmp.gt.f32.partialorder %v558_v22, 1.0 }
  0x6a   : > { %v6201_v27 = vsel %vm938_vm6, 1.0, %v8693_v7  ;;  %vm941_vm8 = vcmp.gt.f32.partialorder %v893_v19, 1.0  ;;  %1086 = vst.msk [vmem:[#allocation2 + $0x88] sm:$0xff] %vm1068_vm1, %v893_v19  ;;  %v844_v28 = vadd.f32 %v796_v20, %v604_v15  ;;  %v4362_v31 = vsel %vm654_vm7, 1.0, %v8693_v7  ;;  %v610_v15 = vld [vmem:[%s5854_s14 + $0xb0] sm:$0xff] }
  0x6b   : > { %v1159_v32 = vsel %vm1068_vm1, %v6201_v27, 0.0  ;;  %v6209_v34 = vsel %vm941_vm8, 1.0, %v8693_v7  ;;  %v847_v35 = vadd.f32 %v799_v24, %v607_v21  ;;  %v798_v36 = vmul.f32 0.9, %v558_v22  ;;  %v613_v21 = vld [vmem:[%s5854_s14 + $0xc8] sm:$0xff] }
  0x6c   : > { %v1168_v42 = vsel %vm1068_vm1, %v6209_v34, 0.0  ;;  %v892_v43 = vsub.f32 %v844_v28, %v4360_v16  ;;  %vm657_vm9 = vcmp.gt.f32.partialorder %v561_v26, 1.0  ;;  %v801_v44 = vmul.f32 0.9, %v561_v26  ;;  %1160 = vadd.xlane.f32.xlu0 %v1159_v32  ;;  %v612_v28 = vld [vmem:[%s5854_s14 + $0xc0] sm:$0xff] }
  0x6d   : > { %1163 = vadd.xlane.f32.xlu1 %v1162_v18  ;;  %v895_v46 = vsub.f32 %v847_v35, %v4363_v23  ;;  %v846_v47 = vadd.f32 %v798_v36, %v606_v30  ;;  %v4365_v48 = vsel %vm657_vm9, 1.0, %v8693_v7  ;;  %vm656_vm10 = vcmp.gt.f32.partialorder %v560_v40, 1.0  ;;  %v564_v18 = vld [vmem:[#allocation2 + $0xc0] sm:$0xff]  ;;  %v567_v35 = vld [vmem:[#allocation2 + $0xd8] sm:$0xff] }
  0x6e   : > { %vm940_vm11 = vcmp.gt.f32.partialorder %v892_v43, 1.0  ;;  %1085 = vst.msk [vmem:[#allocation2 + $0x80] sm:$0xff] %vm1068_vm1, %v892_v43  ;;  %v849_v50 = vadd.f32 %v801_v44, %v609_v38  ;;  %v4364_v51 = vsel %vm656_vm10, 1.0, %v8693_v7  ;;  %v800_v52 = vmul.f32 0.9, %v560_v40  ;;  %v566_v40 = vld [vmem:[#allocation2 + $0xd0] sm:$0xff] }
  0x6f   : > { %v6219_v56 = vsel %vm940_vm11, 1.0, %v8693_v7  ;;  %vm943_vm12 = vcmp.gt.f32.partialorder %v895_v46, 1.0  ;;  %1088 = vst.msk [vmem:[#allocation2 + $0x98] sm:$0xff] %vm1068_vm1, %v895_v46  ;;  %v894_v58 = vsub.f32 %v846_v47, %v4362_v31  ;;  %vm659_vm13 = vcmp.gt.f32.partialorder %v563_v55, 1.0  ;;  %v615_v46 = vld [vmem:[%s5854_s14 + $0xd8] sm:$0xff] }
  0x70   : > { %v1165_v59 = vsel %vm1068_vm1, %v6219_v56, 0.0  ;;  %v6225_v60 = vsel %vm943_vm12, 1.0, %v8693_v7  ;;  %v897_v61 = vsub.f32 %v849_v50, %v4365_v48  ;;  %v848_v62 = vadd.f32 %v800_v52, %v608_v49 }
  0x71   : > { %1169 = vadd.xlane.f32.xlu1 %v1168_v42  ;;  %1166 = vadd.xlane.f32.xlu0 %v1165_v59  ;;  %v1174_v0 = vsel %vm1068_vm1, %v6225_v60, 0.0  ;;  %vm942_vm14 = vcmp.gt.f32.partialorder %v894_v58, 1.0  ;;  %1087 = vst.msk [vmem:[#allocation2 + $0x90] sm:$0xff] %vm1068_vm1, %v894_v58  ;;  %v4367_v1 = vsel %vm659_vm13, 1.0, %v8693_v7  ;;  %v803_v2 = vmul.f32 0.9, %v563_v55 }
  0x72   : > { %v6233_v5 = vsel %vm942_vm14, 1.0, %v8693_v7  ;;  %vm945_vm15 = vcmp.gt.f32.partialorder %v897_v61, 1.0  ;;  %1090 = vst.msk [vmem:[#allocation2 + $0xa8] sm:$0xff] %vm1068_vm1, %v897_v61  ;;  %v896_v6 = vsub.f32 %v848_v62, %v4364_v51  ;;  %vm658_vm0 = vcmp.gt.f32.partialorder %v562_v3, 1.0  ;;  %v614_v51 = vld [vmem:[%s5854_s14 + $0xd0] sm:$0xff]  ;;  %v569_v59 = vld [vmem:[#allocation2 + $0xe8] sm:$0xff] }
  0x73   : > { %v1171_v10 = vsel %vm1068_vm1, %v6233_v5, 0.0  ;;  %v6239_v11 = vsel %vm945_vm15, 1.0, %v8693_v7  ;;  %v851_v13 = vadd.f32 %v803_v2, %v611_v63  ;;  %v4366_v16 = vsel %vm658_vm0, 1.0, %v8693_v7  ;;  %v568_v2 = vld [vmem:[#allocation2 + $0xe0] sm:$0xff] }
  0x74   : > { %v1180_v19 = vsel %vm1068_vm1, %v6239_v11, 0.0  ;;  %vm944_vm2 = vcmp.gt.f32.partialorder %v896_v6, 1.0  ;;  %1089 = vst.msk [vmem:[#allocation2 + $0xa0] sm:$0xff] %vm1068_vm1, %v896_v6  ;;  %v802_v20 = vmul.f32 0.9, %v562_v3  ;;  %vm661_vm3 = vcmp.gt.f32.partialorder %v565_v9, 1.0 }
  0x75   : > { %1175 = vadd.xlane.f32.xlu1 %v1174_v0  ;;  %1172 = vadd.xlane.f32.xlu0 %v1171_v10  ;;  %v6248_v22 = vsel %vm944_vm2, 1.0, %v8693_v7  ;;  %v899_v23 = vsub.f32 %v851_v13, %v4367_v1  ;;  %v4369_v24 = vsel %vm661_vm3, 1.0, %v8693_v7  ;;  %v805_v26 = vmul.f32 0.9, %v565_v9  ;;  %v617_v10 = vld [vmem:[%s5854_s14 + $0xe8] sm:$0xff] }
  0x76   : > { %v1177_v30 = vsel %vm1068_vm1, %v6248_v22, 0.0  ;;  %v850_v31 = vadd.f32 %v802_v20, %v610_v15  ;;  %vm660_vm4 = vcmp.gt.f32.partialorder %v564_v18, 1.0  ;;  %v804_v32 = vmul.f32 0.9, %v564_v18  ;;  %v571_v20 = vld [vmem:[#allocation2 + $0xf8] sm:$0xff] }
  0x77   : > { %vm947_vm5 = vcmp.gt.f32.partialorder %v899_v23, 1.0  ;;  %1092 = vst.msk [vmem:[#allocation2 + $0xb8] sm:$0xff] %vm1068_vm1, %v899_v23  ;;  %v853_v36 = vadd.f32 %v805_v26, %v613_v21  ;;  %v4368_v38 = vsel %vm660_vm4, 1.0, %v8693_v7  ;;  %vm663_vm6 = vcmp.gt.f32.partialorder %v567_v35, 1.0 }
  0x78   : > { %v6257_v42 = vsel %vm947_vm5, 1.0, %v8693_v7  ;;  %v898_v43 = vsub.f32 %v850_v31, %v4366_v16  ;;  %v852_v44 = vadd.f32 %v804_v32, %v612_v28  ;;  %v4371_v47 = vsel %vm663_vm6, 1.0, %v8693_v7 }
  0x79   : > { %1181 = vadd.xlane.f32.xlu1 %v1180_v19  ;;  %1178 = vadd.xlane.f32.xlu0 %v1177_v30  ;;  %v1186_v48 = vsel %vm1068_vm1, %v6257_v42, 0.0  ;;  %v901_v49 = vsub.f32 %v853_v36, %v4369_v24  ;;  %v807_v50 = vmul.f32 0.9, %v567_v35  ;;  %vm662_vm7 = vcmp.gt.f32.partialorder %v566_v40, 1.0  ;;  %v616_v19 = vld [vmem:[%s5854_s14 + $0xe0] sm:$0xff]  ;;  %v570_v24 = vld [vmem:[#allocation2 + $0xf0] sm:$0xff] }
  0x7a   : > { %vm946_vm8 = vcmp.gt.f32.partialorder %v898_v43, 1.0  ;;  %1091 = vst.msk [vmem:[#allocation2 + $0xb0] sm:$0xff] %vm1068_vm1, %v898_v43  ;;  %v900_v52 = vsub.f32 %v852_v44, %v4368_v38  ;;  %v4370_v55 = vsel %vm662_vm7, 1.0, %v8693_v7  ;;  %v806_v58 = vmul.f32 0.9, %v566_v40  ;;  %v619_v30 = vld [vmem:[%s5854_s14 + $0xf8] sm:$0xff] }
  0x7b   : > { %v6267_v61 = vsel %vm946_vm8, 1.0, %v8693_v7  ;;  %vm949_vm9 = vcmp.gt.f32.partialorder %v901_v49, 1.0  ;;  %1094 = vst.msk [vmem:[#allocation2 + $0xc8] sm:$0xff] %vm1068_vm1, %v901_v49  ;;  %v855_v62 = vadd.f32 %v807_v50, %v615_v46  ;;  %vm665_vm10 = vcmp.gt.f32.partialorder %v569_v59, 1.0  ;;  %v618_v40 = vld [vmem:[%s5854_s14 + $0xf0] sm:$0xff]  ;;  %v573_v43 = vld [vmem:[#allocation2 + $0x108] sm:$0xff] }
  0x7c   : > { %v1183_v63 = vsel %vm1068_vm1, %v6267_v61, 0.0  ;;  %v6273_v0 = vsel %vm949_vm9, 1.0, %v8693_v7  ;;  %vm948_vm11 = vcmp.gt.f32.partialorder %v900_v52, 1.0  ;;  %1093 = vst.msk [vmem:[#allocation2 + $0xc0] sm:$0xff] %vm1068_vm1, %v900_v52  ;;  %v854_v1 = vadd.f32 %v806_v58, %v614_v51  ;;  %v621_v51 = vld [vmem:[%s5854_s14 + $0x108] sm:$0xff] }
  0x7d   : > { %1187 = vadd.xlane.f32.xlu1 %v1186_v48  ;;  %1184 = vadd.xlane.f32.xlu0 %v1183_v63  ;;  %v1192_v3 = vsel %vm1068_vm1, %v6273_v0, 0.0  ;;  %v6279_v6 = vsel %vm948_vm11, 1.0, %v8693_v7  ;;  %v903_v9 = vsub.f32 %v855_v62, %v4371_v47  ;;  %v4373_v13 = vsel %vm665_vm10, 1.0, %v8693_v7 }
  0x7e   : > { %v1189_v15 = vsel %vm1068_vm1, %v6279_v6, 0.0  ;;  %v902_v16 = vsub.f32 %v854_v1, %v4370_v55  ;;  %v809_v18 = vmul.f32 0.9, %v569_v59  ;;  %vm664_vm12 = vcmp.gt.f32.partialorder %v568_v2, 1.0  ;;  %v572_v59 = vld [vmem:[#allocation2 + $0x100] sm:$0xff] }
  0x7f   : > { %vm951_vm13 = vcmp.gt.f32.partialorder %v903_v9, 1.0  ;;  %1096 = vst.msk [vmem:[#allocation2 + $0xd8] sm:$0xff] %vm1068_vm1, %v903_v9  ;;  %v4372_v21 = vsel %vm664_vm12, 1.0, %v8693_v7  ;;  %v808_v23 = vmul.f32 0.9, %v568_v2  ;;  %vm667_vm14 = vcmp.gt.f32.partialorder %v571_v20, 1.0 }
  0x80   : > { %v6289_v26 = vsel %vm951_vm13, 1.0, %v8693_v7  ;;  %vm950_vm15 = vcmp.gt.f32.partialorder %v902_v16, 1.0  ;;  %1095 = vst.msk [vmem:[#allocation2 + $0xd0] sm:$0xff] %vm1068_vm1, %v902_v16  ;;  %v857_v28 = vadd.f32 %v809_v18, %v617_v10  ;;  %v4375_v31 = vsel %vm667_vm14, 1.0, %v8693_v7  ;;  %v620_v10 = vld [vmem:[%s5854_s14 + $0x100] sm:$0xff]  ;;  %v575_v18 = vld [vmem:[#allocation2 + $0x118] sm:$0xff] }
  0x81   : > { %1193 = vadd.xlane.f32.xlu1 %v1192_v3  ;;  %1190 = vadd.xlane.f32.xlu0 %v1189_v15  ;;  %v1198_v32 = vsel %vm1068_vm1, %v6289_v26, 0.0  ;;  %v6297_v35 = vsel %vm950_vm15, 1.0, %v8693_v7  ;;  %v856_v36 = vadd.f32 %v808_v23, %v616_v19  ;;  %v811_v38 = vmul.f32 0.9, %v571_v20 }
  0x82   : > { %v1195_v44 = vsel %vm1068_vm1, %v6297_v35, 0.0  ;;  %v905_v46 = vsub.f32 %v857_v28, %v4373_v13  ;;  %vm666_vm0 = vcmp.gt.f32.partialorder %v570_v24, 1.0  ;;  %v810_v47 = vmul.f32 0.9, %v570_v24 }
  0x83   : > { %v904_v48 = vsub.f32 %v856_v36, %v4372_v21  ;;  %v859_v49 = vadd.f32 %v811_v38, %v619_v30  ;;  %v4374_v50 = vsel %vm666_vm0, 1.0, %v8693_v7  ;;  %vm669_vm2 = vcmp.gt.f32.partialorder %v573_v43, 1.0  ;;  %v574_v21 = vld [vmem:[#allocation2 + $0x110] sm:$0xff]  ;;  %v623_v30 = vld [vmem:[%s5854_s14 + $0x118] sm:$0xff] }
  0x84   : > { %vm953_vm3 = vcmp.gt.f32.partialorder %v905_v46, 1.0  ;;  %1098 = vst.msk [vmem:[#allocation2 + $0xe8] sm:$0xff] %vm1068_vm1, %v905_v46  ;;  %v858_v52 = vadd.f32 %v810_v47, %v618_v40  ;;  %v4377_v55 = vsel %vm669_vm2, 1.0, %v8693_v7  ;;  %v813_v58 = vmul.f32 0.9, %v573_v43  ;;  %v622_v40 = vld [vmem:[%s5854_s14 + $0x110] sm:$0xff] }
  0x85   : > { %1199 = vadd.xlane.f32.xlu1 %v1198_v32  ;;  %1196 = vadd.xlane.f32.xlu0 %v1195_v44  ;;  %v6307_v62 = vsel %vm953_vm3, 1.0, %v8693_v7  ;;  %vm952_vm4 = vcmp.gt.f32.partialorder %v904_v48, 1.0  ;;  %1097 = vst.msk [vmem:[#allocation2 + $0xe0] sm:$0xff] %vm1068_vm1, %v904_v48  ;;  %v907_v63 = vsub.f32 %v859_v49, %v4375_v31  ;;  %vm668_vm5 = vcmp.gt.f32.partialorder %v572_v59, 1.0  ;;  %v577_v32 = vld [vmem:[#allocation2 + $0x128] sm:$0xff] }
  0x86   : > { %v1204_v1 = vsel %vm1068_vm1, %v6307_v62, 0.0  ;;  %v6313_v2 = vsel %vm952_vm4, 1.0, %v8693_v7  ;;  %v906_v3 = vsub.f32 %v858_v52, %v4374_v50  ;;  %v861_v9 = vadd.f32 %v813_v58, %v621_v51  ;;  %v625_v48 = vld [vmem:[%s5854_s14 + $0x128] sm:$0xff]  ;;  %v576_v52 = vld [vmem:[#allocation2 + $0x120] sm:$0xff] }
  0x87   : > { %v1201_v13 = vsel %vm1068_vm1, %v6313_v2, 0.0  ;;  %vm955_vm6 = vcmp.gt.f32.partialorder %v907_v63, 1.0  ;;  %1100 = vst.msk [vmem:[#allocation2 + $0xf8] sm:$0xff] %vm1068_vm1, %v907_v63  ;;  %v4376_v15 = vsel %vm668_vm5, 1.0, %v8693_v7  ;;  %v812_v16 = vmul.f32 0.9, %v572_v59 }
  0x88   : > { %v6321_v19 = vsel %vm955_vm6, 1.0, %v8693_v7  ;;  %vm954_vm7 = vcmp.gt.f32.partialorder %v906_v3, 1.0  ;;  %1099 = vst.msk [vmem:[#allocation2 + $0xf0] sm:$0xff] %vm1068_vm1, %v906_v3  ;;  %v909_v20 = vsub.f32 %v861_v9, %v4377_v55  ;;  %vm671_vm8 = vcmp.gt.f32.partialorder %v575_v18, 1.0  ;;  %v579_v59 = vld [vmem:[#allocation2 + $0x138] sm:$0xff]  ;;  %v624_v9 = vld [vmem:[%s5854_s14 + $0x120] sm:$0xff] }
  0x89   : > { %1205 = vadd.xlane.f32.xlu1 %v1204_v1  ;;  %1202 = vadd.xlane.f32.xlu0 %v1201_v13  ;;  %v1210_v23 = vsel %vm1068_vm1, %v6321_v19, 0.0  ;;  %v6327_v24 = vsel %vm954_vm7, 1.0, %v8693_v7  ;;  %v860_v28 = vadd.f32 %v812_v16, %v620_v10  ;;  %v4379_v31 = vsel %vm671_vm8, 1.0, %v8693_v7 }
  0x8a   : > { %v1207_v36 = vsel %vm1068_vm1, %v6327_v24, 0.0  ;;  %vm957_vm9 = vcmp.gt.f32.partialorder %v909_v20, 1.0  ;;  %1102 = vst.msk [vmem:[#allocation2 + $0x108] sm:$0xff] %vm1068_vm1, %v909_v20  ;;  %v815_v38 = vmul.f32 0.9, %v575_v18  ;;  %vm670_vm10 = vcmp.gt.f32.partialorder %v574_v21, 1.0 }
  0x8b   : > { %v6336_v43 = vsel %vm957_vm9, 1.0, %v8693_v7  ;;  %v908_v44 = vsub.f32 %v860_v28, %v4376_v15  ;;  %v4378_v46 = vsel %vm670_vm10, 1.0, %v8693_v7  ;;  %v814_v47 = vmul.f32 0.9, %v574_v21  ;;  %v627_v18 = vld [vmem:[%s5854_s14 + $0x138] sm:$0xff]  ;;  %v578_v28 = vld [vmem:[#allocation2 + $0x130] sm:$0xff] }
  0x8c   : > { %v1216_v49 = vsel %vm1068_vm1, %v6336_v43, 0.0  ;;  %v863_v50 = vadd.f32 %v815_v38, %v623_v30  ;;  %vm673_vm11 = vcmp.gt.f32.partialorder %v577_v32, 1.0  ;;  %v817_v51 = vmul.f32 0.9, %v577_v32 }
  0x8d   : > { %1211 = vadd.xlane.f32.xlu1 %v1210_v23  ;;  %1208 = vadd.xlane.f32.xlu0 %v1207_v36  ;;  %vm956_vm12 = vcmp.gt.f32.partialorder %v908_v44, 1.0  ;;  %1101 = vst.msk [vmem:[#allocation2 + $0x100] sm:$0xff] %vm1068_vm1, %v908_v44  ;;  %v862_v55 = vadd.f32 %v814_v47, %v622_v40  ;;  %v4381_v58 = vsel %vm673_vm11, 1.0, %v8693_v7  ;;  %vm672_vm13 = vcmp.gt.f32.partialorder %v576_v52, 1.0  ;;  %v581_v40 = vld [vmem:[#allocation2 + $0x148] sm:$0xff] }
  0x8e   : > { %v6345_v63 = vsel %vm956_vm12, 1.0, %v8693_v7  ;;  %v911_v1 = vsub.f32 %v863_v50, %v4379_v31  ;;  %v865_v3 = vadd.f32 %v817_v51, %v625_v48  ;;  %v4380_v10 = vsel %vm672_vm13, 1.0, %v8693_v7  ;;  %v626_v48 = vld [vmem:[%s5854_s14 + $0x130] sm:$0xff] }
  0x8f   : > { %v1213_v13 = vsel %vm1068_vm1, %v6345_v63, 0.0  ;;  %v910_v15 = vsub.f32 %v862_v55, %v4378_v46  ;;  %v816_v16 = vmul.f32 0.9, %v576_v52  ;;  %vm675_vm14 = vcmp.gt.f32.partialorder %v579_v59, 1.0  ;;  %v629_v55 = vld [vmem:[%s5854_s14 + $0x148] sm:$0xff] }
  0x90   : > { %vm959_vm15 = vcmp.gt.f32.partialorder %v911_v1, 1.0  ;;  %1104 = vst.msk [vmem:[#allocation2 + $0x118] sm:$0xff] %vm1068_vm1, %v911_v1  ;;  %v913_v20 = vsub.f32 %v865_v3, %v4381_v58  ;;  %v4383_v21 = vsel %vm675_vm14, 1.0, %v8693_v7  ;;  %v819_v23 = vmul.f32 0.9, %v579_v59  ;;  %v580_v58 = vld [vmem:[#allocation2 + $0x140] sm:$0xff] }
  0x91   : > { %1217 = vadd.xlane.f32.xlu1 %v1216_v49  ;;  %1214 = vadd.xlane.f32.xlu0 %v1213_v13  ;;  %v6355_v30 = vsel %vm959_vm15, 1.0, %v8693_v7  ;;  %vm958_vm0 = vcmp.gt.f32.partialorder %v910_v15, 1.0  ;;  %1103 = vst.msk [vmem:[#allocation2 + $0x110] sm:$0xff] %vm1068_vm1, %v910_v15  ;;  %v864_v31 = vadd.f32 %v816_v16, %v624_v9  ;;  %vm674_vm2 = vcmp.gt.f32.partialorder %v578_v28, 1.0  ;;  %v583_v3 = vld [vmem:[#allocation2 + $0x158] sm:$0xff]  ;;  %v628_v13 = vld [vmem:[%s5854_s14 + $0x140] sm:$0xff] }
  0x92   : > { %v1222_v32 = vsel %vm1068_vm1, %v6355_v30, 0.0  ;;  %v6361_v36 = vsel %vm958_vm0, 1.0, %v8693_v7  ;;  %vm961_vm3 = vcmp.gt.f32.partialorder %v913_v20, 1.0  ;;  %1106 = vst.msk [vmem:[#allocation2 + $0x128] sm:$0xff] %vm1068_vm1, %v913_v20  ;;  %v867_v38 = vadd.f32 %v819_v23, %v627_v18  ;;  %v631_v23 = vld [vmem:[%s5854_s14 + $0x158] sm:$0xff] }
  0x93   : > { %v1219_v44 = vsel %vm1068_vm1, %v6361_v36, 0.0  ;;  %v6367_v46 = vsel %vm961_vm3, 1.0, %v8693_v7  ;;  %v912_v47 = vsub.f32 %v864_v31, %v4380_v10  ;;  %v4382_v49 = vsel %vm674_vm2, 1.0, %v8693_v7 }
  0x94   : > { %v1228_v50 = vsel %vm1068_vm1, %v6367_v46, 0.0  ;;  %v915_v51 = vsub.f32 %v867_v38, %v4383_v21  ;;  %v818_v52 = vmul.f32 0.9, %v578_v28  ;;  %vm677_vm4 = vcmp.gt.f32.partialorder %v581_v40, 1.0  ;;  %v582_v28 = vld [vmem:[#allocation2 + $0x150] sm:$0xff] }
  0x95   : > { %1223 = vadd.xlane.f32.xlu1 %v1222_v32  ;;  %1220 = vadd.xlane.f32.xlu0 %v1219_v44  ;;  %vm960_vm5 = vcmp.gt.f32.partialorder %v912_v47, 1.0  ;;  %1105 = vst.msk [vmem:[#allocation2 + $0x120] sm:$0xff] %vm1068_vm1, %v912_v47  ;;  %v4385_v59 = vsel %vm677_vm4, 1.0, %v8693_v7  ;;  %v821_v1 = vmul.f32 0.9, %v581_v40  ;;  %vm676_vm6 = vcmp.gt.f32.partialorder %v580_v58, 1.0 }
  0x96   : > { %v6377_v9 = vsel %vm960_vm5, 1.0, %v8693_v7  ;;  %vm963_vm7 = vcmp.gt.f32.partialorder %v915_v51, 1.0  ;;  %1108 = vst.msk [vmem:[#allocation2 + $0x138] sm:$0xff] %vm1068_vm1, %v915_v51  ;;  %v866_v10 = vadd.f32 %v818_v52, %v626_v48  ;;  %v4384_v15 = vsel %vm676_vm6, 1.0, %v8693_v7  ;;  %v630_v48 = vld [vmem:[%s5854_s14 + $0x150] sm:$0xff] }
  0x97   : > { %v1225_v16 = vsel %vm1068_vm1, %v6377_v9, 0.0  ;;  %v6385_v18 = vsel %vm963_vm7, 1.0, %v8693_v7  ;;  %v869_v20 = vadd.f32 %v821_v1, %v629_v55  ;;  %v820_v21 = vmul.f32 0.9, %v580_v58  ;;  %v585_v55 = vld [vmem:[#allocation2 + $0x168] sm:$0xff] }
  0x98   : > { %v1234_v31 = vsel %vm1068_vm1, %v6385_v18, 0.0  ;;  %v914_v32 = vsub.f32 %v866_v10, %v4382_v49  ;;  %vm679_vm8 = vcmp.gt.f32.partialorder %v583_v3, 1.0  ;;  %v823_v38 = vmul.f32 0.9, %v583_v3 }
  0x99   : > { %1229 = vadd.xlane.f32.xlu1 %v1228_v50  ;;  %1226 = vadd.xlane.f32.xlu0 %v1225_v16  ;;  %v917_v40 = vsub.f32 %v869_v20, %v4385_v59  ;;  %v868_v44 = vadd.f32 %v820_v21, %v628_v13  ;;  %v4387_v47 = vsel %vm679_vm8, 1.0, %v8693_v7  ;;  %vm678_vm9 = vcmp.gt.f32.partialorder %v582_v28, 1.0  ;;  %v633_v13 = vld [vmem:[%s5854_s14 + $0x168] sm:$0xff]  ;;  %v584_v21 = vld [vmem:[#allocation2 + $0x160] sm:$0xff] }
  0x9a   : > { %vm962_vm10 = vcmp.gt.f32.partialorder %v914_v32, 1.0  ;;  %1107 = vst.msk [vmem:[#allocation2 + $0x130] sm:$0xff] %vm1068_vm1, %v914_v32  ;;  %v871_v51 = vadd.f32 %v823_v38, %v631_v23  ;;  %v4386_v50 = vsel %vm678_vm9, 1.0, %v8693_v7  ;;  %v822_v52 = vmul.f32 0.9, %v582_v28 }
  0x9b   : > { %v6395_v49 = vsel %vm962_vm10, 1.0, %v8693_v7  ;;  %vm965_vm11 = vcmp.gt.f32.partialorder %v917_v40, 1.0  ;;  %1110 = vst.msk [vmem:[#allocation2 + $0x148] sm:$0xff] %vm1068_vm1, %v917_v40  ;;  %v916_v58 = vsub.f32 %v868_v44, %v4384_v15  ;;  %vm681_vm12 = vcmp.gt.f32.partialorder %v585_v55, 1.0  ;;  %v632_v44 = vld [vmem:[%s5854_s14 + $0x160] sm:$0xff] }
  0x9c   : > { %v1231_v59 = vsel %vm1068_vm1, %v6395_v49, 0.0  ;;  %v6401_v1 = vsel %vm965_vm11, 1.0, %v8693_v7  ;;  %v919_v3 = vsub.f32 %v871_v51, %v4387_v47  ;;  %v870_v10 = vadd.f32 %v822_v52, %v630_v48  ;;  %v586_v48 = vld [vmem:[#allocation2 + $0x170] sm:$0xff]  ;;  %v635_v52 = vld [vmem:[%s5854_s14 + $0x178] sm:$0xff] }
  0x9d   : > { %1235 = vadd.xlane.f32.xlu1 %v1234_v31  ;;  %1232 = vadd.xlane.f32.xlu0 %v1231_v59  ;;  %v1240_v16 = vsel %vm1068_vm1, %v6401_v1, 0.0  ;;  %vm964_vm13 = vcmp.gt.f32.partialorder %v916_v58, 1.0  ;;  %1109 = vst.msk [vmem:[#allocation2 + $0x140] sm:$0xff] %vm1068_vm1, %v916_v58  ;;  %v4389_v15 = vsel %vm681_vm12, 1.0, %v8693_v7  ;;  %v825_v20 = vmul.f32 0.9, %v585_v55 }
  0x9e   : > { %v6409_v23 = vsel %vm964_vm13, 1.0, %v8693_v7  ;;  %vm967_vm14 = vcmp.gt.f32.partialorder %v919_v3, 1.0  ;;  %1112 = vst.msk [vmem:[#allocation2 + $0x158] sm:$0xff] %vm1068_vm1, %v919_v3  ;;  %v918_v28 = vsub.f32 %v870_v10, %v4386_v50  ;;  %vm680_vm15 = vcmp.gt.f32.partialorder %v584_v21, 1.0  ;;  %v587_v31 = vld [vmem:[#allocation2 + $0x178] sm:$0xff]  ;;  %v634_v10 = vld [vmem:[%s5854_s14 + $0x170] sm:$0xff] }
  0x9f   : > { %v1237_v32 = vsel %vm1068_vm1, %v6409_v23, 0.0  ;;  %v6415_v38 = vsel %vm967_vm14, 1.0, %v8693_v7  ;;  %v873_v40 = vadd.f32 %v825_v20, %v633_v13  ;;  %v4388_v47 = vsel %vm680_vm15, 1.0, %v8693_v7  ;;  %s5764_s14 = smov 32  }
  0xa0   : > { %v1246_v51 = vsel %vm1068_vm1, %v6415_v38, 0.0  ;;  %vm966_vm0 = vcmp.gt.f32.partialorder %v918_v28, 1.0  ;;  %1111 = vst.msk [vmem:[#allocation2 + $0x150] sm:$0xff] %vm1068_vm1, %v918_v28  ;;  %v824_v50 = vmul.f32 0.9, %v584_v21  ;;  %vm683_vm2 = vcmp.gt.f32.partialorder %v587_v31, 1.0 }
  0xa1   : > { %1241 = vadd.xlane.f32.xlu1 %v1240_v16  ;;  %1238 = vadd.xlane.f32.xlu0 %v1237_v32  ;;  %v6424_v55 = vsel %vm966_vm0, 1.0, %v8693_v7  ;;  %v921_v58 = vsub.f32 %v873_v40, %v4389_v15  ;;  %v4391_v59 = vsel %vm683_vm2, 1.0, %v8693_v7  ;;  %v827_v3 = vmul.f32 0.9, %v587_v31 }
  0xa2   : > { %v1243_v13 = vsel %vm1068_vm1, %v6424_v55, 0.0  ;;  %v872_v16 = vadd.f32 %v824_v50, %v632_v44  ;;  %vm682_vm3 = vcmp.gt.f32.partialorder %v586_v48, 1.0  ;;  %v826_v20 = vmul.f32 0.9, %v586_v48 }
  0xa3   : > { %vm969_vm4 = vcmp.gt.f32.partialorder %v921_v58, 1.0  ;;  %1114 = vst.msk [vmem:[#allocation2 + $0x168] sm:$0xff] %vm1068_vm1, %v921_v58  ;;  %v875_v21 = vadd.f32 %v827_v3, %v635_v52  ;;  %v4390_v28 = vsel %vm682_vm3, 1.0, %v8693_v7  ;;  %v8688_v31 = vmov 0.0|0.0  }
  0xa4   : > { %v6433_v32 = vsel %vm969_vm4, 1.0, %v8693_v7  ;;  %v920_v15 = vsub.f32 %v872_v16, %v4388_v47  ;;  %v874_v40 = vadd.f32 %v826_v20, %v634_v10  ;;  %5193 = vmatprep.subr.bf16.mxu0 %v8688_v31  ;;  %5423 = vmatprep.subr.bf16.mxu1 %v8688_v31  ;;  %v1694_v10 = vld [vmem:[%s8675_s1 + $0x8] sm:$0xff] }
  0xa5   : > { %1247 = vadd.xlane.f32.xlu1 %v1246_v51  ;;  %1244 = vadd.xlane.f32.xlu0 %v1243_v13  ;;  %v1252_v44 = vsel %vm1068_vm1, %v6433_v32, 0.0  ;;  %v923_v48 = vsub.f32 %v875_v21, %v4391_v59 }
  0xa6   : > { %vm968_vm5 = vcmp.gt.f32.partialorder %v920_v15, 1.0  ;;  %1113 = vst.msk [vmem:[#allocation2 + $0x160] sm:$0xff] %vm1068_vm1, %v920_v15  ;;  %v922_v50 = vsub.f32 %v874_v40, %v4390_v28  ;;  %2000 = vmatprep.mubr.f32.mxu0 %v1694_v10  ;;  %v1503_v15 = vld [vmem:[#allocation3 + $0x10] sm:$0xff] }
  0xa7   : > { %v6441_v51 = vsel %vm968_vm5, 1.0, %v8693_v7  ;;  %vm971_vm6 = vcmp.gt.f32.partialorder %v923_v48, 1.0  ;;  %1116 = vst.msk [vmem:[#allocation2 + $0x178] sm:$0xff] %vm1068_vm1, %v923_v48 }
  0xa8   : > { %8695 = vst [vmem:[#allocation11_spill] sm:$0xff] %v6441_v51  ;;  %v1249_v47 = vsel %vm1068_vm1, %v6441_v51, 0.0  ;;  %v6447_v52 = vsel %vm971_vm6, 1.0, %v8693_v7  ;;  %vm970_vm7 = vcmp.gt.f32.partialorder %v922_v50, 1.0  ;;  %1115 = vst.msk [vmem:[#allocation2 + $0x170] sm:$0xff] %vm1068_vm1, %v922_v50 }
  0xa9   : > { %1253 = vadd.xlane.f32.xlu1 %v1252_v44  ;;  %8696 = vst [vmem:[#allocation12_spill] sm:$0xff] %v6447_v52  ;;  %1250 = vadd.xlane.f32.xlu0 %v1249_v47  ;;  %v1258_v58 = vsel %vm1068_vm1, %v6447_v52, 0.0  ;;  %v6453_v59 = vsel %vm970_vm7, 1.0, %v8693_v7  ;;  %v1501_v47 = vld [vmem:[#allocation3] sm:$0xff] }
  0xaa   : > { %8697 = vst [vmem:[#allocation13_spill] sm:$0xff] %v6453_v59  ;;  %v1255_v3 = vsel %vm1068_vm1, %v6453_v59, 0.0 }
  0xad   : > { %1259 = vadd.xlane.f32.xlu1 %v1258_v58  ;;  %1256 = vadd.xlane.f32.xlu0 %v1255_v3 }
  0xdd   : > { %v1119_v16 = vpop.xlane.xlu0 %1118 }
  0xde   : > { %v1125_v13 = vpop.xlane.xlu1 %1124  ;;  %vm1261_vm9 = vcmp.ge.f32.partialorder %v1119_v16, 19.0 }
  0xdf   : > { %vm1263_vm8 = vcmp.ge.f32.partialorder %v1125_v13, 19.0  ;;  %v4440_v28 = vsel %vm1261_vm9, 1.0, %v8693_v7 }
  0xe0   : > { %v4442_v20 = vsel %vm1263_vm8, 1.0, %v8693_v7  ;;  %v1405_v40 = vsub.f32 %v6091_v37, %v4440_v28  ;;  %vm5761_vm8 = vmmov 0  }
  0xe1   : > { %v1407_v21 = vsub.f32 %v6085_v33, %v4442_v20  ;;  %v1122_v50 = vpop.xlane.xlu0 %1121  ;;  %v1504_v33 = vld [vmem:[#allocation3 + $0x18] sm:$0xff]  ;;  %4908 = vmatprep.mubr.msk.f32.mxu1 %vm5761_vm8, %v8693_v7 }
  0xe2   : > { %v1128_v44 = vpop.xlane.xlu1 %1127  ;;  %v1453_v58 = vmax.f32 %v1405_v40, 0.0  ;;  %vm1262_vm11 = vcmp.ge.f32.partialorder %v1122_v50, 19.0 }
  0xe3   : > { %v1455_v48 = vmax.f32 %v1407_v21, 0.0  ;;  %vm1264_vm10 = vcmp.ge.f32.partialorder %v1128_v44, 19.0  ;;  %v4441_v16 = vsel %vm1262_vm11, 1.0, %v8693_v7  ;;  %v1502_v44 = vld [vmem:[#allocation3 + $0x8] sm:$0xff] }
  0xe4   : > { %v4443_v3 = vsel %vm1264_vm10, 1.0, %v8693_v7  ;;  %v1406_v20 = vsub.f32 %v6103_v45, %v4441_v16  ;;  %v1549_v59 = vadd.f32 %v1501_v47, %v1453_v58  ;;  %v1506_v45 = vld [vmem:[#allocation3 + $0x28] sm:$0xff]  ;;  %v1505_v16 = vld [vmem:[#allocation3 + $0x20] sm:$0xff] }
  0xe5   : > { %v1551_v10 = vadd.f32 %v1503_v15, %v1455_v48  ;;  %v1408_v13 = vsub.f32 %v6097_v41, %v4443_v3  ;;  %v1131_v21 = vpop.xlane.xlu0 %1130 }
  0xe6   : > { %v1134_v31 = vpop.xlane.xlu1 %1133  ;;  %v1454_v52 = vmax.f32 %v1406_v20, 0.0  ;;  %vm1265_vm13 = vcmp.ge.f32.partialorder %v1131_v21, 19.0  ;;  %v1597_v50 = vmul.f32 0.7, %v1549_v59 }
  0xe7   : > { %v1599_v37 = vmul.f32 0.7, %v1551_v10  ;;  %v1456_v28 = vmax.f32 %v1408_v13, 0.0  ;;  %vm1266_vm12 = vcmp.ge.f32.partialorder %v1134_v31, 19.0  ;;  %v4444_v48 = vsel %vm1265_vm13, 1.0, %v8693_v7 }
  0xe8   : > { %v4445_v40 = vsel %vm1266_vm12, 1.0, %v8693_v7  ;;  %v1409_v47 = vsub.f32 %v6118_v57, %v4444_v48  ;;  %v1550_v58 = vadd.f32 %v1502_v44, %v1454_v52  ;;  %1645 = vst.msk [vmem:[#allocation3] sm:$0xff] %vm1068_vm1, %v1597_v50  ;;  %v1508_v52 = vld [vmem:[#allocation3 + $0x38] sm:$0xff]  ;;  %v8698_v48 = vmov 0.0|0.0  }
  0xe9   : > { %1647 = vst.msk [vmem:[#allocation3 + $0x10] sm:$0xff] %vm1068_vm1, %v1599_v37  ;;  %v1552_v41 = vadd.f32 %v1504_v33, %v1456_v28  ;;  %v1410_v15 = vsub.f32 %v6112_v53, %v4445_v40  ;;  %v1137_v20 = vpop.xlane.xlu0 %1136 }
  0xea   : > { %v1140_v31 = vpop.xlane.xlu1 %1139  ;;  %v1457_v21 = vmax.f32 %v1409_v47, 0.0  ;;  %v1598_v51 = vmul.f32 0.7, %v1550_v58  ;;  %v5194_v37 = vpack.c.bf16 %v1550_v58, %v1549_v59  ;;  %vm1267_vm15 = vcmp.ge.f32.partialorder %v1137_v20, 19.0  ;;  %v1507_v58 = vld [vmem:[#allocation3 + $0x30] sm:$0xff] }
  0xeb   : > { %v1600_v3 = vmul.f32 0.7, %v1552_v41  ;;  %v1458_v13 = vmax.f32 %v1410_v15, 0.0  ;;  %vm1268_vm14 = vcmp.ge.f32.partialorder %v1140_v31, 19.0  ;;  %v4446_v44 = vsel %vm1267_vm15, 1.0, %v8693_v7 }
  0xec   : > { %v4447_v33 = vsel %vm1268_vm14, 1.0, %v8693_v7  ;;  %v1553_v57 = vadd.f32 %v1505_v16, %v1457_v21  ;;  %1646 = vst.msk [vmem:[#allocation3 + $0x8] sm:$0xff] %vm1068_vm1, %v1598_v51  ;;  %5195 = vmatpush1.bf16.msra.mxu0 %v5194_v37  ;;  %v1411_v59 = vsub.f32 %v6137_v17, %v4446_v44  ;;  %v1510_v17 = vld [vmem:[#allocation3 + $0x48] sm:$0xff] }
  0xed   : > { %1648 = vst.msk [vmem:[#allocation3 + $0x18] sm:$0xff] %vm1068_vm1, %v1600_v3  ;;  %v1554_v53 = vadd.f32 %v1506_v45, %v1458_v13  ;;  %v1412_v28 = vsub.f32 %v6131_v14, %v4447_v33  ;;  %5196 = vmatprep.subr.bf16.mxu0 %v8698_v48  ;;  %v1143_v47 = vpop.xlane.xlu0 %1142  ;;  %v5197_v14 = vpack.c.bf16 %v1552_v41, %v1551_v10 }
  0xee   : > { %v1146_v40 = vpop.xlane.xlu1 %1145  ;;  %v1601_v45 = vmul.f32 0.7, %v1553_v57  ;;  %vm1269_vm2 = vcmp.ge.f32.partialorder %v1143_v47, 19.0  ;;  %v1459_v3 = vmax.f32 %v1411_v59, 0.0 }
  0xef   : > { %v1602_v50 = vmul.f32 0.7, %v1554_v53  ;;  %v1460_v15 = vmax.f32 %v1412_v28, 0.0  ;;  %vm1270_vm0 = vcmp.ge.f32.partialorder %v1146_v40, 19.0  ;;  %v4448_v16 = vsel %vm1269_vm2, 1.0, %v8693_v7  ;;  %v1509_v28 = vld [vmem:[#allocation3 + $0x40] sm:$0xff] }
  0xf0   : > { %v4449_v31 = vsel %vm1270_vm0, 1.0, %v8693_v7  ;;  %1649 = vst.msk [vmem:[#allocation3 + $0x20] sm:$0xff] %vm1068_vm1, %v1601_v45  ;;  %5198 = vmatpush1.bf16.msra.mxu0 %v5197_v14  ;;  %v1413_v20 = vsub.f32 %v6151_v29, %v4448_v16  ;;  %v5200_v21 = vpack.c.bf16 %v1554_v53, %v1553_v57  ;;  %v1555_v41 = vadd.f32 %v1507_v58, %v1459_v3 }
  0xf1   : > { %1650 = vst.msk [vmem:[#allocation3 + $0x28] sm:$0xff] %vm1068_vm1, %v1602_v50  ;;  %v1556_v51 = vadd.f32 %v1508_v52, %v1460_v15  ;;  %v1414_v13 = vsub.f32 %v6145_v25, %v4449_v31  ;;  %5199 = vmatprep.subr.bf16.mxu0 %v8698_v48  ;;  %v1149_v52 = vpop.xlane.xlu0 %1148  ;;  %v1512_v15 = vld [vmem:[#allocation3 + $0x58] sm:$0xff]  ;;  %v1511_v31 = vld [vmem:[#allocation3 + $0x50] sm:$0xff] }
  0xf2   : > { %v1152_v37 = vpop.xlane.xlu1 %1151  ;;  %v1461_v44 = vmax.f32 %v1413_v20, 0.0  ;;  %vm1271_vm4 = vcmp.ge.f32.partialorder %v1149_v52, 19.0  ;;  %v1603_v40 = vmul.f32 0.7, %v1555_v41  ;;  %v1513_v52 = vld [vmem:[#allocation3 + $0x60] sm:$0xff] }
  0xf3   : > { %v1604_v10 = vmul.f32 0.7, %v1556_v51  ;;  %v1462_v33 = vmax.f32 %v1414_v13, 0.0  ;;  %vm1272_vm3 = vcmp.ge.f32.partialorder %v1152_v37, 19.0  ;;  %v4450_v53 = vsel %vm1271_vm4, 1.0, %v8693_v7 }
  0xf4   : > { %v4451_v25 = vsel %vm1272_vm3, 1.0, %v8693_v7  ;;  %v1557_v57 = vadd.f32 %v1509_v28, %v1461_v44  ;;  %5201 = vmatpush1.bf16.msra.mxu0 %v5200_v21  ;;  %v1415_v59 = vsub.f32 %v6169_v54, %v4450_v53  ;;  %v5203_v47 = vpack.c.bf16 %v1556_v51, %v1555_v41  ;;  %1651 = vst.msk [vmem:[#allocation3 + $0x30] sm:$0xff] %vm1068_vm1, %v1603_v40  ;;  %v1514_v21 = vld [vmem:[#allocation3 + $0x68] sm:$0xff] }
  0xf5   : > { %1652 = vst.msk [vmem:[#allocation3 + $0x38] sm:$0xff] %vm1068_vm1, %v1604_v10  ;;  %v1558_v50 = vadd.f32 %v1510_v17, %v1462_v33  ;;  %v1416_v29 = vsub.f32 %v6160_v39, %v4451_v25  ;;  %5202 = vmatprep.subr.bf16.mxu0 %v8698_v48  ;;  %v1155_v3 = vpop.xlane.xlu0 %1154 }
  0xf6   : > { %v1158_v45 = vpop.xlane.xlu1 %1157  ;;  %v1605_v13 = vmul.f32 0.7, %v1557_v57  ;;  %v1463_v39 = vmax.f32 %v1415_v59, 0.0  ;;  %vm1273_vm6 = vcmp.ge.f32.partialorder %v1155_v3, 19.0 }
  0xf7   : > { %v1606_v58 = vmul.f32 0.7, %v1558_v50  ;;  %v1464_v14 = vmax.f32 %v1416_v29, 0.0  ;;  %vm1274_vm5 = vcmp.ge.f32.partialorder %v1158_v45, 19.0  ;;  %v4452_v51 = vsel %vm1273_vm6, 1.0, %v8693_v7 }
  0xf8   : > { %v4453_v16 = vsel %vm1274_vm5, 1.0, %v8693_v7  ;;  %1653 = vst.msk [vmem:[#allocation3 + $0x40] sm:$0xff] %vm1068_vm1, %v1605_v13  ;;  %v1559_v20 = vadd.f32 %v1511_v31, %v1463_v39  ;;  %5204 = vmatpush1.bf16.msra.mxu0 %v5203_v47  ;;  %v1417_v37 = vsub.f32 %v6185_v8, %v4452_v51  ;;  %v5206_v10 = vpack.c.bf16 %v1558_v50, %v1557_v57  ;;  %v1516_v57 = vld [vmem:[#allocation3 + $0x78] sm:$0xff] }
  0xf9   : > { %1654 = vst.msk [vmem:[#allocation3 + $0x48] sm:$0xff] %vm1068_vm1, %v1606_v58  ;;  %v1560_v17 = vadd.f32 %v1512_v15, %v1464_v14  ;;  %v1418_v54 = vsub.f32 %v6179_v4, %v4453_v16  ;;  %5205 = vmatprep.subr.bf16.mxu0 %v8698_v48  ;;  %v1161_v44 = vpop.xlane.xlu0 %1160  ;;  %v1515_v14 = vld [vmem:[#allocation3 + $0x70] sm:$0xff] }
  0xfa   : > { %v1164_v41 = vpop.xlane.xlu1 %1163  ;;  %v1607_v4 = vmul.f32 0.7, %v1559_v20  ;;  %v1465_v25 = vmax.f32 %v1417_v37, 0.0  ;;  %vm1275_vm9 = vcmp.ge.f32.partialorder %v1161_v44, 19.0 }
  0xfb   : > { %v1608_v33 = vmul.f32 0.7, %v1560_v17  ;;  %v1466_v28 = vmax.f32 %v1418_v54, 0.0  ;;  %vm1276_vm7 = vcmp.ge.f32.partialorder %v1164_v41, 19.0  ;;  %v4454_v29 = vsel %vm1275_vm9, 1.0, %v8693_v7  ;;  %v1518_v54 = vld [vmem:[#allocation3 + $0x88] sm:$0xff] }
  0xfc   : > { %v4455_v40 = vsel %vm1276_vm7, 1.0, %v8693_v7  ;;  %1655 = vst.msk [vmem:[#allocation3 + $0x50] sm:$0xff] %vm1068_vm1, %v1607_v4  ;;  %v1561_v53 = vadd.f32 %v1513_v52, %v1465_v25  ;;  %5207 = vmatpush1.bf16.msra.mxu0 %v5206_v10  ;;  %v1419_v15 = vsub.f32 %v6201_v27, %v4454_v29  ;;  %v5209_v59 = vpack.c.bf16 %v1560_v17, %v1559_v20  ;;  %v1517_v41 = vld [vmem:[#allocation3 + $0x80] sm:$0xff] }
  0xfd   : > { %1656 = vst.msk [vmem:[#allocation3 + $0x58] sm:$0xff] %vm1068_vm1, %v1608_v33  ;;  %v1562_v8 = vadd.f32 %v1514_v21, %v1466_v28  ;;  %v1420_v50 = vsub.f32 %v6191_v12, %v4455_v40  ;;  %5208 = vmatprep.subr.bf16.mxu0 %v8698_v48  ;;  %v1520_v40 = vld [vmem:[#allocation3 + $0x98] sm:$0xff] }
  0xfe   : > { %v1170_v47 = vpop.xlane.xlu1 %1169  ;;  %v1167_v31 = vpop.xlane.xlu0 %1166  ;;  %v1609_v3 = vmul.f32 0.7, %v1561_v53  ;;  %v1467_v12 = vmax.f32 %v1419_v15, 0.0  ;;  %v1519_v15 = vld [vmem:[#allocation3 + $0x90] sm:$0xff] }
  0xff   : > { %v1610_v45 = vmul.f32 0.7, %v1562_v8  ;;  %v1468_v58 = vmax.f32 %v1420_v50, 0.0  ;;  %vm1278_vm10 = vcmp.ge.f32.partialorder %v1170_v47, 19.0  ;;  %vm1277_vm11 = vcmp.ge.f32.partialorder %v1167_v31, 19.0 }
 0x100   : > { %v4457_v13 = vsel %vm1278_vm10, 1.0, %v8693_v7  ;;  %v4456_v27 = vsel %vm1277_vm11, 1.0, %v8693_v7  ;;  %1657 = vst.msk [vmem:[#allocation3 + $0x60] sm:$0xff] %vm1068_vm1, %v1609_v3  ;;  %v1563_v17 = vadd.f32 %v1515_v14, %v1467_v12  ;;  %5210 = vmatpush1.bf16.msra.mxu0 %v5209_v59  ;;  %v5212_v20 = vpack.c.bf16 %v1562_v8, %v1561_v53  ;;  %v1522_v3 = vld [vmem:[#allocation3 + $0xa8] sm:$0xff] }
 0x101   : > { %1658 = vst.msk [vmem:[#allocation3 + $0x68] sm:$0xff] %vm1068_vm1, %v1610_v45  ;;  %v1564_v39 = vadd.f32 %v1516_v57, %v1468_v58  ;;  %v1422_v16 = vsub.f32 %v6209_v34, %v4457_v13  ;;  %v1421_v51 = vsub.f32 %v6219_v56, %v4456_v27  ;;  %5211 = vmatprep.subr.bf16.mxu0 %v8698_v48 }
 0x102   : > { %v1176_v21 = vpop.xlane.xlu1 %1175  ;;  %v1173_v33 = vpop.xlane.xlu0 %1172  ;;  %v1611_v28 = vmul.f32 0.7, %v1563_v17 }
 0x103   : > { %v1612_v37 = vmul.f32 0.7, %v1564_v39  ;;  %v1470_v10 = vmax.f32 %v1422_v16, 0.0  ;;  %vm1280_vm12 = vcmp.ge.f32.partialorder %v1176_v21, 19.0  ;;  %v1469_v34 = vmax.f32 %v1421_v51, 0.0 }
 0x104   : > { %v4459_v52 = vsel %vm1280_vm12, 1.0, %v8693_v7  ;;  %vm1279_vm13 = vcmp.ge.f32.partialorder %v1173_v33, 19.0  ;;  %1659 = vst.msk [vmem:[#allocation3 + $0x70] sm:$0xff] %vm1068_vm1, %v1611_v28  ;;  %5213 = vmatpush1.bf16.msra.mxu0 %v5212_v20  ;;  %v5215_v50 = vpack.c.bf16 %v1564_v39, %v1563_v17  ;;  %v1521_v17 = vld [vmem:[#allocation3 + $0xa0] sm:$0xff] }
 0x105   : > { %1660 = vst.msk [vmem:[#allocation3 + $0x78] sm:$0xff] %vm1068_vm1, %v1612_v37  ;;  %v1566_v44 = vadd.f32 %v1518_v54, %v1470_v10  ;;  %v1424_v4 = vsub.f32 %v6225_v60, %v4459_v52  ;;  %v4458_v56 = vsel %vm1279_vm13, 1.0, %v8693_v7  ;;  %v1565_v25 = vadd.f32 %v1517_v41, %v1469_v34  ;;  %5214 = vmatprep.subr.bf16.mxu0 %v8698_v48  ;;  %v1524_v41 = vld [vmem:[#allocation3 + $0xb8] sm:$0xff] }
 0x106   : > { %v1423_v8 = vsub.f32 %v6233_v5, %v4458_v56  ;;  %v1182_v29 = vpop.xlane.xlu1 %1181  ;;  %v1179_v59 = vpop.xlane.xlu0 %1178 }
 0x107   : > { %v1614_v53 = vmul.f32 0.7, %v1566_v44  ;;  %v1472_v57 = vmax.f32 %v1424_v4, 0.0  ;;  %vm1282_vm14 = vcmp.ge.f32.partialorder %v1182_v29, 19.0  ;;  %v1613_v47 = vmul.f32 0.7, %v1565_v25 }
 0x108   : > { %v1471_v60 = vmax.f32 %v1423_v8, 0.0  ;;  %v4461_v45 = vsel %vm1282_vm14, 1.0, %v8693_v7  ;;  %vm1281_vm15 = vcmp.ge.f32.partialorder %v1179_v59, 19.0  ;;  %5216 = vmatpush1.bf16.msra.mxu0 %v5215_v50  ;;  %v5218_v13 = vpack.c.bf16 %v1566_v44, %v1565_v25  ;;  %v1523_v4 = vld [vmem:[#allocation3 + $0xb0] sm:$0xff] }
 0x109   : > { %1662 = vst.msk [vmem:[#allocation3 + $0x88] sm:$0xff] %vm1068_vm1, %v1614_v53  ;;  %v1568_v58 = vadd.f32 %v1520_v40, %v1472_v57  ;;  %v1426_v14 = vsub.f32 %v6239_v11, %v4461_v45  ;;  %v4460_v5 = vsel %vm1281_vm15, 1.0, %v8693_v7  ;;  %1661 = vst.msk [vmem:[#allocation3 + $0x80] sm:$0xff] %vm1068_vm1, %v1613_v47  ;;  %5217 = vmatprep.subr.bf16.mxu0 %v8698_v48  ;;  %v1526_v53 = vld [vmem:[#allocation3 + $0xc8] sm:$0xff]  ;;  %v1525_v45 = vld [vmem:[#allocation3 + $0xc0] sm:$0xff] }
 0x10a   : > { %v1567_v31 = vadd.f32 %v1519_v15, %v1471_v60  ;;  %v1425_v12 = vsub.f32 %v6248_v22, %v4460_v5  ;;  %v1188_v39 = vpop.xlane.xlu1 %1187  ;;  %v1185_v54 = vpop.xlane.xlu0 %1184 }
 0x10b   : > { %v1616_v16 = vmul.f32 0.7, %v1568_v58  ;;  %v1474_v27 = vmax.f32 %v1426_v14, 0.0  ;;  %vm1284_vm0 = vcmp.ge.f32.partialorder %v1188_v39, 19.0  ;;  %vm1283_vm2 = vcmp.ge.f32.partialorder %v1185_v54, 19.0 }
 0x10c   : > { %v1615_v51 = vmul.f32 0.7, %v1567_v31  ;;  %v1473_v11 = vmax.f32 %v1425_v12, 0.0  ;;  %v4463_v20 = vsel %vm1284_vm0, 1.0, %v8693_v7  ;;  %v4462_v22 = vsel %vm1283_vm2, 1.0, %v8693_v7  ;;  %5219 = vmatpush1.bf16.msra.mxu0 %v5218_v13  ;;  %v1528_v13 = vld [vmem:[#allocation3 + $0xd8] sm:$0xff] }
 0x10d   : > { %1664 = vst.msk [vmem:[#allocation3 + $0x98] sm:$0xff] %vm1068_vm1, %v1616_v16  ;;  %v1570_v21 = vadd.f32 %v1522_v3, %v1474_v27  ;;  %v1428_v37 = vsub.f32 %v6257_v42, %v4463_v20  ;;  %v1427_v33 = vsub.f32 %v6267_v61, %v4462_v22  ;;  %v5221_v28 = vpack.c.bf16 %v1568_v58, %v1567_v31 }
 0x10e   : > { %1663 = vst.msk [vmem:[#allocation3 + $0x90] sm:$0xff] %vm1068_vm1, %v1615_v51  ;;  %v1569_v10 = vadd.f32 %v1521_v17, %v1473_v11  ;;  %v1194_v34 = vpop.xlane.xlu1 %1193  ;;  %5220 = vmatprep.subr.bf16.mxu0 %v8698_v48  ;;  %v1191_v56 = vpop.xlane.xlu0 %1190  ;;  %v1527_v51 = vld [vmem:[#allocation3 + $0xd0] sm:$0xff] }
 0x10f   : > { %v1618_v52 = vmul.f32 0.7, %v1570_v21  ;;  %v1476_v44 = vmax.f32 %v1428_v37, 0.0  ;;  %vm1286_vm3 = vcmp.ge.f32.partialorder %v1194_v34, 19.0  ;;  %v1475_v42 = vmax.f32 %v1427_v33, 0.0 }
 0x110   : > { %v1617_v25 = vmul.f32 0.7, %v1569_v10  ;;  %v4465_v40 = vsel %vm1286_vm3, 1.0, %v8693_v7  ;;  %vm1285_vm4 = vcmp.ge.f32.partialorder %v1191_v56, 19.0  ;;  %5222 = vmatpush1.bf16.msra.mxu0 %v5221_v28  ;;  %v5224_v15 = vpack.c.bf16 %v1570_v21, %v1569_v10 }
 0x111   : > { %1666 = vst.msk [vmem:[#allocation3 + $0xa8] sm:$0xff] %vm1068_vm1, %v1618_v52  ;;  %v1572_v8 = vadd.f32 %v1524_v41, %v1476_v44  ;;  %v1430_v50 = vsub.f32 %v6273_v0, %v4465_v40  ;;  %v4464_v61 = vsel %vm1285_vm4, 1.0, %v8693_v7  ;;  %v1571_v29 = vadd.f32 %v1523_v4, %v1475_v42  ;;  %5223 = vmatprep.subr.bf16.mxu0 %v8698_v48  ;;  %v1530_v41 = vld [vmem:[#allocation3 + $0xe8] sm:$0xff]  ;;  %v1529_v4 = vld [vmem:[#allocation3 + $0xe0] sm:$0xff] }
 0x112   : > { %1665 = vst.msk [vmem:[#allocation3 + $0xa0] sm:$0xff] %vm1068_vm1, %v1617_v25  ;;  %v1429_v57 = vsub.f32 %v6279_v6, %v4464_v61  ;;  %v1200_v59 = vpop.xlane.xlu1 %1199  ;;  %v1197_v58 = vpop.xlane.xlu0 %1196  ;;  %v1532_v61 = vld [vmem:[#allocation3 + $0xf8] sm:$0xff] }
 0x113   : > { %v1620_v47 = vmul.f32 0.7, %v1572_v8  ;;  %v1478_v60 = vmax.f32 %v1430_v50, 0.0  ;;  %vm1288_vm5 = vcmp.ge.f32.partialorder %v1200_v59, 19.0  ;;  %v1619_v14 = vmul.f32 0.7, %v1571_v29 }
 0x114   : > { %v1477_v0 = vmax.f32 %v1429_v57, 0.0  ;;  %v4467_v5 = vsel %vm1288_vm5, 1.0, %v8693_v7  ;;  %vm1287_vm6 = vcmp.ge.f32.partialorder %v1197_v58, 19.0  ;;  %5225 = vmatpush1.bf16.msra.mxu0 %v5224_v15  ;;  %v5227_v16 = vpack.c.bf16 %v1572_v8, %v1571_v29 }
 0x115   : > { %1668 = vst.msk [vmem:[#allocation3 + $0xb8] sm:$0xff] %vm1068_vm1, %v1620_v47  ;;  %v1574_v31 = vadd.f32 %v1526_v53, %v1478_v60  ;;  %v1432_v3 = vsub.f32 %v6289_v26, %v4467_v5  ;;  %v4466_v6 = vsel %vm1287_vm6, 1.0, %v8693_v7  ;;  %1667 = vst.msk [vmem:[#allocation3 + $0xb0] sm:$0xff] %vm1068_vm1, %v1619_v14  ;;  %5226 = vmatprep.subr.bf16.mxu0 %v8698_v48  ;;  %v1531_v47 = vld [vmem:[#allocation3 + $0xf0] sm:$0xff] }
 0x116   : > { %v1573_v12 = vadd.f32 %v1525_v45, %v1477_v0  ;;  %v1431_v39 = vsub.f32 %v6297_v35, %v4466_v6  ;;  %v1206_v27 = vpop.xlane.xlu1 %1205  ;;  %v1203_v11 = vpop.xlane.xlu0 %1202 }
 0x117   : > { %v1622_v17 = vmul.f32 0.7, %v1574_v31  ;;  %v1480_v54 = vmax.f32 %v1432_v3, 0.0  ;;  %vm1290_vm7 = vcmp.ge.f32.partialorder %v1206_v27, 19.0  ;;  %vm1289_vm9 = vcmp.ge.f32.partialorder %v1203_v11, 19.0 }
 0x118   : > { %v1621_v20 = vmul.f32 0.7, %v1573_v12  ;;  %v1479_v26 = vmax.f32 %v1431_v39, 0.0  ;;  %v4469_v21 = vsel %vm1290_vm7, 1.0, %v8693_v7  ;;  %v4468_v35 = vsel %vm1289_vm9, 1.0, %v8693_v7  ;;  %5228 = vmatpush1.bf16.msra.mxu0 %v5227_v16 }
 0x119   : > { %1670 = vst.msk [vmem:[#allocation3 + $0xc8] sm:$0xff] %vm1068_vm1, %v1622_v17  ;;  %v1576_v37 = vadd.f32 %v1528_v13, %v1480_v54  ;;  %v1434_v22 = vsub.f32 %v6307_v62, %v4469_v21  ;;  %v1433_v33 = vsub.f32 %v6313_v2, %v4468_v35  ;;  %v5230_v28 = vpack.c.bf16 %v1574_v31, %v1573_v12  ;;  %v1534_v31 = vld [vmem:[#allocation3 + $0x108] sm:$0xff] }
 0x11a   : > { %1669 = vst.msk [vmem:[#allocation3 + $0xc0] sm:$0xff] %vm1068_vm1, %v1621_v20  ;;  %v1575_v10 = vadd.f32 %v1527_v51, %v1479_v26  ;;  %v1212_v34 = vpop.xlane.xlu1 %1211  ;;  %5229 = vmatprep.subr.bf16.mxu0 %v8698_v48  ;;  %v1209_v56 = vpop.xlane.xlu0 %1208 }
 0x11b   : > { %v1624_v52 = vmul.f32 0.7, %v1576_v37  ;;  %v1482_v44 = vmax.f32 %v1434_v22, 0.0  ;;  %vm1292_vm10 = vcmp.ge.f32.partialorder %v1212_v34, 19.0  ;;  %v1481_v62 = vmax.f32 %v1433_v33, 0.0 }
 0x11c   : > { %v1623_v25 = vmul.f32 0.7, %v1575_v10  ;;  %v4471_v42 = vsel %vm1292_vm10, 1.0, %v8693_v7  ;;  %vm1291_vm11 = vcmp.ge.f32.partialorder %v1209_v56, 19.0  ;;  %5231 = vmatpush1.bf16.msra.mxu0 %v5230_v28  ;;  %v5233_v53 = vpack.c.bf16 %v1576_v37, %v1575_v10 }
 0x11d   : > { %1672 = vst.msk [vmem:[#allocation3 + $0xd8] sm:$0xff] %vm1068_vm1, %v1624_v52  ;;  %v1578_v40 = vadd.f32 %v1530_v41, %v1482_v44  ;;  %v1436_v8 = vsub.f32 %v6321_v19, %v4471_v42  ;;  %v4470_v2 = vsel %vm1291_vm11, 1.0, %v8693_v7  ;;  %v1577_v50 = vadd.f32 %v1529_v4, %v1481_v62  ;;  %5232 = vmatprep.subr.bf16.mxu0 %v8698_v48  ;;  %v1535_v41 = vld [vmem:[#allocation3 + $0x110] sm:$0xff]  ;;  %v1693_v4 = vld [vmem:[%s8675_s1] sm:$0xff] }
 0x11e   : > { %1671 = vst.msk [vmem:[#allocation3 + $0xd0] sm:$0xff] %vm1068_vm1, %v1623_v25  ;;  %v1435_v29 = vsub.f32 %v6327_v24, %v4470_v2  ;;  %v1218_v57 = vpop.xlane.xlu1 %1217  ;;  %v1215_v60 = vpop.xlane.xlu0 %1214  ;;  %v1538_v25 = vld [vmem:[#allocation3 + $0x128] sm:$0xff] }
 0x11f   : > { %v1626_v15 = vmul.f32 0.7, %v1578_v40  ;;  %v1484_v59 = vmax.f32 %v1436_v8, 0.0  ;;  %vm1294_vm12 = vcmp.ge.f32.partialorder %v1218_v57, 19.0  ;;  %v1625_v45 = vmul.f32 0.7, %v1577_v50 }
 0x120   : > { %v1483_v19 = vmax.f32 %v1435_v29, 0.0  ;;  %v4473_v58 = vsel %vm1294_vm12, 1.0, %v8693_v7  ;;  %vm1293_vm13 = vcmp.ge.f32.partialorder %v1215_v60, 19.0  ;;  %5234 = vmatpush1.bf16.msra.mxu0 %v5233_v53  ;;  %v5236_v5 = vpack.c.bf16 %v1578_v40, %v1577_v50  ;;  %v1697_v40 = vld [vmem:[%s8675_s1 + $0x20] sm:$0xff] }
 0x121   : > { %1674 = vst.msk [vmem:[#allocation3 + $0xe8] sm:$0xff] %vm1068_vm1, %v1626_v15  ;;  %v1580_v14 = vadd.f32 %v1532_v61, %v1484_v59  ;;  %v1438_v0 = vsub.f32 %v6336_v43, %v4473_v58  ;;  %1673 = vst.msk [vmem:[#allocation3 + $0xe0] sm:$0xff] %vm1068_vm1, %v1625_v45  ;;  %v4472_v3 = vsel %vm1293_vm13, 1.0, %v8693_v7  ;;  %5235 = vmatprep.subr.bf16.mxu0 %v8698_v48  ;;  %v1533_v43 = vld [vmem:[#allocation3 + $0x100] sm:$0xff]  ;;  %v1540_v45 = vld [vmem:[#allocation3 + $0x138] sm:$0xff] }
 0x122   : > { %v1579_v24 = vadd.f32 %v1531_v47, %v1483_v19  ;;  %v1224_v6 = vpop.xlane.xlu1 %1223  ;;  %v1437_v39 = vsub.f32 %v6345_v63, %v4472_v3  ;;  %v1221_v16 = vpop.xlane.xlu0 %1220  ;;  %v1536_v63 = vld [vmem:[#allocation3 + $0x118] sm:$0xff]  ;;  %v1537_v53 = vld [vmem:[#allocation3 + $0x120] sm:$0xff] }
 0x123   : > { %v1628_v12 = vmul.f32 0.7, %v1580_v14  ;;  %v1486_v13 = vmax.f32 %v1438_v0, 0.0  ;;  %vm1296_vm14 = vcmp.ge.f32.partialorder %v1224_v6, 19.0  ;;  %vm1295_vm15 = vcmp.ge.f32.partialorder %v1221_v16, 19.0  ;;  %v1699_v16 = vld [vmem:[%s8675_s1 + $0x30] sm:$0xff] }
 0x124   : > { %v1627_v27 = vmul.f32 0.7, %v1579_v24  ;;  %v4475_v17 = vsel %vm1296_vm14, 1.0, %v8693_v7  ;;  %v1485_v51 = vmax.f32 %v1437_v39, 0.0  ;;  %v4474_v20 = vsel %vm1295_vm15, 1.0, %v8693_v7  ;;  %5237 = vmatpush1.bf16.msra.mxu0 %v5236_v5  ;;  %v1539_v5 = vld [vmem:[#allocation3 + $0x130] sm:$0xff] }
 0x125   : > { %1676 = vst.msk [vmem:[#allocation3 + $0xf8] sm:$0xff] %vm1068_vm1, %v1628_v12  ;;  %v1582_v54 = vadd.f32 %v1534_v31, %v1486_v13  ;;  %v1440_v11 = vsub.f32 %v6355_v30, %v4475_v17  ;;  %v5239_v26 = vpack.c.bf16 %v1580_v14, %v1579_v24  ;;  %v1439_v21 = vsub.f32 %v6361_v36, %v4474_v20  ;;  %v1700_v14 = vld [vmem:[%s8675_s1 + $0x38] sm:$0xff] }
 0x126   : > { %1675 = vst.msk [vmem:[#allocation3 + $0xf0] sm:$0xff] %vm1068_vm1, %v1627_v27  ;;  %v1230_v37 = vpop.xlane.xlu1 %1229  ;;  %5238 = vmatprep.subr.bf16.mxu0 %v8698_v48  ;;  %v1581_v35 = vadd.f32 %v1533_v43, %v1485_v51  ;;  %v1227_v33 = vpop.xlane.xlu0 %1226  ;;  %v1542_v43 = vld [vmem:[#allocation3 + $0x148] sm:$0xff]  ;;  %vm3101_vm14 = vcmask 523264   ;;  %vm3111_vm15 = vcmask 785408  }
 0x127   : > { %v1630_v22 = vmul.f32 0.7, %v1582_v54  ;;  %v1488_v10 = vmax.f32 %v1440_v11, 0.0  ;;  %vm1298_vm0 = vcmp.ge.f32.partialorder %v1230_v37, 19.0  ;;  %v1487_v28 = vmax.f32 %v1439_v21, 0.0  ;;  %v1703_v11 = vld [vmem:[%s8675_s1 + $0x50] sm:$0xff] }
 0x128   : > { %v4477_v30 = vsel %vm1298_vm0, 1.0, %v8693_v7  ;;  %vm1297_vm2 = vcmp.ge.f32.partialorder %v1227_v33, 19.0  ;;  %v1629_v34 = vmul.f32 0.7, %v1581_v35  ;;  %v5242_v52 = vpack.c.bf16 %v1582_v54, %v1581_v35  ;;  %5240 = vmatpush1.bf16.msra.mxu0 %v5239_v26  ;;  %v1541_v26 = vld [vmem:[#allocation3 + $0x140] sm:$0xff]  ;;  %v1702_v33 = vld [vmem:[%s8675_s1 + $0x48] sm:$0xff] }
 0x129   : > { %1678 = vst.msk [vmem:[#allocation3 + $0x108] sm:$0xff] %vm1068_vm1, %v1630_v22  ;;  %v1584_v44 = vadd.f32 %v1536_v63, %v1488_v10  ;;  %v1442_v36 = vsub.f32 %v6367_v46, %v4477_v30  ;;  %v1583_v56 = vadd.f32 %v1535_v41, %v1487_v28  ;;  %v4476_v62 = vsel %vm1297_vm2, 1.0, %v8693_v7  ;;  %5241 = vmatprep.subr.bf16.mxu0 %v8698_v48  ;;  %v1544_v30 = vld [vmem:[#allocation3 + $0x158] sm:$0xff] }
 0x12a   : > { %v1236_v42 = vpop.xlane.xlu1 %1235  ;;  %1677 = vst.msk [vmem:[#allocation3 + $0x100] sm:$0xff] %vm1068_vm1, %v1629_v34  ;;  %5431 = vmatpush3.bf16.msra.mxu1 %v5242_v52  ;;  %v1441_v2 = vsub.f32 %v6377_v9, %v4476_v62  ;;  %v1233_v50 = vpop.xlane.xlu0 %1232  ;;  %v1696_v9 = vld [vmem:[%s8675_s1 + $0x18] sm:$0xff] }
 0x12b   : > { %v1632_v46 = vmul.f32 0.7, %v1584_v44  ;;  %v1490_v8 = vmax.f32 %v1442_v36, 0.0  ;;  %vm1300_vm3 = vcmp.ge.f32.partialorder %v1236_v42, 19.0  ;;  %v1631_v61 = vmul.f32 0.7, %v1583_v56  ;;  %5424 = vmatprep.subr.bf16.mxu1 %v8698_v48  ;;  %2001 = vmatmul.mubr.f32.vlgmr.msra.gmra.mrb[0].mxu0 %v1693_v4 }
 0x12c   : > { %v5245_v29 = vpack.c.bf16 %v1584_v44, %v1583_v56  ;;  %v4479_v57 = vsel %vm1300_vm3, 1.0, %v8693_v7  ;;  %vm1299_vm4 = vcmp.ge.f32.partialorder %v1233_v50, 19.0  ;;  %v1489_v59 = vmax.f32 %v1441_v2, 0.0  ;;  %2005 = vmatprep.mubr.f32.mxu0 %v1697_v40  ;;  %5243 = vmatpush3.bf16.msra.mxu0 %v5242_v52  ;;  %v1543_v4 = vld [vmem:[#allocation3 + $0x150] sm:$0xff]  ;;  %v1705_v2 = vld [vmem:[%s8675_s1 + $0x60] sm:$0xff] }
 0x12d   : > { %1680 = vst.msk [vmem:[#allocation3 + $0x118] sm:$0xff] %vm1068_vm1, %v1632_v46  ;;  %v1586_v15 = vadd.f32 %v1538_v25, %v1490_v8  ;;  %v1444_v47 = vsub.f32 %v6385_v18, %v4479_v57  ;;  %v4478_v60 = vsel %vm1299_vm4, 1.0, %v8693_v7  ;;  %1679 = vst.msk [vmem:[#allocation3 + $0x110] sm:$0xff] %vm1068_vm1, %v1631_v61  ;;  %5244 = vmatprep.subr.bf16.mxu0 %v8698_v48  ;;  %v1546_v61 = vld [vmem:[#allocation3 + $0x168] sm:$0xff] }
 0x12e   : > { %v1443_v19 = vsub.f32 %v6395_v49, %v4478_v60  ;;  %v1242_v58 = vpop.xlane.xlu1 %1241  ;;  %v1585_v18 = vadd.f32 %v1537_v53, %v1489_v59  ;;  %5432 = vmatpush3.bf16.msra.mxu1 %v5245_v29  ;;  %v1239_v31 = vpop.xlane.xlu0 %1238 }
 0x12f   : > { %v1634_v0 = vmul.f32 0.7, %v1586_v15  ;;  %v1492_v24 = vmax.f32 %v1444_v47, 0.0  ;;  %vm1302_vm5 = vcmp.ge.f32.partialorder %v1242_v58, 19.0  ;;  %vm1301_vm6 = vcmp.ge.f32.partialorder %v1239_v31, 19.0  ;;  %5425 = vmatprep.subr.bf16.mxu1 %v8698_v48  ;;  %2006 = vmatmul.mubr.f32.gmra.mrb[2].mxu0 %v1696_v9  ;;  %v1545_v47 = vld [vmem:[#allocation3 + $0x160] sm:$0xff] }
 0x130   : > { %v1491_v3 = vmax.f32 %v1443_v19, 0.0  ;;  %v4481_v6 = vsel %vm1302_vm5, 1.0, %v8693_v7  ;;  %v1633_v49 = vmul.f32 0.7, %v1585_v18  ;;  %v4480_v39 = vsel %vm1301_vm6, 1.0, %v8693_v7  ;;  %2010 = vmatprep.mubr.f32.mxu0 %v1700_v14  ;;  %5246 = vmatpush3.bf16.msra.mxu0 %v5245_v29  ;;  %v8699_v29 = vld [vmem:[#allocation11_spill] sm:$0xff] }
 0x131   : > { %1682 = vst.msk [vmem:[#allocation3 + $0x128] sm:$0xff] %vm1068_vm1, %v1634_v0  ;;  %v1588_v12 = vadd.f32 %v1540_v45, %v1492_v24  ;;  %v1446_v13 = vsub.f32 %v6401_v1, %v4481_v6  ;;  %v1445_v17 = vsub.f32 %v6409_v23, %v4480_v39  ;;  %v5248_v54 = vpack.c.bf16 %v1586_v15, %v1585_v18  ;;  %v8700_v14 = vld [vmem:[#allocation12_spill] sm:$0xff]  ;;  %v8701_v6 = vld [vmem:[#allocation13_spill] sm:$0xff] }
 0x132   : > { %v1587_v27 = vadd.f32 %v1539_v5, %v1491_v3  ;;  %v1248_v51 = vpop.xlane.xlu1 %1247  ;;  %1681 = vst.msk [vmem:[#allocation3 + $0x120] sm:$0xff] %vm1068_vm1, %v1633_v49  ;;  %v1245_v63 = vpop.xlane.xlu0 %1244  ;;  %5247 = vmatprep.subr.bf16.mxu0 %v8698_v48  ;;  %v1708_v5 = vld [vmem:[%s8675_s1 + $0x78] sm:$0xff] }
 0x133   : > { %v1636_v1 = vmul.f32 0.7, %v1588_v12  ;;  %v1494_v20 = vmax.f32 %v1446_v13, 0.0  ;;  %vm1304_vm7 = vcmp.ge.f32.partialorder %v1248_v51, 19.0  ;;  %v1493_v37 = vmax.f32 %v1445_v17, 0.0  ;;  %5433 = vmatpush3.bf16.msra.mxu1 %v5248_v54  ;;  %2011 = vmatmul.mubr.f32.gmra.mrb[4].mxu0 %v1699_v16  ;;  %v1548_v3 = vld [vmem:[#allocation3 + $0x178] sm:$0xff] }
 0x134   : > { %v1635_v21 = vmul.f32 0.7, %v1587_v27  ;;  %v4483_v23 = vsel %vm1304_vm7, 1.0, %v8693_v7  ;;  %vm1303_vm9 = vcmp.ge.f32.partialorder %v1245_v63, 19.0  ;;  %5426 = vmatprep.subr.bf16.mxu1 %v8698_v48  ;;  %v5251_v41 = vpack.c.bf16 %v1588_v12, %v1587_v27  ;;  %2015 = vmatprep.mubr.f32.mxu0 %v1703_v11  ;;  %v1712_v12 = vld [vmem:[%s8675_s1 + $0x98] sm:$0xff]  ;;  %v1547_v16 = vld [vmem:[#allocation3 + $0x170] sm:$0xff] }
 0x135   : > { %1684 = vst.msk [vmem:[#allocation3 + $0x138] sm:$0xff] %vm1068_vm1, %v1636_v1  ;;  %v1590_v22 = vadd.f32 %v1542_v43, %v1494_v20  ;;  %v1448_v35 = vsub.f32 %v6415_v38, %v4483_v23  ;;  %v4482_v10 = vsel %vm1303_vm9, 1.0, %v8693_v7  ;;  %v1589_v28 = vadd.f32 %v1541_v26, %v1493_v37  ;;  %5249 = vmatpush3.bf16.msra.mxu0 %v5248_v54  ;;  %v1706_v38 = vld [vmem:[%s8675_s1 + $0x68] sm:$0xff]  ;;  %v1711_v51 = vld [vmem:[%s8675_s1 + $0x90] sm:$0xff] }
 0x136   : > { %1683 = vst.msk [vmem:[#allocation3 + $0x130] sm:$0xff] %vm1068_vm1, %v1635_v21  ;;  %v1447_v34 = vsub.f32 %v6424_v55, %v4482_v10  ;;  %v1254_v52 = vpop.xlane.xlu1 %1253  ;;  %v1251_v56 = vpop.xlane.xlu0 %1250  ;;  %5250 = vmatprep.subr.bf16.mxu0 %v8698_v48  ;;  %v1715_v1 = vld [vmem:[%s8675_s1 + $0xb0] sm:$0xff]  ;;  %v1714_v21 = vld [vmem:[%s8675_s1 + $0xa8] sm:$0xff] }
 0x137   : > { %v1638_v44 = vmul.f32 0.7, %v1590_v22  ;;  %v1496_v36 = vmax.f32 %v1448_v35, 0.0  ;;  %vm1306_vm10 = vcmp.ge.f32.partialorder %v1254_v52, 19.0  ;;  %v1637_v25 = vmul.f32 0.7, %v1589_v28  ;;  %5434 = vmatpush3.bf16.msra.mxu1 %v5251_v41  ;;  %2016 = vmatmul.mubr.f32.gmra.mrb[6].mxu0 %v1702_v33 }
 0x138   : > { %v1495_v62 = vmax.f32 %v1447_v34, 0.0  ;;  %v4485_v42 = vsel %vm1306_vm10, 1.0, %v8693_v7  ;;  %vm1305_vm11 = vcmp.ge.f32.partialorder %v1251_v56, 19.0  ;;  %5427 = vmatprep.subr.bf16.mxu1 %v8698_v48  ;;  %v5254_v8 = vpack.c.bf16 %v1590_v22, %v1589_v28  ;;  %2020 = vmatprep.mubr.f32.mxu0 %v1706_v38  ;;  %v1718_v37 = vld [vmem:[%s8675_s1 + $0xc8] sm:$0xff]  ;;  %v1755_v23 = vld [vmem:[%s8675_s1 + $0x1f0] sm:$0xff]  ;;  %v1717_v22 = vld [vmem:[%s8675_s1 + $0xc0] sm:$0xff] }
 0x139   : > { %1686 = vst.msk [vmem:[#allocation3 + $0x148] sm:$0xff] %vm1068_vm1, %v1638_v44  ;;  %v1592_v55 = vadd.f32 %v1544_v30, %v1496_v36  ;;  %v1450_v40 = vsub.f32 %v6433_v32, %v4485_v42  ;;  %v4484_v46 = vsel %vm1305_vm11, 1.0, %v8693_v7  ;;  %1685 = vst.msk [vmem:[#allocation3 + $0x140] sm:$0xff] %vm1068_vm1, %v1637_v25  ;;  %5252 = vmatpush3.bf16.msra.mxu0 %v5251_v41  ;;  %v1709_v32 = vld [vmem:[%s8675_s1 + $0x80] sm:$0xff]  ;;  %v1758_v10 = vld [vmem:[%s8675_s1 + $0x208] sm:$0xff] }
 0x13a   : > { %v1591_v50 = vadd.f32 %v1543_v4, %v1495_v62  ;;  %v1449_v53 = vsub.f32 %v8699_v29, %v4484_v46  ;;  %v1260_v57 = vpop.xlane.xlu1 %1259  ;;  %v1257_v60 = vpop.xlane.xlu0 %1256  ;;  %5253 = vmatprep.subr.bf16.mxu0 %v8698_v48  ;;  %v1721_v35 = vld [vmem:[%s8675_s1 + $0xe0] sm:$0xff]  ;;  %v1720_v41 = vld [vmem:[%s8675_s1 + $0xd8] sm:$0xff]  ;;  %v1723_v30 = vld [vmem:[%s8675_s1 + $0xf0] sm:$0xff] }
 0x13b   : > { %v1640_v15 = vmul.f32 0.7, %v1592_v55  ;;  %v1498_v59 = vmax.f32 %v1450_v40, 0.0  ;;  %vm1308_vm12 = vcmp.ge.f32.partialorder %v1260_v57, 19.0  ;;  %5435 = vmatpush3.bf16.msra.mxu1 %v5254_v8  ;;  %vm1307_vm13 = vcmp.ge.f32.partialorder %v1257_v60, 19.0  ;;  %2021 = vmatmul.mubr.f32.gmra.mrb[8].mxu0 %v1705_v2  ;;  %v1724_v33 = vld [vmem:[%s8675_s1 + $0xf8] sm:$0xff] }
 0x13c   : > { %v1639_v9 = vmul.f32 0.7, %v1591_v50  ;;  %v1497_v45 = vmax.f32 %v1449_v53, 0.0  ;;  %v4487_v19 = vsel %vm1308_vm12, 1.0, %v8693_v7  ;;  %v4486_v18 = vsel %vm1307_vm13, 1.0, %v8693_v7  ;;  %5428 = vmatprep.subr.bf16.mxu1 %v8698_v48  ;;  %2025 = vmatprep.mubr.f32.mxu0 %v1709_v32  ;;  %v1761_v28 = vld [vmem:[%s8675_s1 + $0x220] sm:$0xff] }
 0x13d   : > { %1688 = vst.msk [vmem:[#allocation3 + $0x158] sm:$0xff] %vm1068_vm1, %v1640_v15  ;;  %v1594_v58 = vadd.f32 %v1546_v61, %v1498_v59  ;;  %v1452_v0 = vsub.f32 %v8700_v14, %v4487_v19  ;;  %v5257_v24 = vpack.c.bf16 %v1592_v55, %v1591_v50  ;;  %v1451_v49 = vsub.f32 %v8701_v6, %v4486_v18  ;;  %v1727_v34 = vld [vmem:[%s8675_s1 + $0x110] sm:$0xff]  ;;  %v1764_v52 = vld [vmem:[%s8675_s1 + $0x238] sm:$0xff]  ;;  %v1726_v38 = vld [vmem:[%s8675_s1 + $0x108] sm:$0xff] }
 0x13e   : > { %1687 = vst.msk [vmem:[#allocation3 + $0x150] sm:$0xff] %vm1068_vm1, %v1639_v9  ;;  %v1593_v31 = vadd.f32 %v1545_v47, %v1497_v45  ;;  %5255 = vmatpush3.bf16.msra.mxu0 %v5254_v8  ;;  %v1730_v44 = vld [vmem:[%s8675_s1 + $0x128] sm:$0xff]  ;;  %v1767_v36 = vld [vmem:[%s8675_s1 + $0x250] sm:$0xff]  ;;  %v1729_v4 = vld [vmem:[%s8675_s1 + $0x120] sm:$0xff] }
 0x13f   : > { %v1642_v13 = vmul.f32 0.7, %v1594_v58  ;;  %v1500_v39 = vmax.f32 %v1452_v0, 0.0  ;;  %5256 = vmatprep.subr.bf16.mxu0 %v8698_v48  ;;  %v1499_v43 = vmax.f32 %v1451_v49, 0.0  ;;  %5436 = vmatpush3.bf16.msra.mxu1 %v5257_v24  ;;  %v1733_v56 = vld [vmem:[%s8675_s1 + $0x140] sm:$0xff]  ;;  %v1770_v25 = vld [vmem:[%s8675_s1 + $0x268] sm:$0xff] }
 0x140   : > { %v1641_v27 = vmul.f32 0.7, %v1593_v31  ;;  %v5260_v17 = vpack.c.bf16 %v1594_v58, %v1593_v31  ;;  %2026 = vmatmul.mubr.f32.gmra.mrb[10].mxu0 %v1708_v5  ;;  %5429 = vmatprep.subr.bf16.mxu1 %v8698_v48  ;;  %v1732_v62 = vld [vmem:[%s8675_s1 + $0x138] sm:$0xff]  ;;  %v1773_v55 = vld [vmem:[%s8675_s1 + $0x280] sm:$0xff]  ;;  %v1735_v40 = vld [vmem:[%s8675_s1 + $0x150] sm:$0xff] }
 0x141   : > { %1690 = vst.msk [vmem:[#allocation3 + $0x168] sm:$0xff] %vm1068_vm1, %v1642_v13  ;;  %v1596_v54 = vadd.f32 %v1548_v3, %v1500_v39  ;;  %2030 = vmatprep.mubr.f32.mxu0 %v1712_v12  ;;  %v1595_v11 = vadd.f32 %v1547_v16, %v1499_v43  ;;  %v1736_v42 = vld [vmem:[%s8675_s1 + $0x158] sm:$0xff]  ;;  %v1739_v46 = vld [vmem:[%s8675_s1 + $0x170] sm:$0xff]  ;;  %v1738_v2 = vld [vmem:[%s8675_s1 + $0x168] sm:$0xff] }
 0x142   : > { %1689 = vst.msk [vmem:[#allocation3 + $0x160] sm:$0xff] %vm1068_vm1, %v1641_v27  ;;  %5258 = vmatpush3.bf16.msra.mxu0 %v5257_v24  ;;  %v1776_v8 = vld [vmem:[%s8675_s1 + $0x298] sm:$0xff]  ;;  %v1742_v50 = vld [vmem:[%s8675_s1 + $0x188] sm:$0xff]  ;;  %v1779_v61 = vld [vmem:[%s8675_s1 + $0x2b0] sm:$0xff] }
 0x143   : > { %v1644_v20 = vmul.f32 0.7, %v1596_v54  ;;  %5259 = vmatprep.subr.bf16.mxu0 %v8698_v48  ;;  %v1643_v26 = vmul.f32 0.7, %v1595_v11  ;;  %5437 = vmatpush3.bf16.msra.mxu1 %v5260_v17  ;;  %v5263_v63 = vpack.c.bf16 %v1596_v54, %v1595_v11  ;;  %v1741_v29 = vld [vmem:[%s8675_s1 + $0x180] sm:$0xff]  ;;  %v1782_v57 = vld [vmem:[%s8675_s1 + $0x2c8] sm:$0xff] }
 0x144   : > { %2031 = vmatmul.mubr.f32.gmra.mrb[12].mxu0 %v1711_v51  ;;  %5430 = vmatprep.subr.bf16.mxu1 %v8698_v48  ;;  %v1745_v53 = vld [vmem:[%s8675_s1 + $0x1a0] sm:$0xff]  ;;  %v1744_v32 = vld [vmem:[%s8675_s1 + $0x198] sm:$0xff]  ;;  %v1747_v47 = vld [vmem:[%s8675_s1 + $0x1b0] sm:$0xff] }
 0x145   : > { %1692 = vst.msk [vmem:[#allocation3 + $0x178] sm:$0xff] %vm1068_vm1, %v1644_v20  ;;  %2035 = vmatprep.mubr.f32.mxu0 %v1715_v1  ;;  %1691 = vst.msk [vmem:[#allocation3 + $0x170] sm:$0xff] %vm1068_vm1, %v1643_v26  ;;  %v1748_v15 = vld [vmem:[%s8675_s1 + $0x1b8] sm:$0xff]  ;;  %v1785_v59 = vld [vmem:[%s8675_s1 + $0x2e0] sm:$0xff] }
 0x146   : > { %5261 = vmatpush3.bf16.msra.mxu0 %v5260_v17  ;;  %v1751_v60 = vld [vmem:[%s8675_s1 + $0x1d0] sm:$0xff]  ;;  %v1788_v9 = vld [vmem:[%s8675_s1 + $0x2f8] sm:$0xff]  ;;  %v1750_v45 = vld [vmem:[%s8675_s1 + $0x1c8] sm:$0xff] }
 0x147   : > { %5262 = vmatprep.subr.bf16.mxu0 %v8698_v48  ;;  %5438 = vmatpush3.bf16.msra.mxu1 %v5263_v63  ;;  %v1754_v19 = vld [vmem:[%s8675_s1 + $0x1e8] sm:$0xff]  ;;  %v1791_v58 = vld [vmem:[%s8675_s1 + $0x310] sm:$0xff]  ;;  %v1753_v14 = vld [vmem:[%s8675_s1 + $0x1e0] sm:$0xff] }
 0x148   : > { %2036 = vmatmul.mubr.f32.gmra.mrb[14].mxu0 %v1714_v21  ;;  %v1757_v0 = vld [vmem:[%s8675_s1 + $0x200] sm:$0xff]  ;;  %v1794_v18 = vld [vmem:[%s8675_s1 + $0x328] sm:$0xff]  ;;  %v1756_v24 = vld [vmem:[%s8675_s1 + $0x1f8] sm:$0xff] }
 0x149   : > { %2040 = vmatprep.mubr.f32.mxu0 %v1718_v37  ;;  %v1760_v5 = vld [vmem:[%s8675_s1 + $0x218] sm:$0xff]  ;;  %v1797_v31 = vld [vmem:[%s8675_s1 + $0x340] sm:$0xff]  ;;  %v1759_v3 = vld [vmem:[%s8675_s1 + $0x210] sm:$0xff] }
 0x14a   : > { %5264 = vmatpush3.bf16.msra.mxu0 %v5263_v63  ;;  %4909 = vmatmul.mubr.f32.vlgmr.msra.gmra.mrb[0].mxu1 %v1755_v23  ;;  %v1763_v6 = vld [vmem:[%s8675_s1 + $0x230] sm:$0xff]  ;;  %v1800_v49 = vld [vmem:[%s8675_s1 + $0x358] sm:$0xff]  ;;  %v1762_v12 = vld [vmem:[%s8675_s1 + $0x228] sm:$0xff] }
 0x14b   : > { %4911 = vmatprep.mubr.msk.f32.mxu1 %vm5761_vm8, %v8693_v7  ;;  %v1766_v13 = vld [vmem:[%s8675_s1 + $0x248] sm:$0xff]  ;;  %v1803_v39 = vld [vmem:[%s8675_s1 + $0x370] sm:$0xff]  ;;  %v1765_v16 = vld [vmem:[%s8675_s1 + $0x240] sm:$0xff] }
 0x14c   : > { %2041 = vmatmul.mubr.f32.gmra.mrb[16].mxu0 %v1717_v22  ;;  %v1769_v27 = vld [vmem:[%s8675_s1 + $0x260] sm:$0xff]  ;;  %v1806_v43 = vld [vmem:[%s8675_s1 + $0x388] sm:$0xff]  ;;  %v1768_v17 = vld [vmem:[%s8675_s1 + $0x258] sm:$0xff] }
 0x14d   : > { %2045 = vmatprep.mubr.f32.mxu0 %v1721_v35  ;;  %v1772_v54 = vld [vmem:[%s8675_s1 + $0x278] sm:$0xff]  ;;  %v1809_v51 = vld [vmem:[%s8675_s1 + $0x3a0] sm:$0xff]  ;;  %v1771_v11 = vld [vmem:[%s8675_s1 + $0x270] sm:$0xff] }
 0x14e   : > { %4912 = vmatmul.mubr.f32.gmra.mrb[2].mxu1 %v1758_v10  ;;  %v1775_v1 = vld [vmem:[%s8675_s1 + $0x290] sm:$0xff]  ;;  %v1812_v20 = vld [vmem:[%s8675_s1 + $0x3b8] sm:$0xff]  ;;  %v1774_v26 = vld [vmem:[%s8675_s1 + $0x288] sm:$0xff] }
 0x14f   : > { %4914 = vmatprep.mubr.msk.f32.mxu1 %vm5761_vm8, %v8693_v7  ;;  %v1778_v63 = vld [vmem:[%s8675_s1 + $0x2a8] sm:$0xff]  ;;  %v1815_v21 = vld [vmem:[%s8675_s1 + $0x3d0] sm:$0xff]  ;;  %v1777_v37 = vld [vmem:[%s8675_s1 + $0x2a0] sm:$0xff] }
 0x150   : > { %2046 = vmatmul.mubr.f32.gmra.mrb[18].mxu0 %v1720_v41  ;;  %v1781_v23 = vld [vmem:[%s8675_s1 + $0x2c0] sm:$0xff]  ;;  %v1818_v22 = vld [vmem:[%s8675_s1 + $0x3e8] sm:$0xff]  ;;  %v1780_v35 = vld [vmem:[%s8675_s1 + $0x2b8] sm:$0xff] }
 0x151   : > { %2050 = vmatprep.mubr.f32.mxu0 %v1724_v33  ;;  %v1784_v10 = vld [vmem:[%s8675_s1 + $0x2d8] sm:$0xff]  ;;  %v1821_v41 = vld [vmem:[%s8675_s1 + $0x400] sm:$0xff]  ;;  %v1783_v33 = vld [vmem:[%s8675_s1 + $0x2d0] sm:$0xff] }
 0x152   : > { %4915 = vmatmul.mubr.f32.gmra.mrb[4].mxu1 %v1761_v28  ;;  %v1787_v28 = vld [vmem:[%s8675_s1 + $0x2f0] sm:$0xff] }
 0x153   : > { %4917 = vmatprep.mubr.msk.f32.mxu1 %vm5761_vm8, %v8693_v7 }
 0x154   : > { %2051 = vmatmul.mubr.f32.gmra.mrb[20].mxu0 %v1723_v30  ;;  %v1824_v30 = vld [vmem:[%s8675_s1 + $0x418] sm:$0xff] }
 0x155   : > { %2055 = vmatprep.mubr.f32.mxu0 %v1727_v34  ;;  %v1786_v34 = vld [vmem:[%s8675_s1 + $0x2e8] sm:$0xff] }
 0x156   : > { %4918 = vmatmul.mubr.f32.gmra.mrb[6].mxu1 %v1764_v52  ;;  %v1790_v52 = vld [vmem:[%s8675_s1 + $0x308] sm:$0xff] }
 0x157   : > { %4920 = vmatprep.mubr.msk.f32.mxu1 %vm5761_vm8, %v8693_v7 }
 0x158   : > { %2056 = vmatmul.mubr.f32.gmra.mrb[22].mxu0 %v1726_v38  ;;  %v1827_v38 = vld [vmem:[%s8675_s1 + $0x430] sm:$0xff] }
 0x159   : > { %2060 = vmatprep.mubr.f32.mxu0 %v1730_v44  ;;  %v1789_v44 = vld [vmem:[%s8675_s1 + $0x300] sm:$0xff] }
 0x15a   : > { %4921 = vmatmul.mubr.f32.gmra.mrb[8].mxu1 %v1767_v36  ;;  %v1793_v36 = vld [vmem:[%s8675_s1 + $0x320] sm:$0xff] }
 0x15b   : > { %4923 = vmatprep.mubr.msk.f32.mxu1 %vm5761_vm8, %v8693_v7 }
 0x15c   : > { %2061 = vmatmul.mubr.f32.gmra.mrb[24].mxu0 %v1729_v4  ;;  %v1830_v4 = vld [vmem:[%s8675_s1 + $0x448] sm:$0xff] }
 0x15d   : > { %2065 = vmatprep.mubr.f32.mxu0 %v1733_v56  ;;  %v1792_v56 = vld [vmem:[%s8675_s1 + $0x318] sm:$0xff] }
 0x15e   : > { %4924 = vmatmul.mubr.f32.gmra.mrb[10].mxu1 %v1770_v25  ;;  %v1796_v25 = vld [vmem:[%s8675_s1 + $0x338] sm:$0xff] }
 0x15f   : > { %4926 = vmatprep.mubr.msk.f32.mxu1 %vm5761_vm8, %v8693_v7 }
 0x160   : > { %2066 = vmatmul.mubr.f32.gmra.mrb[26].mxu0 %v1732_v62  ;;  %v1833_v62 = vld [vmem:[%s8675_s1 + $0x460] sm:$0xff] }
 0x161   : > { %2070 = vmatprep.mubr.f32.mxu0 %v1736_v42  ;;  %v1795_v42 = vld [vmem:[%s8675_s1 + $0x330] sm:$0xff] }
 0x162   : > { %4927 = vmatmul.mubr.f32.gmra.mrb[12].mxu1 %v1773_v55  ;;  %v1799_v55 = vld [vmem:[%s8675_s1 + $0x350] sm:$0xff] }
 0x163   : > { %4929 = vmatprep.mubr.msk.f32.mxu1 %vm5761_vm8, %v8693_v7 }
 0x164   : > { %2071 = vmatmul.mubr.f32.gmra.mrb[28].mxu0 %v1735_v40  ;;  %v1836_v40 = vld [vmem:[%s8675_s1 + $0x478] sm:$0xff] }
 0x165   : > { %2075 = vmatprep.mubr.f32.mxu0 %v1739_v46  ;;  %v1798_v46 = vld [vmem:[%s8675_s1 + $0x348] sm:$0xff] }
 0x166   : > { %4930 = vmatmul.mubr.f32.gmra.mrb[14].mxu1 %v1776_v8  ;;  %v1802_v8 = vld [vmem:[%s8675_s1 + $0x368] sm:$0xff] }
 0x167   : > { %4932 = vmatprep.mubr.msk.f32.mxu1 %vm5761_vm8, %v8693_v7 }
 0x168   : > { %2076 = vmatmul.mubr.f32.gmra.mrb[30].mxu0 %v1738_v2  ;;  %v1839_v2 = vld [vmem:[%s8675_s1 + $0x490] sm:$0xff] }
 0x169   : > { %2080 = vmatprep.mubr.f32.mxu0 %v1742_v50  ;;  %v1801_v50 = vld [vmem:[%s8675_s1 + $0x360] sm:$0xff] }
 0x16a   : > { %4933 = vmatmul.mubr.f32.gmra.mrb[16].mxu1 %v1779_v61  ;;  %v1805_v61 = vld [vmem:[%s8675_s1 + $0x380] sm:$0xff] }
 0x16b   : > { %4935 = vmatprep.mubr.msk.f32.mxu1 %vm5761_vm8, %v8693_v7 }
 0x16c   : > { %2081 = vmatmul.mubr.f32.gmra.mrb[32].mxu0 %v1741_v29  ;;  %v1842_v29 = vld [vmem:[%s8675_s1 + $0x4a8] sm:$0xff] }
 0x16d   : > { %2085 = vmatprep.mubr.f32.mxu0 %v1745_v53  ;;  %v1804_v53 = vld [vmem:[%s8675_s1 + $0x378] sm:$0xff] }
 0x16e   : > { %4936 = vmatmul.mubr.f32.gmra.mrb[18].mxu1 %v1782_v57  ;;  %v1808_v57 = vld [vmem:[%s8675_s1 + $0x398] sm:$0xff] }
 0x16f   : > { %4938 = vmatprep.mubr.msk.f32.mxu1 %vm5761_vm8, %v8693_v7 }
 0x170   : > { %2086 = vmatmul.mubr.f32.gmra.mrb[34].mxu0 %v1744_v32  ;;  %v1845_v32 = vld [vmem:[%s8675_s1 + $0x4c0] sm:$0xff] }
 0x171   : > { %2090 = vmatprep.mubr.f32.mxu0 %v1748_v15  ;;  %v1807_v15 = vld [vmem:[%s8675_s1 + $0x390] sm:$0xff] }
 0x172   : > { %4939 = vmatmul.mubr.f32.gmra.mrb[20].mxu1 %v1785_v59  ;;  %v1811_v59 = vld [vmem:[%s8675_s1 + $0x3b0] sm:$0xff] }
 0x173   : > { %4941 = vmatprep.mubr.msk.f32.mxu1 %vm5761_vm8, %v8693_v7 }
 0x174   : > { %2091 = vmatmul.mubr.f32.gmra.mrb[36].mxu0 %v1747_v47  ;;  %v1848_v47 = vld [vmem:[%s8675_s1 + $0x4d8] sm:$0xff] }
 0x175   : > { %2095 = vmatprep.mubr.f32.mxu0 %v1751_v60  ;;  %v1810_v60 = vld [vmem:[%s8675_s1 + $0x3a8] sm:$0xff] }
 0x176   : > { %4942 = vmatmul.mubr.f32.gmra.mrb[22].mxu1 %v1788_v9  ;;  %v1814_v9 = vld [vmem:[%s8675_s1 + $0x3c8] sm:$0xff] }
 0x177   : > { %4944 = vmatprep.mubr.msk.f32.mxu1 %vm5761_vm8, %v8693_v7 }
 0x178   : > { %2096 = vmatmul.mubr.f32.gmra.mrb[38].mxu0 %v1750_v45  ;;  %v1851_v45 = vld [vmem:[%s8675_s1 + $0x4f0] sm:$0xff] }
 0x179   : > { %2100 = vmatprep.mubr.f32.mxu0 %v1754_v19  ;;  %v1813_v19 = vld [vmem:[%s8675_s1 + $0x3c0] sm:$0xff] }
 0x17a   : > { %4945 = vmatmul.mubr.f32.gmra.mrb[24].mxu1 %v1791_v58  ;;  %v1817_v58 = vld [vmem:[%s8675_s1 + $0x3e0] sm:$0xff] }
 0x17b   : > { %4947 = vmatprep.mubr.msk.f32.mxu1 %vm5761_vm8, %v8693_v7 }
 0x17c   : > { %2101 = vmatmul.mubr.f32.gmra.mrb[40].mxu0 %v1753_v14  ;;  %v1854_v14 = vld [vmem:[%s8675_s1 + $0x508] sm:$0xff] }
 0x17d   : > { %2105 = vmatprep.mubr.f32.mxu0 %v1757_v0  ;;  %v1816_v0 = vld [vmem:[%s8675_s1 + $0x3d8] sm:$0xff] }
 0x17e   : > { %4948 = vmatmul.mubr.f32.gmra.mrb[26].mxu1 %v1794_v18  ;;  %v1820_v18 = vld [vmem:[%s8675_s1 + $0x3f8] sm:$0xff] }
 0x17f   : > { %4950 = vmatprep.mubr.msk.f32.mxu1 %vm5761_vm8, %v8693_v7 }
 0x180   : > { %2106 = vmatmul.mubr.f32.gmra.mrb[42].mxu0 %v1756_v24  ;;  %v1857_v24 = vld [vmem:[%s8675_s1 + $0x520] sm:$0xff] }
 0x181   : > { %2110 = vmatprep.mubr.f32.mxu0 %v1760_v5  ;;  %v1819_v5 = vld [vmem:[%s8675_s1 + $0x3f0] sm:$0xff] }
 0x182   : > { %4951 = vmatmul.mubr.f32.gmra.mrb[28].mxu1 %v1797_v31  ;;  %v1823_v31 = vld [vmem:[%s8675_s1 + $0x410] sm:$0xff] }
 0x183   : > { %4953 = vmatprep.mubr.msk.f32.mxu1 %vm5761_vm8, %v8693_v7 }
 0x184   : > { %2111 = vmatmul.mubr.f32.gmra.mrb[44].mxu0 %v1759_v3  ;;  %v1860_v3 = vld [vmem:[%s8675_s1 + $0x538] sm:$0xff] }
 0x185   : > { %2115 = vmatprep.mubr.f32.mxu0 %v1763_v6  ;;  %v1822_v6 = vld [vmem:[%s8675_s1 + $0x408] sm:$0xff] }
 0x186   : > { %4954 = vmatmul.mubr.f32.gmra.mrb[30].mxu1 %v1800_v49  ;;  %v1826_v49 = vld [vmem:[%s8675_s1 + $0x428] sm:$0xff] }
 0x187   : > { %4956 = vmatprep.mubr.msk.f32.mxu1 %vm5761_vm8, %v8693_v7 }
 0x188   : > { %2116 = vmatmul.mubr.f32.gmra.mrb[46].mxu0 %v1762_v12  ;;  %v1863_v12 = vld [vmem:[%s8675_s1 + $0x550] sm:$0xff] }
 0x189   : > { %2120 = vmatprep.mubr.f32.mxu0 %v1766_v13  ;;  %v1825_v13 = vld [vmem:[%s8675_s1 + $0x420] sm:$0xff] }
 0x18a   : > { %4957 = vmatmul.mubr.f32.gmra.mrb[32].mxu1 %v1803_v39  ;;  %v1829_v39 = vld [vmem:[%s8675_s1 + $0x440] sm:$0xff] }
 0x18b   : > { %4959 = vmatprep.mubr.msk.f32.mxu1 %vm5761_vm8, %v8693_v7 }
 0x18c   : > { %2121 = vmatmul.mubr.f32.gmra.mrb[48].mxu0 %v1765_v16  ;;  %v1866_v16 = vld [vmem:[%s8675_s1 + $0x568] sm:$0xff] }
 0x18d   : > { %2125 = vmatprep.mubr.f32.mxu0 %v1769_v27  ;;  %v1828_v27 = vld [vmem:[%s8675_s1 + $0x438] sm:$0xff] }
 0x18e   : > { %4960 = vmatmul.mubr.f32.gmra.mrb[34].mxu1 %v1806_v43  ;;  %v1832_v43 = vld [vmem:[%s8675_s1 + $0x458] sm:$0xff] }
 0x18f   : > { %4962 = vmatprep.mubr.msk.f32.mxu1 %vm5761_vm8, %v8693_v7 }
 0x190   : > { %2126 = vmatmul.mubr.f32.gmra.mrb[50].mxu0 %v1768_v17  ;;  %v1869_v17 = vld [vmem:[%s8675_s1 + $0x580] sm:$0xff] }
 0x191   : > { %2130 = vmatprep.mubr.f32.mxu0 %v1772_v54  ;;  %v1831_v54 = vld [vmem:[%s8675_s1 + $0x450] sm:$0xff] }
 0x192   : > { %4963 = vmatmul.mubr.f32.gmra.mrb[36].mxu1 %v1809_v51  ;;  %v1835_v51 = vld [vmem:[%s8675_s1 + $0x470] sm:$0xff] }
 0x193   : > { %4965 = vmatprep.mubr.msk.f32.mxu1 %vm5761_vm8, %v8693_v7 }
 0x194   : > { %2131 = vmatmul.mubr.f32.gmra.mrb[52].mxu0 %v1771_v11  ;;  %v1872_v11 = vld [vmem:[%s8675_s1 + $0x598] sm:$0xff] }
 0x195   : > { %2135 = vmatprep.mubr.f32.mxu0 %v1775_v1  ;;  %v1834_v1 = vld [vmem:[%s8675_s1 + $0x468] sm:$0xff] }
 0x196   : > { %4966 = vmatmul.mubr.f32.gmra.mrb[38].mxu1 %v1812_v20  ;;  %v1838_v20 = vld [vmem:[%s8675_s1 + $0x488] sm:$0xff] }
 0x197   : > { %4968 = vmatprep.mubr.msk.f32.mxu1 %vm5761_vm8, %v8693_v7 }
 0x198   : > { %2136 = vmatmul.mubr.f32.gmra.mrb[54].mxu0 %v1774_v26  ;;  %v1875_v26 = vld [vmem:[%s8675_s1 + $0x5b0] sm:$0xff] }
 0x199   : > { %2140 = vmatprep.mubr.f32.mxu0 %v1778_v63  ;;  %v1837_v63 = vld [vmem:[%s8675_s1 + $0x480] sm:$0xff] }
 0x19a   : > { %4969 = vmatmul.mubr.f32.gmra.mrb[40].mxu1 %v1815_v21  ;;  %v1841_v21 = vld [vmem:[%s8675_s1 + $0x4a0] sm:$0xff] }
 0x19b   : > { %4971 = vmatprep.mubr.msk.f32.mxu1 %vm5761_vm8, %v8693_v7 }
 0x19c   : > { %2141 = vmatmul.mubr.f32.gmra.mrb[56].mxu0 %v1777_v37  ;;  %v1878_v37 = vld [vmem:[%s8675_s1 + $0x5c8] sm:$0xff] }
 0x19d   : > { %2145 = vmatprep.mubr.f32.mxu0 %v1781_v23  ;;  %v1840_v23 = vld [vmem:[%s8675_s1 + $0x498] sm:$0xff] }
 0x19e   : > { %4972 = vmatmul.mubr.f32.gmra.mrb[42].mxu1 %v1818_v22  ;;  %v1844_v22 = vld [vmem:[%s8675_s1 + $0x4b8] sm:$0xff] }
 0x19f   : > { %4974 = vmatprep.mubr.msk.f32.mxu1 %vm5761_vm8, %v8693_v7 }
 0x1a0   : > { %2146 = vmatmul.mubr.f32.gmra.mrb[58].mxu0 %v1780_v35  ;;  %v1881_v35 = vld [vmem:[%s8675_s1 + $0x5e0] sm:$0xff] }
 0x1a1   : > { %2150 = vmatprep.mubr.f32.mxu0 %v1784_v10  ;;  %v1843_v10 = vld [vmem:[%s8675_s1 + $0x4b0] sm:$0xff] }
 0x1a2   : > { %4975 = vmatmul.mubr.f32.gmra.mrb[44].mxu1 %v1821_v41  ;;  %v1847_v41 = vld [vmem:[%s8675_s1 + $0x4d0] sm:$0xff] }
 0x1a3   : > { %4977 = vmatprep.mubr.msk.f32.mxu1 %vm5761_vm8, %v8693_v7 }
 0x1a4   : > { %2151 = vmatmul.mubr.f32.gmra.mrb[60].mxu0 %v1783_v33  ;;  %v1884_v33 = vld [vmem:[%s8675_s1 + $0x5f8] sm:$0xff] }
 0x1a5   : > { %2155 = vmatprep.mubr.f32.mxu0 %v1787_v28  ;;  %v1846_v28 = vld [vmem:[%s8675_s1 + $0x4c8] sm:$0xff] }
 0x1a6   : > { %4978 = vmatmul.mubr.f32.gmra.mrb[46].mxu1 %v1824_v30  ;;  %v1850_v30 = vld [vmem:[%s8675_s1 + $0x4e8] sm:$0xff] }
 0x1a7   : > { %4980 = vmatprep.mubr.msk.f32.mxu1 %vm5761_vm8, %v8693_v7 }
 0x1a8   : > { %2156 = vmatmul.mubr.f32.gmra.mrb[62].mxu0 %v1786_v34  ;;  %v1887_v34 = vld [vmem:[%s8675_s1 + $0x610] sm:$0xff] }
 0x1a9   : > { %2160 = vmatprep.mubr.f32.mxu0 %v1790_v52  ;;  %v1849_v52 = vld [vmem:[%s8675_s1 + $0x4e0] sm:$0xff] }
 0x1aa   : > { %4981 = vmatmul.mubr.f32.gmra.mrb[48].mxu1 %v1827_v38  ;;  %v1853_v38 = vld [vmem:[%s8675_s1 + $0x500] sm:$0xff] }
 0x1ab   : > { %4983 = vmatprep.mubr.msk.f32.mxu1 %vm5761_vm8, %v8693_v7 }
 0x1ac   : > { %2161 = vmatmul.mubr.f32.gmra.mrb[64].mxu0 %v1789_v44  ;;  %v1890_v44 = vld [vmem:[%s8675_s1 + $0x628] sm:$0xff] }
 0x1ad   : > { %2165 = vmatprep.mubr.f32.mxu0 %v1793_v36  ;;  %v1852_v36 = vld [vmem:[%s8675_s1 + $0x4f8] sm:$0xff] }
 0x1ae   : > { %4984 = vmatmul.mubr.f32.gmra.mrb[50].mxu1 %v1830_v4  ;;  %v1856_v4 = vld [vmem:[%s8675_s1 + $0x518] sm:$0xff] }
 0x1af   : > { %4986 = vmatprep.mubr.msk.f32.mxu1 %vm5761_vm8, %v8693_v7 }
 0x1b0   : > { %2166 = vmatmul.mubr.f32.gmra.mrb[66].mxu0 %v1792_v56  ;;  %v1893_v56 = vld [vmem:[%s8675_s1 + $0x640] sm:$0xff] }
 0x1b1   : > { %2170 = vmatprep.mubr.f32.mxu0 %v1796_v25  ;;  %v1855_v25 = vld [vmem:[%s8675_s1 + $0x510] sm:$0xff] }
 0x1b2   : > { %4987 = vmatmul.mubr.f32.gmra.mrb[52].mxu1 %v1833_v62  ;;  %v1859_v62 = vld [vmem:[%s8675_s1 + $0x530] sm:$0xff] }
 0x1b3   : > { %4989 = vmatprep.mubr.msk.f32.mxu1 %vm5761_vm8, %v8693_v7 }
 0x1b4   : > { %2171 = vmatmul.mubr.f32.gmra.mrb[68].mxu0 %v1795_v42  ;;  %v1896_v42 = vld [vmem:[%s8675_s1 + $0x658] sm:$0xff] }
 0x1b5   : > { %2175 = vmatprep.mubr.f32.mxu0 %v1799_v55  ;;  %v1858_v55 = vld [vmem:[%s8675_s1 + $0x528] sm:$0xff] }
 0x1b6   : > { %4990 = vmatmul.mubr.f32.gmra.mrb[54].mxu1 %v1836_v40  ;;  %v1862_v40 = vld [vmem:[%s8675_s1 + $0x548] sm:$0xff] }
 0x1b7   : > { %4992 = vmatprep.mubr.msk.f32.mxu1 %vm5761_vm8, %v8693_v7 }
 0x1b8   : > { %2176 = vmatmul.mubr.f32.gmra.mrb[70].mxu0 %v1798_v46  ;;  %v1899_v46 = vld [vmem:[%s8675_s1 + $0x670] sm:$0xff] }
 0x1b9   : > { %2180 = vmatprep.mubr.f32.mxu0 %v1802_v8  ;;  %v1861_v8 = vld [vmem:[%s8675_s1 + $0x540] sm:$0xff] }
 0x1ba   : > { %4993 = vmatmul.mubr.f32.gmra.mrb[56].mxu1 %v1839_v2  ;;  %v1865_v2 = vld [vmem:[%s8675_s1 + $0x560] sm:$0xff] }
 0x1bb   : > { %4995 = vmatprep.mubr.msk.f32.mxu1 %vm5761_vm8, %v8693_v7 }
 0x1bc   : > { %2181 = vmatmul.mubr.f32.gmra.mrb[72].mxu0 %v1801_v50  ;;  %v1902_v50 = vld [vmem:[%s8675_s1 + $0x688] sm:$0xff] }
 0x1bd   : > { %2185 = vmatprep.mubr.f32.mxu0 %v1805_v61  ;;  %v1864_v61 = vld [vmem:[%s8675_s1 + $0x558] sm:$0xff] }
 0x1be   : > { %4996 = vmatmul.mubr.f32.gmra.mrb[58].mxu1 %v1842_v29  ;;  %v1868_v29 = vld [vmem:[%s8675_s1 + $0x578] sm:$0xff] }
 0x1bf   : > { %4998 = vmatprep.mubr.msk.f32.mxu1 %vm5761_vm8, %v8693_v7 }
 0x1c0   : > { %2186 = vmatmul.mubr.f32.gmra.mrb[74].mxu0 %v1804_v53  ;;  %v1905_v53 = vld [vmem:[%s8675_s1 + $0x6a0] sm:$0xff] }
 0x1c1   : > { %2190 = vmatprep.mubr.f32.mxu0 %v1808_v57  ;;  %v1867_v57 = vld [vmem:[%s8675_s1 + $0x570] sm:$0xff] }
 0x1c2   : > { %4999 = vmatmul.mubr.f32.gmra.mrb[60].mxu1 %v1845_v32  ;;  %v1871_v32 = vld [vmem:[%s8675_s1 + $0x590] sm:$0xff] }
 0x1c3   : > { %5001 = vmatprep.mubr.msk.f32.mxu1 %vm5761_vm8, %v8693_v7 }
 0x1c4   : > { %2191 = vmatmul.mubr.f32.gmra.mrb[76].mxu0 %v1807_v15  ;;  %v1908_v15 = vld [vmem:[%s8675_s1 + $0x6b8] sm:$0xff] }
 0x1c5   : > { %2195 = vmatprep.mubr.f32.mxu0 %v1811_v59  ;;  %v1870_v59 = vld [vmem:[%s8675_s1 + $0x588] sm:$0xff] }
 0x1c6   : > { %5002 = vmatmul.mubr.f32.gmra.mrb[62].mxu1 %v1848_v47  ;;  %v1874_v47 = vld [vmem:[%s8675_s1 + $0x5a8] sm:$0xff] }
 0x1c7   : > { %5004 = vmatprep.mubr.msk.f32.mxu1 %vm5761_vm8, %v8693_v7 }
 0x1c8   : > { %2196 = vmatmul.mubr.f32.gmra.mrb[78].mxu0 %v1810_v60  ;;  %v1911_v60 = vld [vmem:[%s8675_s1 + $0x6d0] sm:$0xff] }
 0x1c9   : > { %2200 = vmatprep.mubr.f32.mxu0 %v1814_v9  ;;  %v1873_v9 = vld [vmem:[%s8675_s1 + $0x5a0] sm:$0xff] }
 0x1ca   : > { %5005 = vmatmul.mubr.f32.gmra.mrb[64].mxu1 %v1851_v45  ;;  %v1877_v45 = vld [vmem:[%s8675_s1 + $0x5c0] sm:$0xff] }
 0x1cb   : > { %5007 = vmatprep.mubr.msk.f32.mxu1 %vm5761_vm8, %v8693_v7 }
 0x1cc   : > { %2201 = vmatmul.mubr.f32.gmra.mrb[80].mxu0 %v1813_v19  ;;  %v1914_v19 = vld [vmem:[%s8675_s1 + $0x6e8] sm:$0xff] }
 0x1cd   : > { %2205 = vmatprep.mubr.f32.mxu0 %v1817_v58  ;;  %v1876_v58 = vld [vmem:[%s8675_s1 + $0x5b8] sm:$0xff] }
 0x1ce   : > { %5008 = vmatmul.mubr.f32.gmra.mrb[66].mxu1 %v1854_v14 }
 0x1cf   : > { %5010 = vmatprep.mubr.msk.f32.mxu1 %vm5761_vm8, %v8693_v7 }
 0x1d0   : > { %2206 = vmatmul.mubr.f32.gmra.mrb[82].mxu0 %v1816_v0  ;;  %v1880_v0 = vld [vmem:[%s8675_s1 + $0x5d8] sm:$0xff] }
 0x1d1   : > { %2210 = vmatprep.mubr.f32.mxu0 %v1820_v18 }
 0x1d2   : > { %5011 = vmatmul.mubr.f32.gmra.mrb[68].mxu1 %v1857_v24  ;;  %v1917_v24 = vld [vmem:[%s8675_s1 + $0x700] sm:$0xff] }
 0x1d3   : > { %5013 = vmatprep.mubr.msk.f32.mxu1 %vm5761_vm8, %v8693_v7 }
 0x1d4   : > { %2211 = vmatmul.mubr.f32.gmra.mrb[84].mxu0 %v1819_v5  ;;  %v1879_v5 = vld [vmem:[%s8675_s1 + $0x5d0] sm:$0xff] }
 0x1d5   : > { %2215 = vmatprep.mubr.f32.mxu0 %v1823_v31 }
 0x1d6   : > { %5014 = vmatmul.mubr.f32.gmra.mrb[70].mxu1 %v1860_v3  ;;  %v1883_v3 = vld [vmem:[%s8675_s1 + $0x5f0] sm:$0xff] }
 0x1d7   : > { %5016 = vmatprep.mubr.msk.f32.mxu1 %vm5761_vm8, %v8693_v7 }
 0x1d8   : > { %2216 = vmatmul.mubr.f32.gmra.mrb[86].mxu0 %v1822_v6 }
 0x1d9   : > { %2220 = vmatprep.mubr.f32.mxu0 %v1826_v49  ;;  %v1920_v49 = vld [vmem:[%s8675_s1 + $0x718] sm:$0xff] }
 0x1da   : > { %5017 = vmatmul.mubr.f32.gmra.mrb[72].mxu1 %v1863_v12  ;;  %v1882_v12 = vld [vmem:[%s8675_s1 + $0x5e8] sm:$0xff] }
 0x1db   : > { %5019 = vmatprep.mubr.msk.f32.mxu1 %vm5761_vm8, %v8693_v7 }
 0x1dc   : > { %2221 = vmatmul.mubr.f32.gmra.mrb[88].mxu0 %v1825_v13 }
 0x1dd   : > { %2225 = vmatprep.mubr.f32.mxu0 %v1829_v39  ;;  %v1886_v39 = vld [vmem:[%s8675_s1 + $0x608] sm:$0xff] }
 0x1de   : > { %5020 = vmatmul.mubr.f32.gmra.mrb[74].mxu1 %v1866_v16 }
 0x1df   : > { %5022 = vmatprep.mubr.msk.f32.mxu1 %vm5761_vm8, %v8693_v7 }
 0x1e0   : > { %2226 = vmatmul.mubr.f32.gmra.mrb[90].mxu0 %v1828_v27  ;;  %v1923_v27 = vld [vmem:[%s8675_s1 + $0x730] sm:$0xff] }
 0x1e1   : > { %2230 = vmatprep.mubr.f32.mxu0 %v1832_v43  ;;  %v1885_v43 = vld [vmem:[%s8675_s1 + $0x600] sm:$0xff] }
 0x1e2   : > { %5023 = vmatmul.mubr.f32.gmra.mrb[76].mxu1 %v1869_v17 }
 0x1e3   : > { %5025 = vmatprep.mubr.msk.f32.mxu1 %vm5761_vm8, %v8693_v7 }
 0x1e4   : > { %2231 = vmatmul.mubr.f32.gmra.mrb[92].mxu0 %v1831_v54  ;;  %v1889_v54 = vld [vmem:[%s8675_s1 + $0x620] sm:$0xff] }
 0x1e5   : > { %2235 = vmatprep.mubr.f32.mxu0 %v1835_v51 }
 0x1e6   : > { %5026 = vmatmul.mubr.f32.gmra.mrb[78].mxu1 %v1872_v11  ;;  %v1926_v11 = vld [vmem:[%s8675_s1 + $0x748] sm:$0xff] }
 0x1e7   : > { %5028 = vmatprep.mubr.msk.f32.mxu1 %vm5761_vm8, %v8693_v7 }
 0x1e8   : > { %2236 = vmatmul.mubr.f32.gmra.mrb[94].mxu0 %v1834_v1  ;;  %v1888_v1 = vld [vmem:[%s8675_s1 + $0x618] sm:$0xff] }
 0x1e9   : > { %2240 = vmatprep.mubr.f32.mxu0 %v1838_v20 }
 0x1ea   : > { %5029 = vmatmul.mubr.f32.gmra.mrb[80].mxu1 %v1875_v26  ;;  %v1892_v26 = vld [vmem:[%s8675_s1 + $0x638] sm:$0xff] }
 0x1eb   : > { %5031 = vmatprep.mubr.msk.f32.mxu1 %vm5761_vm8, %v8693_v7 }
 0x1ec   : > { %2241 = vmatmul.mubr.f32.gmra.mrb[96].mxu0 %v1837_v63 }
 0x1ed   : > { %2245 = vmatprep.mubr.f32.mxu0 %v1841_v21  ;;  %v1929_v21 = vld [vmem:[%s8675_s1 + $0x760] sm:$0xff] }
 0x1ee   : > { %5032 = vmatmul.mubr.f32.gmra.mrb[82].mxu1 %v1878_v37  ;;  %v1891_v37 = vld [vmem:[%s8675_s1 + $0x630] sm:$0xff] }
 0x1ef   : > { %5034 = vmatprep.mubr.msk.f32.mxu1 %vm5761_vm8, %v8693_v7 }
 0x1f0   : > { %2246 = vmatmul.mubr.f32.gmra.mrb[98].mxu0 %v1840_v23 }
 0x1f1   : > { %2250 = vmatprep.mubr.f32.mxu0 %v1844_v22  ;;  %v1895_v22 = vld [vmem:[%s8675_s1 + $0x650] sm:$0xff] }
 0x1f2   : > { %5035 = vmatmul.mubr.f32.gmra.mrb[84].mxu1 %v1881_v35 }
 0x1f3   : > { %5037 = vmatprep.mubr.msk.f32.mxu1 %vm5761_vm8, %v8693_v7 }
 0x1f4   : > { %2251 = vmatmul.mubr.f32.gmra.mrb[100].mxu0 %v1843_v10  ;;  %v1932_v10 = vld [vmem:[%s8675_s1 + $0x778] sm:$0xff] }
 0x1f5   : > { %2255 = vmatprep.mubr.f32.mxu0 %v1847_v41  ;;  %v1894_v41 = vld [vmem:[%s8675_s1 + $0x648] sm:$0xff] }
 0x1f6   : > { %5038 = vmatmul.mubr.f32.gmra.mrb[86].mxu1 %v1884_v33 }
 0x1f7   : > { %5040 = vmatprep.mubr.msk.f32.mxu1 %vm5761_vm8, %v8693_v7 }
 0x1f8   : > { %2256 = vmatmul.mubr.f32.gmra.mrb[102].mxu0 %v1846_v28  ;;  %v1898_v28 = vld [vmem:[%s8675_s1 + $0x668] sm:$0xff] }
 0x1f9   : > { %2260 = vmatprep.mubr.f32.mxu0 %v1850_v30 }
 0x1fa   : > { %5041 = vmatmul.mubr.f32.gmra.mrb[88].mxu1 %v1887_v34  ;;  %v1935_v34 = vld [vmem:[%s8675_s1 + $0x790] sm:$0xff] }
 0x1fb   : > { %5043 = vmatprep.mubr.msk.f32.mxu1 %vm5761_vm8, %v8693_v7 }
 0x1fc   : > { %2261 = vmatmul.mubr.f32.gmra.mrb[104].mxu0 %v1849_v52  ;;  %v1897_v52 = vld [vmem:[%s8675_s1 + $0x660] sm:$0xff] }
 0x1fd   : > { %2265 = vmatprep.mubr.f32.mxu0 %v1853_v38 }
 0x1fe   : > { %5044 = vmatmul.mubr.f32.gmra.mrb[90].mxu1 %v1890_v44  ;;  %v1901_v44 = vld [vmem:[%s8675_s1 + $0x680] sm:$0xff] }
 0x1ff   : > { %5046 = vmatprep.mubr.msk.f32.mxu1 %vm5761_vm8, %v8693_v7 }
 0x200   : > { %2266 = vmatmul.mubr.f32.gmra.mrb[106].mxu0 %v1852_v36 }
 0x201   : > { %2270 = vmatprep.mubr.f32.mxu0 %v1856_v4  ;;  %v1900_v4 = vld [vmem:[%s8675_s1 + $0x678] sm:$0xff] }
 0x202   : > { %5047 = vmatmul.mubr.f32.gmra.mrb[92].mxu1 %v1893_v56 }
 0x203   : > { %5049 = vmatprep.mubr.msk.f32.mxu1 %vm5761_vm8, %v8693_v7 }
 0x204   : > { %2271 = vmatmul.mubr.f32.gmra.mrb[108].mxu0 %v1855_v25  ;;  %v1904_v25 = vld [vmem:[%s8675_s1 + $0x698] sm:$0xff] }
 0x205   : > { %2275 = vmatprep.mubr.f32.mxu0 %v1859_v62 }
 0x206   : > { %5050 = vmatmul.mubr.f32.gmra.mrb[94].mxu1 %v1896_v42  ;;  %v1903_v42 = vld [vmem:[%s8675_s1 + $0x690] sm:$0xff] }
 0x207   : > { %5052 = vmatprep.mubr.msk.f32.mxu1 %vm5761_vm8, %v8693_v7 }
 0x208   : > { %2276 = vmatmul.mubr.f32.gmra.mrb[110].mxu0 %v1858_v55 }
 0x209   : > { %2280 = vmatprep.mubr.f32.mxu0 %v1862_v40  ;;  %v1907_v40 = vld [vmem:[%s8675_s1 + $0x6b0] sm:$0xff] }
 0x20a   : > { %5053 = vmatmul.mubr.f32.gmra.mrb[96].mxu1 %v1899_v46 }
 0x20b   : > { %5055 = vmatprep.mubr.msk.f32.mxu1 %vm5761_vm8, %v8693_v7 }
 0x20c   : > { %2281 = vmatmul.mubr.f32.gmra.mrb[112].mxu0 %v1861_v8  ;;  %v1906_v8 = vld [vmem:[%s8675_s1 + $0x6a8] sm:$0xff] }
 0x20d   : > { %2285 = vmatprep.mubr.f32.mxu0 %v1865_v2 }
 0x20e   : > { %5056 = vmatmul.mubr.f32.gmra.mrb[98].mxu1 %v1902_v50  ;;  %v1910_v50 = vld [vmem:[%s8675_s1 + $0x6c8] sm:$0xff] }
 0x20f   : > { %5058 = vmatprep.mubr.msk.f32.mxu1 %vm5761_vm8, %v8693_v7 }
 0x210   : > { %2286 = vmatmul.mubr.f32.gmra.mrb[114].mxu0 %v1864_v61 }
 0x211   : > { %2290 = vmatprep.mubr.f32.mxu0 %v1868_v29  ;;  %v1909_v29 = vld [vmem:[%s8675_s1 + $0x6c0] sm:$0xff] }
 0x212   : > { %5059 = vmatmul.mubr.f32.gmra.mrb[100].mxu1 %v1905_v53 }
 0x213   : > { %5061 = vmatprep.mubr.msk.f32.mxu1 %vm5761_vm8, %v8693_v7 }
 0x214   : > { %2291 = vmatmul.mubr.f32.gmra.mrb[116].mxu0 %v1867_v57  ;;  %v1913_v57 = vld [vmem:[%s8675_s1 + $0x6e0] sm:$0xff] }
 0x215   : > { %2295 = vmatprep.mubr.f32.mxu0 %v1871_v32 }
 0x216   : > { %5062 = vmatmul.mubr.f32.gmra.mrb[102].mxu1 %v1908_v15  ;;  %v1912_v15 = vld [vmem:[%s8675_s1 + $0x6d8] sm:$0xff] }
 0x217   : > { %5064 = vmatprep.mubr.msk.f32.mxu1 %vm5761_vm8, %v8693_v7 }
 0x218   : > { %2296 = vmatmul.mubr.f32.gmra.mrb[118].mxu0 %v1870_v59 }
 0x219   : > { %2300 = vmatprep.mubr.f32.mxu0 %v1874_v47  ;;  %v1916_v47 = vld [vmem:[%s8675_s1 + $0x6f8] sm:$0xff] }
 0x21a   : > { %5065 = vmatmul.mubr.f32.gmra.mrb[104].mxu1 %v1911_v60 }
 0x21b   : > { %5067 = vmatprep.mubr.msk.f32.mxu1 %vm5761_vm8, %v8693_v7 }
 0x21c   : > { %2301 = vmatmul.mubr.f32.gmra.mrb[120].mxu0 %v1873_v9 }
 0x21d   : > { %2305 = vmatprep.mubr.f32.mxu0 %v1877_v45  ;;  %v7273_v14 = vpop.f32.mrb[0].mxu1 }
 0x21e   : > { %5068 = vmatmul.mubr.f32.gmra.mrb[106].mxu1 %v1914_v19  ;;  %v4910_v18 = vpop.f32.mrb[1].mxu1 }
 0x21f   : > { %5070 = vmatprep.mubr.msk.f32.mxu1 %vm5761_vm8, %v8693_v7  ;;  %v1919_v18 = vld [vmem:[%s8675_s1 + $0x710] sm:$0xff] }
 0x220   : > { %2306 = vmatmul.mubr.f32.gmra.mrb[122].mxu0 %v1876_v58  ;;  %v1915_v58 = vld [vmem:[%s8675_s1 + $0x6f0] sm:$0xff] }
 0x221   : > { %2310 = vmatprep.mubr.f32.mxu0 %v1880_v0  ;;  %v7286_v31 = vpop.f32.mrb[2].mxu1 }
 0x222   : > { %5071 = vmatmul.mubr.f32.gmra.mrb[108].mxu1 %v1917_v24  ;;  %v4913_v6 = vpop.f32.mrb[3].mxu1 }
 0x223   : > { %5073 = vmatprep.mubr.msk.f32.mxu1 %vm5761_vm8, %v8693_v7  ;;  %v1918_v6 = vld [vmem:[%s8675_s1 + $0x708] sm:$0xff] }
 0x224   : > { %2311 = vmatmul.mubr.f32.gmra.mrb[124].mxu0 %v1879_v5 }
 0x225   : > { %2315 = vmatprep.mubr.f32.mxu0 %v1883_v3  ;;  %v7299_v13 = vpop.f32.mrb[4].mxu1 }
 0x226   : > { %5074 = vmatmul.mubr.f32.gmra.mrb[110].mxu1 %v1920_v49  ;;  %v4916_v16 = vpop.f32.mrb[5].mxu1 }
 0x227   : > { %5076 = vmatprep.mubr.msk.f32.mxu1 %vm5761_vm8, %v8693_v7 }
 0x228   : > { %2316 = vmatmul.mubr.f32.gmra.mrb[126].mxu0 %v1882_v12  ;;  %v1922_v12 = vld [vmem:[%s8675_s1 + $0x728] sm:$0xff] }
 0x229   : > { %2320 = vmatprep.mubr.f32.mxu0 %v1886_v39  ;;  %v7312_v17 = vpop.f32.mrb[6].mxu1 }
 0x22a   : > { %5077 = vmatmul.mubr.f32.gmra.mrb[112].mxu1 %v1923_v27  ;;  %v4919_v51 = vpop.f32.mrb[7].mxu1 }
 0x22b   : > { %5079 = vmatprep.mubr.msk.f32.mxu1 %vm5761_vm8, %v8693_v7  ;;  %v1925_v51 = vld [vmem:[%s8675_s1 + $0x740] sm:$0xff] }
 0x22c   : > { %2321 = vmatmul.mubr.f32.gmra.mrb[128].mxu0 %v1885_v43  ;;  %v1921_v43 = vld [vmem:[%s8675_s1 + $0x720] sm:$0xff] }
 0x22d   : > { %2325 = vmatprep.mubr.f32.mxu0 %v1889_v54  ;;  %v7325_v20 = vpop.f32.mrb[8].mxu1 }
 0x22e   : > { %5080 = vmatmul.mubr.f32.gmra.mrb[114].mxu1 %v1926_v11  ;;  %v4922_v63 = vpop.f32.mrb[9].mxu1 }
 0x22f   : > { %5082 = vmatprep.mubr.msk.f32.mxu1 %vm5761_vm8, %v8693_v7  ;;  %v1924_v63 = vld [vmem:[%s8675_s1 + $0x738] sm:$0xff] }
 0x230   : > { %2326 = vmatmul.mubr.f32.gmra.mrb[130].mxu0 %v1888_v1 }
 0x231   : > { %2330 = vmatprep.mubr.f32.mxu0 %v1892_v26  ;;  %v7338_v23 = vpop.f32.mrb[10].mxu1 }
 0x232   : > { %5083 = vmatmul.mubr.f32.gmra.mrb[116].mxu1 %v1929_v21  ;;  %v4925_v35 = vpop.f32.mrb[11].mxu1 }
 0x233   : > { %5085 = vmatprep.mubr.msk.f32.mxu1 %vm5761_vm8, %v8693_v7 }
 0x234   : > { %2331 = vmatmul.mubr.f32.gmra.mrb[132].mxu0 %v1891_v37  ;;  %v1928_v37 = vld [vmem:[%s8675_s1 + $0x758] sm:$0xff] }
 0x235   : > { %2335 = vmatprep.mubr.f32.mxu0 %v1895_v22  ;;  %v7351_v33 = vpop.f32.mrb[12].mxu1 }
 0x236   : > { %5086 = vmatmul.mubr.f32.gmra.mrb[118].mxu1 %v1932_v10  ;;  %v4928_v30 = vpop.f32.mrb[13].mxu1 }
 0x237   : > { %5088 = vmatprep.mubr.msk.f32.mxu1 %vm5761_vm8, %v8693_v7  ;;  %v1931_v30 = vld [vmem:[%s8675_s1 + $0x770] sm:$0xff] }
 0x238   : > { %2336 = vmatmul.mubr.f32.gmra.mrb[134].mxu0 %v1894_v41  ;;  %v1927_v41 = vld [vmem:[%s8675_s1 + $0x750] sm:$0xff] }
 0x239   : > { %2340 = vmatprep.mubr.f32.mxu0 %v1898_v28  ;;  %v7364_v38 = vpop.f32.mrb[14].mxu1 }
 0x23a   : > { %5089 = vmatmul.mubr.f32.gmra.mrb[120].mxu1 %v1935_v34  ;;  %v4931_v36 = vpop.f32.mrb[15].mxu1 }
 0x23b   : > { %v1930_v36 = vld [vmem:[%s8675_s1 + $0x768] sm:$0xff] }
 0x23c   : > { %2341 = vmatmul.mubr.f32.gmra.mrb[136].mxu0 %v1897_v52 }
 0x23d   : > { %2345 = vmatprep.mubr.f32.mxu0 %v1901_v44  ;;  %v7372_v56 = vpop.f32.mrb[16].mxu1 }
 0x23e   : > { %v4934_v62 = vpop.f32.mrb[17].mxu1 }
 0x240   : > { %2346 = vmatmul.mubr.f32.gmra.mrb[138].mxu0 %v1900_v4 }
 0x241   : > { %2350 = vmatprep.mubr.f32.mxu0 %v1904_v25  ;;  %v7380_v55 = vpop.f32.mrb[18].mxu1  ;;  %v1934_v25 = vld [vmem:[%s8675_s1 + $0x788] sm:$0xff] }
 0x242   : > { %v4937_v46 = vpop.f32.mrb[19].mxu1 }
 0x243   : > { %v1933_v46 = vld [vmem:[%s8675_s1 + $0x780] sm:$0xff] }
 0x244   : > { %2351 = vmatmul.mubr.f32.gmra.mrb[140].mxu0 %v1903_v42 }
 0x245   : > { %2355 = vmatprep.mubr.f32.mxu0 %v1907_v40  ;;  %v7388_v2 = vpop.f32.mrb[20].mxu1 }
 0x246   : > { %v4940_v61 = vpop.f32.mrb[21].mxu1 }
 0x248   : > { %2356 = vmatmul.mubr.f32.gmra.mrb[142].mxu0 %v1906_v8 }
 0x249   : > { %2360 = vmatprep.mubr.f32.mxu0 %v1910_v50  ;;  %v7396_v53 = vpop.f32.mrb[22].mxu1 }
 0x24a   : > { %v4943_v32 = vpop.f32.mrb[23].mxu1 }
 0x24c   : > { %2361 = vmatmul.mubr.f32.gmra.mrb[144].mxu0 %v1909_v29 }
 0x24d   : > { %2365 = vmatprep.mubr.f32.mxu0 %v1913_v57  ;;  %v7404_v59 = vpop.f32.mrb[24].mxu1 }
 0x24e   : > { %v4946_v60 = vpop.f32.mrb[25].mxu1 }
 0x24f   : > { %v2102_v9 = vpop.f32.mrb[40].mxu0 }
 0x250   : > { %v7410_v45 = vadd.f32 %v7273_v14, %v2102_v9  ;;  %v2104_v19 = vpop.f32.mrb[41].mxu0  ;;  %2366 = vmatmul.mubr.f32.gmra.mrb[146].mxu0 %v1912_v15 }
 0x251   : > { %2370 = vmatprep.mubr.f32.mxu0 %v1916_v47  ;;  %v7415_v0 = vpop.f32.mrb[26].mxu1 }
 0x252   : > { %v4949_v24 = vpop.f32.mrb[27].mxu1 }
 0x253   : > { %v2107_v5 = vpop.f32.mrb[42].mxu0 }
 0x254   : > { %v7421_v3 = vadd.f32 %v7286_v31, %v2107_v5  ;;  %v2109_v14 = vpop.f32.mrb[43].mxu0  ;;  %2371 = vmatmul.mubr.f32.gmra.mrb[148].mxu0 %v1915_v58 }
 0x255   : > { %2375 = vmatprep.mubr.f32.mxu0 %v1919_v18  ;;  %v7426_v49 = vpop.f32.mrb[28].mxu1 }
 0x256   : > { %v4952_v39 = vpop.f32.mrb[29].mxu1 }
 0x257   : > { %v2112_v16 = vpop.f32.mrb[44].mxu0 }
 0x258   : > { %v7432_v27 = vadd.f32 %v7299_v13, %v2112_v16  ;;  %v2114_v31 = vpop.f32.mrb[45].mxu0  ;;  %2376 = vmatmul.mubr.f32.gmra.mrb[150].mxu0 %v1918_v6 }
 0x259   : > { %2380 = vmatprep.mubr.f32.mxu0 %v1922_v12  ;;  %v7437_v54 = vpop.f32.mrb[30].mxu1 }
 0x25a   : > { %v4955_v11 = vpop.f32.mrb[31].mxu1 }
 0x25b   : > { %v2117_v1 = vpop.f32.mrb[46].mxu0 }
 0x25c   : > { %v7443_v26 = vadd.f32 %v7312_v17, %v2117_v1  ;;  %v2119_v13 = vpop.f32.mrb[47].mxu0  ;;  %2381 = vmatmul.mubr.f32.gmra.mrb[152].mxu0 %v1921_v43 }
 0x25d   : > { %2385 = vmatprep.mubr.f32.mxu0 %v1925_v51  ;;  %v7448_v21 = vpop.f32.mrb[32].mxu1 }
 0x25e   : > { %v4958_v22 = vpop.f32.mrb[33].mxu1 }
 0x25f   : > { %v2122_v35 = vpop.f32.mrb[48].mxu0 }
 0x260   : > { %v7454_v10 = vadd.f32 %v7325_v20, %v2122_v35  ;;  %v2124_v17 = vpop.f32.mrb[49].mxu0  ;;  %2386 = vmatmul.mubr.f32.gmra.mrb[154].mxu0 %v1924_v63 }
 0x261   : > { %2390 = vmatprep.mubr.f32.mxu0 %v1928_v37  ;;  %v7459_v28 = vpop.f32.mrb[34].mxu1 }
 0x262   : > { %v4961_v34 = vpop.f32.mrb[35].mxu1 }
 0x263   : > { %v2127_v52 = vpop.f32.mrb[50].mxu0 }
 0x264   : > { %v7465_v44 = vadd.f32 %v7338_v23, %v2127_v52  ;;  %v2129_v20 = vpop.f32.mrb[51].mxu0  ;;  %2391 = vmatmul.mubr.f32.gmra.mrb[156].mxu0 %v1927_v41 }
 0x265   : > { %2395 = vmatprep.mubr.f32.mxu0 %v1931_v30  ;;  %v7470_v4 = vpop.f32.mrb[36].mxu1 }
 0x266   : > { %v4964_v62 = vpop.f32.mrb[37].mxu1 }
 0x267   : > { %v2132_v42 = vpop.f32.mrb[52].mxu0 }
 0x268   : > { %v7476_v40 = vadd.f32 %v7351_v33, %v2132_v42  ;;  %v2134_v23 = vpop.f32.mrb[53].mxu0  ;;  %2396 = vmatmul.mubr.f32.gmra.mrb[158].mxu0 %v1930_v36  ;;  %v1695_v33 = vld [vmem:[%s8675_s1 + $0x10] sm:$0xff] }
 0x269   : > { %2400 = vmatprep.mubr.f32.mxu0 %v1934_v25  ;;  %v7481_v8 = vpop.f32.mrb[38].mxu1 }
 0x26a   : > { %v4967_v50 = vpop.f32.mrb[39].mxu1 }
 0x26b   : > { %v2137_v61 = vpop.f32.mrb[54].mxu0 }
 0x26c   : > { %v7484_v29 = vadd.f32 %v7364_v38, %v2137_v61  ;;  %v2139_v57 = vpop.f32.mrb[55].mxu0  ;;  %2401 = vmatmul.mubr.f32.gmra.mrb[160].mxu0 %v1933_v46  ;;  %v1698_v38 = vld [vmem:[%s8675_s1 + $0x28] sm:$0xff] }
 0x26d   : > { %4848 = vmatprep.mubr.msk.f32.mxu0 %vm5761_vm8, %v8693_v7  ;;  %v7491_v32 = vpop.f32.mrb[40].mxu1 }
 0x26e   : > { %v4970_v15 = vpop.f32.mrb[41].mxu1 }
 0x26f   : > { %v2142_v47 = vpop.f32.mrb[56].mxu0 }
 0x270   : > { %v7494_v60 = vadd.f32 %v7372_v56, %v2142_v47  ;;  %v2144_v9 = vpop.f32.mrb[57].mxu0  ;;  %4849 = vmatmul.mubr.f32.vlgmr.msra.gmra.mrb[0].mxu0 %v1695_v33  ;;  %v1701_v56 = vld [vmem:[%s8675_s1 + $0x40] sm:$0xff] }
 0x271   : > { %4851 = vmatprep.mubr.msk.f32.mxu0 %vm5761_vm8, %v8693_v7  ;;  %v7501_v19 = vpop.f32.mrb[42].mxu1 }
 0x272   : > { %v4973_v58 = vpop.f32.mrb[43].mxu1 }
 0x273   : > { %v2147_v18 = vpop.f32.mrb[58].mxu0 }
 0x274   : > { %v7504_v24 = vadd.f32 %v7380_v55, %v2147_v18  ;;  %v2149_v5 = vpop.f32.mrb[59].mxu0  ;;  %4852 = vmatmul.mubr.f32.gmra.mrb[2].mxu0 %v1698_v38  ;;  %v1704_v55 = vld [vmem:[%s8675_s1 + $0x58] sm:$0xff] }
 0x275   : > { %4854 = vmatprep.mubr.msk.f32.mxu0 %vm5761_vm8, %v8693_v7  ;;  %v7511_v14 = vpop.f32.mrb[44].mxu1 }
 0x276   : > { %v4976_v6 = vpop.f32.mrb[45].mxu1 }
 0x277   : > { %v2152_v12 = vpop.f32.mrb[60].mxu0 }
 0x278   : > { %v7514_v39 = vadd.f32 %v7388_v2, %v2152_v12  ;;  %v2154_v16 = vpop.f32.mrb[61].mxu0  ;;  %4855 = vmatmul.mubr.f32.gmra.mrb[4].mxu0 %v1701_v56  ;;  %v1707_v2 = vld [vmem:[%s8675_s1 + $0x70] sm:$0xff] }
 0x279   : > { %4857 = vmatprep.mubr.msk.f32.mxu0 %vm5761_vm8, %v8693_v7  ;;  %v7521_v31 = vpop.f32.mrb[46].mxu1 }
 0x27a   : > { %v4979_v43 = vpop.f32.mrb[47].mxu1 }
 0x27b   : > { %v2157_v51 = vpop.f32.mrb[62].mxu0 }
 0x27c   : > { %v7524_v11 = vadd.f32 %v7396_v53, %v2157_v51  ;;  %v2159_v1 = vpop.f32.mrb[63].mxu0  ;;  %4858 = vmatmul.mubr.f32.gmra.mrb[6].mxu0 %v1704_v55  ;;  %v1710_v53 = vld [vmem:[%s8675_s1 + $0x88] sm:$0xff] }
 0x27d   : > { %4860 = vmatprep.mubr.msk.f32.mxu0 %vm5761_vm8, %v8693_v7  ;;  %v7531_v13 = vpop.f32.mrb[48].mxu1 }
 0x27e   : > { %v4982_v63 = vpop.f32.mrb[49].mxu1 }
 0x27f   : > { %v2162_v37 = vpop.f32.mrb[64].mxu0 }
 0x280   : > { %v7534_v22 = vadd.f32 %v7404_v59, %v2162_v37  ;;  %v2164_v35 = vpop.f32.mrb[65].mxu0  ;;  %4861 = vmatmul.mubr.f32.gmra.mrb[8].mxu0 %v1707_v2  ;;  %v1713_v59 = vld [vmem:[%s8675_s1 + $0xa0] sm:$0xff] }
 0x281   : > { %4863 = vmatprep.mubr.msk.f32.mxu0 %vm5761_vm8, %v8693_v7  ;;  %v7541_v17 = vpop.f32.mrb[50].mxu1 }
 0x282   : > { %v4985_v41 = vpop.f32.mrb[51].mxu1 }
 0x283   : > { %v2167_v30 = vpop.f32.mrb[66].mxu0 }
 0x284   : > { %v7544_v34 = vadd.f32 %v7415_v0, %v2167_v30  ;;  %v2169_v52 = vpop.f32.mrb[67].mxu0  ;;  %4864 = vmatmul.mubr.f32.gmra.mrb[10].mxu0 %v1710_v53  ;;  %v1716_v0 = vld [vmem:[%s8675_s1 + $0xb8] sm:$0xff]  ;;  %v3164_v30 = vld [vmem:[%s8676_s2 + $0x80] sm:$0xff] }
 0x285   : > { %4866 = vmatprep.mubr.msk.f32.mxu0 %vm5761_vm8, %v8693_v7  ;;  %v7551_v20 = vpop.f32.mrb[52].mxu1  ;;  %v3148_v52 = vld [vmem:[%s8676_s2] sm:$0xff] }
 0x286   : > { %v4988_v36 = vpop.f32.mrb[53].mxu1 }
 0x287   : > { %v2172_v25 = vpop.f32.mrb[68].mxu0 }
 0x288   : > { %v7554_v62 = vadd.f32 %v7426_v49, %v2172_v25  ;;  %v2174_v42 = vpop.f32.mrb[69].mxu0  ;;  %4867 = vmatmul.mubr.f32.gmra.mrb[12].mxu0 %v1713_v59  ;;  %v1719_v49 = vld [vmem:[%s8675_s1 + $0xd0] sm:$0xff]  ;;  %v3149_v25 = vld [vmem:[%s8676_s2 + $0x8] sm:$0xff] }
 0x289   : > { %4869 = vmatprep.mubr.msk.f32.mxu0 %vm5761_vm8, %v8693_v7  ;;  %v7561_v23 = vpop.f32.mrb[54].mxu1 }
 0x28a   : > { %v4991_v46 = vpop.f32.mrb[55].mxu1 }
 0x28b   : > { %v2177_v50 = vpop.f32.mrb[70].mxu0  ;;  %v5267_v46 = vpack.c.bf16 %v3149_v25, %v3148_v52 }
 0x28c   : > { %v7564_v61 = vadd.f32 %v7437_v54, %v2177_v50  ;;  %v2179_v57 = vpop.f32.mrb[71].mxu0  ;;  %4870 = vmatmul.mubr.f32.gmra.mrb[14].mxu0 %v1716_v0  ;;  %v1722_v54 = vld [vmem:[%s8675_s1 + $0xe8] sm:$0xff] }
 0x28d   : > { %4872 = vmatprep.mubr.msk.f32.mxu0 %vm5761_vm8, %v8693_v7  ;;  %v7571_v33 = vpop.f32.mrb[56].mxu1  ;;  %v1734_v50 = vld [vmem:[%s8675_s1 + $0x148] sm:$0xff] }
 0x28e   : > { %v4994_v15 = vpop.f32.mrb[57].mxu1 }
 0x28f   : > { %v2182_v47 = vpop.f32.mrb[72].mxu0 }
 0x290   : > { %v7574_v9 = vadd.f32 %v7448_v21, %v2182_v47  ;;  %v2184_v38 = vpop.f32.mrb[73].mxu0  ;;  %4873 = vmatmul.mubr.f32.gmra.mrb[16].mxu0 %v1719_v49  ;;  %v1725_v21 = vld [vmem:[%s8675_s1 + $0x100] sm:$0xff] }
 0x291   : > { %4875 = vmatprep.mubr.msk.f32.mxu0 %vm5761_vm8, %v8693_v7  ;;  %v7581_v58 = vpop.f32.mrb[58].mxu1  ;;  %v1737_v38 = vld [vmem:[%s8675_s1 + $0x160] sm:$0xff] }
 0x292   : > { %v4997_v18 = vpop.f32.mrb[59].mxu1 }
 0x293   : > { %v2187_v5 = vpop.f32.mrb[74].mxu0 }
 0x294   : > { %v7584_v56 = vadd.f32 %v7459_v28, %v2187_v5  ;;  %v2189_v6 = vpop.f32.mrb[75].mxu0  ;;  %4876 = vmatmul.mubr.f32.gmra.mrb[18].mxu0 %v1722_v54  ;;  %v1728_v28 = vld [vmem:[%s8675_s1 + $0x118] sm:$0xff] }
 0x295   : > { %4878 = vmatprep.mubr.msk.f32.mxu0 %vm5761_vm8, %v8693_v7  ;;  %v7591_v12 = vpop.f32.mrb[60].mxu1 }
 0x296   : > { %v5000_v16 = vpop.f32.mrb[61].mxu1 }
 0x297   : > { %v2192_v55 = vpop.f32.mrb[76].mxu0 }
 0x298   : > { %v7594_v43 = vadd.f32 %v7470_v4, %v2192_v55  ;;  %v2194_v51 = vpop.f32.mrb[77].mxu0  ;;  %4879 = vmatmul.mubr.f32.gmra.mrb[20].mxu0 %v1725_v21  ;;  %v1731_v4 = vld [vmem:[%s8675_s1 + $0x130] sm:$0xff] }
 0x299   : > { %4881 = vmatprep.mubr.msk.f32.mxu0 %vm5761_vm8, %v8693_v7  ;;  %v7601_v1 = vpop.f32.mrb[62].mxu1 }
 0x29a   : > { %v5003_v2 = vpop.f32.mrb[63].mxu1 }
 0x29b   : > { %v2197_v63 = vpop.f32.mrb[78].mxu0 }
 0x29c   : > { %v7604_v37 = vadd.f32 %v7481_v8, %v2197_v63  ;;  %v2199_v35 = vpop.f32.mrb[79].mxu0  ;;  %4882 = vmatmul.mubr.f32.gmra.mrb[22].mxu0 %v1728_v28  ;;  %v3165_v8 = vld [vmem:[%s8676_s2 + $0x88] sm:$0xff] }
 0x29d   : > { %4884 = vmatprep.mubr.msk.f32.mxu0 %vm5761_vm8, %v8693_v7  ;;  %v7611_v53 = vpop.f32.mrb[64].mxu1  ;;  %v5265_v36 = vpack.c.bf16 %v3165_v8, %v3164_v30 }
 0x29e   : > { %v5006_v41 = vpop.f32.mrb[65].mxu1 }
 0x29f   : > { %v2202_v59 = vpop.f32.mrb[80].mxu0  ;;  %5266 = vmatprep.subr.bf16.mxu1 %v5265_v36 }
 0x2a0   : > { %v7626_v42 = vadd.f32 %v7491_v32, %v2202_v59  ;;  %v2204_v0 = vpop.f32.mrb[81].mxu0  ;;  %4885 = vmatmul.mubr.f32.gmra.mrb[24].mxu0 %v1731_v4  ;;  %5268 = vmatpush3.bf16.msra.mxu1 %v5267_v46 }
 0x2a1   : > { %4887 = vmatprep.mubr.msk.f32.mxu0 %vm5761_vm8, %v8693_v7  ;;  %v7633_v57 = vpop.f32.mrb[66].mxu1 }
 0x2a2   : > { %v5009_v49 = vpop.f32.mrb[67].mxu1 }
 0x2a3   : > { %v2207_v15 = vpop.f32.mrb[82].mxu0 }
 0x2a4   : > { %v7636_v47 = vadd.f32 %v7501_v19, %v2207_v15  ;;  %v2209_v32 = vpop.f32.mrb[83].mxu0  ;;  %4888 = vmatmul.mubr.f32.gmra.mrb[26].mxu0 %v1734_v50  ;;  %v1740_v19 = vld [vmem:[%s8675_s1 + $0x178] sm:$0xff] }
 0x2a5   : > { %4890 = vmatprep.mubr.msk.f32.mxu0 %vm5761_vm8, %v8693_v7  ;;  %v7643_v54 = vpop.f32.mrb[68].mxu1 }
 0x2a6   : > { %8702 = vst [vmem:[#allocation11_spill] sm:$0xff] %v7636_v47  ;;  %v5012_v18 = vpop.f32.mrb[69].mxu1 }
 0x2a7   : > { %v2212_v5 = vpop.f32.mrb[84].mxu0 }
 0x2a8   : > { %v7646_v6 = vadd.f32 %v7511_v14, %v2212_v5  ;;  %v2214_v21 = vpop.f32.mrb[85].mxu0  ;;  %4891 = vmatmul.mubr.f32.gmra.mrb[28].mxu0 %v1737_v38  ;;  %v1743_v14 = vld [vmem:[%s8675_s1 + $0x190] sm:$0xff] }
 0x2a9   : > { %4893 = vmatprep.mubr.msk.f32.mxu0 %vm5761_vm8, %v8693_v7  ;;  %v7653_v16 = vpop.f32.mrb[70].mxu1 }
 0x2aa   : > { %8703 = vst [vmem:[#allocation12_spill] sm:$0xff] %v7646_v6  ;;  %v5015_v55 = vpop.f32.mrb[71].mxu1 }
 0x2ab   : > { %v2217_v51 = vpop.f32.mrb[86].mxu0  ;;  %v3150_v55 = vld [vmem:[%s8676_s2 + $0x10] sm:$0xff] }
 0x2ac   : > { %v7656_v28 = vadd.f32 %v7521_v31, %v2217_v51  ;;  %v2219_v2 = vpop.f32.mrb[87].mxu0  ;;  %4894 = vmatmul.mubr.f32.gmra.mrb[30].mxu0 %v1740_v19  ;;  %v1746_v31 = vld [vmem:[%s8675_s1 + $0x1a8] sm:$0xff]  ;;  %v3167_v19 = vld [vmem:[%s8676_s2 + $0x98] sm:$0xff] }
 0x2ad   : > { %4896 = vmatprep.mubr.msk.f32.mxu0 %vm5761_vm8, %v8693_v7  ;;  %v7663_v63 = vpop.f32.mrb[72].mxu1 }
 0x2ae   : > { %8704 = vst [vmem:[#allocation13_spill] sm:$0xff] %v7656_v28  ;;  %v5018_v35 = vpop.f32.mrb[73].mxu1 }
 0x2af   : > { %v2222_v4 = vpop.f32.mrb[88].mxu0 }
 0x2b0   : > { %v7666_v41 = vadd.f32 %v7531_v13, %v2222_v4  ;;  %v2224_v30 = vpop.f32.mrb[89].mxu0  ;;  %4897 = vmatmul.mubr.f32.gmra.mrb[32].mxu0 %v1743_v14  ;;  %v1749_v13 = vld [vmem:[%s8675_s1 + $0x1c0] sm:$0xff] }
 0x2b1   : > { %4899 = vmatprep.mubr.msk.f32.mxu0 %vm5761_vm8, %v8693_v7  ;;  %v7673_v8 = vpop.f32.mrb[74].mxu1 }
 0x2b2   : > { %8705 = vst [vmem:[#allocation14_spill] sm:$0xff] %v7666_v41  ;;  %v5021_v52 = vpop.f32.mrb[75].mxu1 }
 0x2b3   : > { %v2227_v59 = vpop.f32.mrb[90].mxu0 }
 0x2b4   : > { %v7676_v36 = vadd.f32 %v7541_v17, %v2227_v59  ;;  %v2229_v25 = vpop.f32.mrb[91].mxu0  ;;  %4900 = vmatmul.mubr.f32.gmra.mrb[34].mxu0 %v1746_v31  ;;  %v1752_v17 = vld [vmem:[%s8675_s1 + $0x1d8] sm:$0xff] }
 0x2b5   : > { %4902 = vmatprep.mubr.msk.f32.mxu0 %vm5761_vm8, %v8693_v7  ;;  %v7683_v0 = vpop.f32.mrb[76].mxu1 }
 0x2b6   : > { %v5024_v46 = vpop.f32.mrb[77].mxu1 }
 0x2b7   : > { %v2232_v50 = vpop.f32.mrb[92].mxu0 }
 0x2b8   : > { %v7686_v49 = vadd.f32 %v7551_v20, %v2232_v50  ;;  %v2234_v15 = vpop.f32.mrb[93].mxu0  ;;  %4903 = vmatmul.mubr.f32.gmra.mrb[36].mxu0 %v1749_v13  ;;  %v3166_v20 = vld [vmem:[%s8676_s2 + $0x90] sm:$0xff] }
 0x2b9   : > { %4905 = vmatprep.mubr.msk.f32.mxu0 %vm5761_vm8, %v8693_v7  ;;  %v7693_v32 = vpop.f32.mrb[78].mxu1  ;;  %v5269_v2 = vpack.c.bf16 %v3167_v19, %v3166_v20 }
 0x2ba   : > { %v5027_v38 = vpop.f32.mrb[79].mxu1 }
 0x2bb   : > { %v2237_v18 = vpop.f32.mrb[94].mxu0  ;;  %5270 = vmatprep.subr.bf16.mxu1 %v5269_v2 }
 0x2bc   : > { %v7696_v5 = vadd.f32 %v7561_v23, %v2237_v18  ;;  %v2239_v21 = vpop.f32.mrb[95].mxu0  ;;  %4906 = vmatmul.mubr.f32.gmra.mrb[38].mxu0 %v1752_v17  ;;  %v3151_v23 = vld [vmem:[%s8676_s2 + $0x18] sm:$0xff] }
 0x2bd   : > { %v7707_v51 = vpop.f32.mrb[80].mxu1  ;;  %v5271_v35 = vpack.c.bf16 %v3151_v23, %v3150_v55 }
 0x2be   : > { %v5030_v14 = vpop.f32.mrb[81].mxu1 }
 0x2bf   : > { %v2242_v4 = vpop.f32.mrb[96].mxu0  ;;  %5272 = vmatpush3.bf16.msra.mxu1 %v5271_v35 }
 0x2c0   : > { %v7713_v30 = vadd.f32 %v7571_v33, %v2242_v4  ;;  %v2244_v31 = vpop.f32.mrb[97].mxu0 }
 0x2c1   : > { %v7715_v52 = vpop.f32.mrb[82].mxu1 }
 0x2c2   : > { %v5033_v59 = vpop.f32.mrb[83].mxu1 }
 0x2c3   : > { %v2247_v25 = vpop.f32.mrb[98].mxu0 }
 0x2c4   : > { %v7718_v13 = vadd.f32 %v7581_v58, %v2247_v25  ;;  %v2249_v46 = vpop.f32.mrb[99].mxu0 }
 0x2c5   : > { %v7720_v50 = vpop.f32.mrb[84].mxu1 }
 0x2c6   : > { %v5036_v15 = vpop.f32.mrb[85].mxu1 }
 0x2c7   : > { %v2252_v17 = vpop.f32.mrb[100].mxu0 }
 0x2c8   : > { %v7723_v38 = vadd.f32 %v7591_v12, %v2252_v17  ;;  %v2254_v18 = vpop.f32.mrb[101].mxu0 }
 0x2c9   : > { %v7725_v33 = vpop.f32.mrb[86].mxu1 }
 0x2ca   : > { %v5039_v21 = vpop.f32.mrb[87].mxu1 }
 0x2cb   : > { %v2257_v20 = vpop.f32.mrb[102].mxu0  ;;  %v3169_v21 = vld [vmem:[%s8676_s2 + $0xa8] sm:$0xff] }
 0x2cc   : > { %v7728_v19 = vadd.f32 %v7601_v1, %v2257_v20  ;;  %v2259_v55 = vpop.f32.mrb[103].mxu0 }
 0x2cd   : > { %v7730_v2 = vpop.f32.mrb[88].mxu1 }
 0x2ce   : > { %v5042_v58 = vpop.f32.mrb[89].mxu1 }
 0x2cf   : > { %v2262_v23 = vpop.f32.mrb[104].mxu0 }
 0x2d0   : > { %v7733_v14 = vadd.f32 %v7611_v53, %v2262_v23  ;;  %v2264_v35 = vpop.f32.mrb[105].mxu0  ;;  %v3168_v53 = vld [vmem:[%s8676_s2 + $0xa0] sm:$0xff]  ;;  %v3153_v23 = vld [vmem:[%s8676_s2 + $0x28] sm:$0xff] }
 0x2d1   : > { %v7735_v4 = vpop.f32.mrb[90].mxu1 }
 0x2d2   : > { %v5045_v12 = vpop.f32.mrb[91].mxu1 }
 0x2d3   : > { %v2267_v31 = vpop.f32.mrb[106].mxu0 }
 0x2d4   : > { %v7738_v59 = vadd.f32 %v7633_v57, %v2267_v31  ;;  %v2269_v25 = vpop.f32.mrb[107].mxu0  ;;  %v5273_v57 = vpack.c.bf16 %v3169_v21, %v3168_v53 }
 0x2d5   : > { %v7740_v46 = vpop.f32.mrb[92].mxu1 }
 0x2d6   : > { %v5048_v1 = vpop.f32.mrb[93].mxu1  ;;  %5274 = vmatprep.subr.bf16.mxu1 %v5273_v57 }
 0x2d7   : > { %v2272_v15 = vpop.f32.mrb[108].mxu0 }
 0x2d8   : > { %v7743_v17 = vadd.f32 %v7643_v54, %v2272_v15  ;;  %v2274_v18 = vpop.f32.mrb[109].mxu0  ;;  %v3152_v54 = vld [vmem:[%s8676_s2 + $0x20] sm:$0xff] }
 0x2d9   : > { %v7751_v20 = vpop.f32.mrb[94].mxu1  ;;  %v5275_v31 = vpack.c.bf16 %v3153_v23, %v3152_v54 }
 0x2da   : > { %v5051_v55 = vpop.f32.mrb[95].mxu1 }
 0x2db   : > { %v2277_v58 = vpop.f32.mrb[110].mxu0  ;;  %5276 = vmatpush3.bf16.msra.mxu1 %v5275_v31 }
 0x2dc   : > { %v7760_v35 = vadd.f32 %v7653_v16, %v2277_v58  ;;  %v2279_v12 = vpop.f32.mrb[111].mxu0 }
 0x2dd   : > { %v7762_v25 = vpop.f32.mrb[96].mxu1 }
 0x2de   : > { %v5054_v1 = vpop.f32.mrb[97].mxu1 }
 0x2df   : > { %v2282_v15 = vpop.f32.mrb[112].mxu0 }
 0x2e0   : > { %v2753_v18 = vadd.f32 %v7663_v63, %v2282_v15  ;;  %v2284_v53 = vpop.f32.mrb[113].mxu0 }
 0x2e1   : > { %v7765_v21 = vpop.f32.mrb[98].mxu1 }
 0x2e2   : > { %v5566_v57 = vpack.i.bf16 %v7410_v45, %v2753_v18  ;;  %v5057_v55 = vpop.f32.mrb[99].mxu1 }
 0x2e3   : > { %v2287_v7 = vpop.f32.mrb[114].mxu0 }
 0x2e4   : > { %v2758_v41 = vadd.f32 %v7673_v8, %v2287_v7  ;;  %v2289_v16 = vpop.f32.mrb[115].mxu0  ;;  %5567 = vrot.lane.b32.xlu1 %v5566_v57, %s5762_s15 }
 0x2e5   : > { %v7770_v58 = vpop.f32.mrb[100].mxu1 }
 0x2e6   : > { %v5571_v54 = vpack.i.bf16 %v7421_v3, %v2758_v41  ;;  %v5060_v23 = vpop.f32.mrb[101].mxu1 }
 0x2e7   : > { %v2292_v12 = vpop.f32.mrb[116].mxu0 }
 0x2e8   : > { %v7774_v63 = vadd.f32 %v7683_v0, %v2292_v12  ;;  %v2294_v31 = vpop.f32.mrb[117].mxu0  ;;  %5572 = vrot.lane.b32.xlu0 %v5571_v54, %s5762_s15 }
 0x2e9   : > { %v7777_v45 = vpop.f32.mrb[102].mxu1 }
 0x2ea   : > { %v5063_v8 = vpop.f32.mrb[103].mxu1 }
 0x2eb   : > { %v2297_v1 = vpop.f32.mrb[118].mxu0 }
 0x2ec   : > { %v7782_v15 = vadd.f32 %v7693_v32, %v2297_v1  ;;  %v2299_v18 = vpop.f32.mrb[119].mxu0 }
 0x2ed   : > { %v7784_v3 = vpop.f32.mrb[104].mxu1 }
 0x2ee   : > { %v5066_v0 = vpop.f32.mrb[105].mxu1 }
 0x2ef   : > { %v2302_v53 = vpop.f32.mrb[120].mxu0 }
 0x2f0   : > { %v7789_v57 = vadd.f32 %v7707_v51, %v2302_v53  ;;  %v2304_v55 = vpop.f32.mrb[121].mxu0 }
 0x2f1   : > { %v7791_v16 = vpop.f32.mrb[106].mxu1  ;;  %v3170_v55 = vld [vmem:[%s8676_s2 + $0xb0] sm:$0xff] }
 0x2f2   : > { %v5069_v23 = vpop.f32.mrb[107].mxu1 }
 0x2f3   : > { %v2307_v32 = vpop.f32.mrb[122].mxu0  ;;  %v3154_v23 = vld [vmem:[%s8676_s2 + $0x30] sm:$0xff] }
 0x2f4   : > { %v7796_v12 = vadd.f32 %v7715_v52, %v2307_v32  ;;  %v2309_v31 = vpop.f32.mrb[123].mxu0  ;;  %v3171_v52 = vld [vmem:[%s8676_s2 + $0xb8] sm:$0xff] }
 0x2f5   : > { %v7798_v8 = vpop.f32.mrb[108].mxu1  ;;  %v5277_v31 = vpack.c.bf16 %v3171_v52, %v3170_v55 }
 0x2f6   : > { %v5072_v18 = vpop.f32.mrb[109].mxu1 }
 0x2f7   : > { %v2312_v51 = vpop.f32.mrb[124].mxu0  ;;  %5278 = vmatprep.subr.bf16.mxu1 %v5277_v31 }
 0x2f8   : > { %v7803_v0 = vadd.f32 %v7720_v50, %v2312_v51  ;;  %v2314_v53 = vpop.f32.mrb[125].mxu0  ;;  %v3155_v50 = vld [vmem:[%s8676_s2 + $0x38] sm:$0xff] }
 0x2f9   : > { %v7814_v32 = vpop.f32.mrb[110].mxu1  ;;  %v5279_v53 = vpack.c.bf16 %v3155_v50, %v3154_v23 }
 0x2fa   : > { %v5075_v51 = vpop.f32.mrb[111].mxu1 }
 0x2fb   : > { %v2317_v1 = vpop.f32.mrb[126].mxu0  ;;  %5280 = vmatpush3.bf16.msra.mxu1 %v5279_v53 }
 0x2fc   : > { %v2788_v54 = vadd.f32 %v7725_v33, %v2317_v1  ;;  %v2319_v41 = vpop.f32.mrb[127].mxu0 }
 0x2fd   : > { %v7822_v7 = vpop.f32.mrb[112].mxu1 }
 0x2fe   : > { %v5576_v28 = vpack.i.bf16 %v7484_v29, %v2788_v54  ;;  %v5078_v55 = vpop.f32.mrb[113].mxu1 }
 0x2ff   : > { %v2322_v52 = vpop.f32.mrb[128].mxu0 }
 0x300   : > { %v2793_v6 = vadd.f32 %v7730_v2, %v2322_v52  ;;  %v2324_v47 = vpop.f32.mrb[129].mxu0  ;;  %5577 = vrot.lane.b32.xlu1 %v5576_v28, %s5763_s24 }
 0x301   : > { %v7827_v51 = vpop.f32.mrb[114].mxu1 }
 0x302   : > { %v5581_v23 = vpack.i.bf16 %v7494_v60, %v2793_v6  ;;  %v5081_v31 = vpop.f32.mrb[115].mxu1 }
 0x303   : > { %v2327_v33 = vpop.f32.mrb[130].mxu0 }
 0x304   : > { %v2798_v41 = vadd.f32 %v7735_v4, %v2327_v33  ;;  %v2329_v1 = vpop.f32.mrb[131].mxu0  ;;  %5582 = vrot.lane.b32.xlu1 %v5581_v23, %s5763_s24 }
 0x305   : > { %v7832_v29 = vpop.f32.mrb[116].mxu1 }
 0x306   : > { %v5586_v54 = vpack.i.bf16 %v7504_v24, %v2798_v41  ;;  %v5084_v2 = vpop.f32.mrb[117].mxu1 }
 0x307   : > { %v2332_v47 = vpop.f32.mrb[132].mxu0 }
 0x308   : > { %v7836_v50 = vadd.f32 %v7740_v46, %v2332_v47  ;;  %v2334_v28 = vpop.f32.mrb[133].mxu0  ;;  %5587 = vrot.lane.b32.xlu0 %v5586_v54, %s5763_s24 }
 0x309   : > { %v7839_v60 = vpop.f32.mrb[118].mxu1  ;;  %v3172_v28 = vld [vmem:[%s8676_s2 + $0xc0] sm:$0xff] }
 0x30a   : > { %v5087_v4 = vpop.f32.mrb[119].mxu1 }
 0x30b   : > { %v2337_v53 = vpop.f32.mrb[134].mxu0  ;;  %v3156_v4 = vld [vmem:[%s8676_s2 + $0x40] sm:$0xff] }
 0x30c   : > { %v7844_v55 = vadd.f32 %v7751_v20, %v2337_v53  ;;  %v2339_v52 = vpop.f32.mrb[135].mxu0 }
 0x30d   : > { %v7846_v24 = vpop.f32.mrb[120].mxu1 }
 0x30e   : > { %v5090_v23 = vpop.f32.mrb[121].mxu1 }
 0x30f   : > { %v2342_v31 = vpop.f32.mrb[136].mxu0 }
 0x310   : > { %v7851_v33 = vadd.f32 %v7762_v25, %v2342_v31  ;;  %v2344_v41 = vpop.f32.mrb[137].mxu0  ;;  %v3173_v25 = vld [vmem:[%s8676_s2 + $0xc8] sm:$0xff] }
 0x311   : > { %v5281_v52 = vpack.c.bf16 %v3173_v25, %v3172_v28 }
 0x313   : > { %v2347_v54 = vpop.f32.mrb[138].mxu0  ;;  %5282 = vmatprep.subr.bf16.mxu1 %v5281_v52 }
 0x314   : > { %v7856_v2 = vadd.f32 %v7765_v21, %v2347_v54  ;;  %v2349_v20 = vpop.f32.mrb[139].mxu0  ;;  %v3157_v21 = vld [vmem:[%s8676_s2 + $0x48] sm:$0xff] }
 0x315   : > { %v5283_v41 = vpack.c.bf16 %v3157_v21, %v3156_v4 }
 0x317   : > { %v2352_v53 = vpop.f32.mrb[140].mxu0  ;;  %5284 = vmatpush3.bf16.msra.mxu1 %v5283_v41 }
 0x318   : > { %v7873_v23 = vadd.f32 %v7770_v58, %v2352_v53  ;;  %v2354_v31 = vpop.f32.mrb[141].mxu0 }
 0x31b   : > { %v2357_v20 = vpop.f32.mrb[142].mxu0 }
 0x31c   : > { %v7878_v18 = vadd.f32 %v7777_v45, %v2357_v20  ;;  %v2359_v47 = vpop.f32.mrb[143].mxu0 }
 0x31f   : > { %v2362_v25 = vpop.f32.mrb[144].mxu0 }
 0x320   : > { %v7883_v1 = vadd.f32 %v7784_v3, %v2362_v25  ;;  %v2364_v58 = vpop.f32.mrb[145].mxu0 }
 0x321   : > { %v3158_v58 = vld [vmem:[%s8676_s2 + $0x50] sm:$0xff] }
 0x323   : > { %v2367_v53 = vpop.f32.mrb[146].mxu0 }
 0x324   : > { %v7886_v4 = vadd.f32 %v7791_v16, %v2367_v53  ;;  %v2369_v52 = vpop.f32.mrb[147].mxu0  ;;  %v3174_v16 = vld [vmem:[%s8676_s2 + $0xd0] sm:$0xff] }
 0x325   : > { %v3177_v52 = vld [vmem:[%s8676_s2 + $0xe8] sm:$0xff] }
 0x327   : > { %v2372_v21 = vpop.f32.mrb[148].mxu0 }
 0x328   : > { %v7889_v31 = vadd.f32 %v7798_v8, %v2372_v21  ;;  %v2374_v45 = vpop.f32.mrb[149].mxu0  ;;  %v3175_v8 = vld [vmem:[%s8676_s2 + $0xd8] sm:$0xff] }
 0x329   : > { %v5285_v53 = vpack.c.bf16 %v3175_v8, %v3174_v16  ;;  %v3161_v16 = vld [vmem:[%s8676_s2 + $0x68] sm:$0xff] }
 0x32b   : > { %v2377_v41 = vpop.f32.mrb[150].mxu0  ;;  %5286 = vmatprep.subr.bf16.mxu1 %v5285_v53 }
 0x32c   : > { %v7892_v47 = vadd.f32 %v7814_v32, %v2377_v41  ;;  %v2379_v20 = vpop.f32.mrb[151].mxu0 }
 0x32f   : > { %v2382_v28 = vpop.f32.mrb[152].mxu0 }
 0x330   : > { %v7895_v3 = vadd.f32 %v7822_v7, %v2382_v28  ;;  %v2384_v25 = vpop.f32.mrb[153].mxu0  ;;  %v3159_v7 = vld [vmem:[%s8676_s2 + $0x58] sm:$0xff]  ;;  %v3176_v28 = vld [vmem:[%s8676_s2 + $0xe0] sm:$0xff] }
 0x331   : > { %v5287_v41 = vpack.c.bf16 %v3159_v7, %v3158_v58  ;;  %v5289_v20 = vpack.c.bf16 %v3177_v52, %v3176_v28  ;;  %v3160_v25 = vld [vmem:[%s8676_s2 + $0x60] sm:$0xff] }
 0x332   : > { %8706 = vst [vmem:[#allocation15_spill] sm:$0xff] %v7895_v3  ;;  %v5291_v8 = vpack.c.bf16 %v3161_v16, %v3160_v25 }
 0x333   : > { %v2387_v32 = vpop.f32.mrb[154].mxu0  ;;  %5288 = vmatpush3.bf16.msra.mxu1 %v5287_v41 }
 0x334   : > { %v7916_v21 = vadd.f32 %v7827_v51, %v2387_v32  ;;  %v2389_v45 = vpop.f32.mrb[155].mxu0  ;;  %5290 = vmatprep.subr.bf16.mxu1 %v5289_v20 }
 0x336   : > { %8707 = vst [vmem:[#allocation16_spill] sm:$0xff] %v7916_v21 }
 0x337   : > { %v2392_v54 = vpop.f32.mrb[156].mxu0  ;;  %5292 = vmatpush3.bf16.msra.mxu1 %v5291_v8 }
 0x338   : > { %v7925_v46 = vadd.f32 %v7832_v29, %v2392_v54  ;;  %v2394_v51 = vpop.f32.mrb[157].mxu0 }
 0x33a   : > { %8708 = vst [vmem:[#allocation17_spill] sm:$0xff] %v7925_v46 }
 0x33b   : > { %v2397_v58 = vpop.f32.mrb[158].mxu0 }
 0x33c   : > { %v7928_v32 = vadd.f32 %v7839_v60, %v2397_v58  ;;  %v2399_v7 = vpop.f32.mrb[159].mxu0 }
 0x33e   : > { %8709 = vst [vmem:[#allocation18_spill] sm:$0xff] %v7928_v32 }
 0x33f   : > { %v2402_v28 = vpop.f32.mrb[160].mxu0 }
 0x340   : > { %v7931_v52 = vadd.f32 %v7846_v24, %v2402_v28  ;;  %v2404_v45 = vpop.f32.mrb[161].mxu0 }
 0x342   : > { %8710 = vst [vmem:[#allocation19_spill] sm:$0xff] %v7931_v52 }
 0x343   : > { %v7933_v53 = vpop.f32.mrb[0].mxu0 }
 0x344   : > { %v4850_v41 = vpop.f32.mrb[1].mxu0 }
 0x347   : > { %v7935_v25 = vpop.f32.mrb[2].mxu0 }
 0x348   : > { %v4853_v20 = vpop.f32.mrb[3].mxu0 }
 0x34b   : > { %v7937_v29 = vpop.f32.mrb[4].mxu0 }
 0x34c   : > { %v4856_v54 = vpop.f32.mrb[5].mxu0 }
 0x34f   : > { %v7939_v16 = vpop.f32.mrb[6].mxu0 }
 0x350   : > { %v4859_v8 = vpop.f32.mrb[7].mxu0 }
 0x351   : > { %v3178_v8 = vld [vmem:[%s8676_s2 + $0xf0] sm:$0xff] }
 0x353   : > { %v7941_v60 = vpop.f32.mrb[8].mxu0 }
 0x354   : > { %v4862_v51 = vpop.f32.mrb[9].mxu0 }
 0x355   : > { %v3179_v51 = vld [vmem:[%s8676_s2 + $0xf8] sm:$0xff] }
 0x357   : > { %v7943_v58 = vpop.f32.mrb[10].mxu0 }
 0x358   : > { %v4865_v24 = vpop.f32.mrb[11].mxu0 }
 0x359   : > { %v3162_v24 = vld [vmem:[%s8676_s2 + $0x70] sm:$0xff] }
 0x35b   : > { %v7945_v7 = vpop.f32.mrb[12].mxu0 }
 0x35c   : > { %v4868_v28 = vpop.f32.mrb[13].mxu0 }
 0x35d   : > { %v5293_v28 = vpack.c.bf16 %v3179_v51, %v3178_v8 }
 0x35f   : > { %v7947_v45 = vpop.f32.mrb[14].mxu0  ;;  %5294 = vmatprep.subr.bf16.mxu1 %v5293_v28 }
 0x360   : > { %v4871_v41 = vpop.f32.mrb[15].mxu0 }
 0x363   : > { %v7949_v6 = vpop.f32.mrb[16].mxu0 }
 0x364   : > { %v4874_v20 = vpop.f32.mrb[17].mxu0 }
 0x367   : > { %v2517_v52 = vpop.f32.mrb[18].mxu0 }
 0x368   : > { %v5591_v54 = vpack.i.bf16 %v2517_v52, %v7676_v36  ;;  %v4877_v32 = vpop.f32.mrb[19].mxu0  ;;  %v3163_v36 = vld [vmem:[%s8676_s2 + $0x78] sm:$0xff] }
 0x369   : > { %v5295_v52 = vpack.c.bf16 %v3163_v36, %v3162_v24 }
 0x36a   : > { %5592 = vrot.lane.b32.xlu0 %v5591_v54, %s5764_s14 }
 0x36b   : > { %v2522_v32 = vpop.f32.mrb[20].mxu0  ;;  %5296 = vmatpush3.bf16.msra.mxu1 %v5295_v52 }
 0x36c   : > { %v5596_v41 = vpack.i.bf16 %v2522_v32, %v7686_v49  ;;  %v4880_v20 = vpop.f32.mrb[21].mxu0  ;;  %5297 = vmatprep.subr.bf16.mxu1 %v8698_v48 }
 0x36e   : > { %5597 = vrot.lane.b32.xlu1 %v5596_v41, %s5764_s14 }
 0x36f   : > { %v2527_v46 = vpop.f32.mrb[22].mxu0 }
 0x370   : > { %v5601_v21 = vpack.i.bf16 %v2527_v46, %v7696_v5  ;;  %v4883_v54 = vpop.f32.mrb[23].mxu0 }
 0x372   : > { %5602 = vrot.lane.b32.xlu0 %v5601_v21, %s5764_s14 }
 0x373   : > { %v2532_v8 = vpop.f32.mrb[24].mxu0 }
 0x374   : > { %v5606_v51 = vpack.i.bf16 %v2532_v8, %v7713_v30  ;;  %v4886_v3 = vpop.f32.mrb[25].mxu0 }
 0x376   : > { %5607 = vrot.lane.b32.xlu1 %v5606_v51, %s5764_s14 }
 0x377   : > { %v2537_v49 = vpop.f32.mrb[26].mxu0 }
 0x378   : > { %v5626_v24 = vpack.i.bf16 %v2537_v49, %v7718_v13  ;;  %v4889_v28 = vpop.f32.mrb[27].mxu0 }
 0x37b   : > { %v2542_v36 = vpop.f32.mrb[28].mxu0 }
 0x37c   : > { %v5641_v32 = vpack.i.bf16 %v2542_v36, %v7723_v38  ;;  %v4892_v52 = vpop.f32.mrb[29].mxu0 }
 0x37f   : > { %v2547_v41 = vpop.f32.mrb[30].mxu0 }
 0x380   : > { %v5656_v5 = vpack.i.bf16 %v2547_v41, %v7728_v19  ;;  %v4895_v46 = vpop.f32.mrb[31].mxu0  ;;  %v8711_v19 = vpack.i.bf16 %v7514_v39, %v7836_v50  ;;  %v8714_v39 = vpack.i.bf16 %v7534_v22, %v7851_v33  ;;  %v8718_v22 = vpack.i.bf16 %v7554_v62, %v7873_v23  ;;  %v3180_v23 = vld [vmem:[%s8676_s2 + $0x100] sm:$0xff] }
 0x383   : > { %v2552_v20 = vpop.f32.mrb[32].mxu0 }
 0x384   : > { %v5671_v21 = vpack.i.bf16 %v2552_v20, %v7733_v14  ;;  %v4898_v54 = vpop.f32.mrb[33].mxu0  ;;  %v8712_v14 = vpack.i.bf16 %v7432_v27, %v7774_v63  ;;  %v8716_v27 = vpack.i.bf16 %v7454_v10, %v7789_v57  ;;  %v8720_v10 = vpack.i.bf16 %v7476_v40, %v7803_v0  ;;  %v8032_v63 = vpop.permute.xlu0 %5572 }
 0x387   : > { %v2557_v30 = vpop.f32.mrb[34].mxu0 }
 0x388   : > { %v5686_v3 = vpack.i.bf16 %v2557_v30, %v7738_v59  ;;  %v4901_v8 = vpop.f32.mrb[35].mxu0  ;;  %v8713_v59 = vpack.i.bf16 %v7524_v11, %v7844_v55  ;;  %v8717_v11 = vpack.i.bf16 %v7544_v34, %v7856_v2  ;;  %v8721_v34 = vpack.i.bf16 %v7564_v61, %v7878_v18 }
 0x38b   : > { %v2562_v51 = vpop.f32.mrb[36].mxu0 }
 0x38c   : > { %v5611_v13 = vpack.i.bf16 %v2562_v51, %v7743_v17  ;;  %v4904_v49 = vpop.f32.mrb[37].mxu0  ;;  %v8715_v17 = vpack.i.bf16 %v7443_v26, %v7782_v15  ;;  %v8719_v26 = vpack.i.bf16 %v7465_v44, %v7796_v12  ;;  %v8034_v44 = vpop.permute.xlu0 %5587 }
 0x38e   : > { %5612 = vrot.lane.b32.xlu1 %v5611_v13, %s5762_s15 }
 0x38f   : > { %v2567_v38 = vpop.f32.mrb[38].mxu0 }
 0x390   : > { %v5621_v28 = vpack.i.bf16 %v2567_v38, %v7760_v35  ;;  %v4907_v36 = vpop.f32.mrb[39].mxu0  ;;  %v8030_v35 = vpop.permute.xlu1 %5567 }
 0x391   : > { %v5570_v33 = vunpack.i.h.bf16 %v8030_v35  ;;  %v5569_v51 = vunpack.i.l.bf16 %v8030_v35  ;;  %v3183_v36 = vld [vmem:[%s8676_s2 + $0x118] sm:$0xff]  ;;  %v5589_v35 = vunpack.i.l.bf16 %v8034_v44 }
 0x392   : > { %5617 = vrot.lane.b32.xlu1 %v8711_v19, %s5763_s24  ;;  %5622 = vrot.lane.b32.xlu0 %v5621_v28, %s5762_s15 }
 0x394   : > { %v5578_v62 = vpop.permute.xlu1 %5577 }
 0x395   : > { %v5580_v2 = vunpack.i.h.bf16 %v5578_v62 }
 0x396   : > { %5632 = vrot.lane.b32.xlu1 %v8712_v14, %s5762_s15  ;;  %5627 = vrot.lane.b32.xlu0 %v5626_v24, %s5764_s14  ;;  %v3181_v24 = vld [vmem:[%s8676_s2 + $0x108] sm:$0xff] }
 0x397   : > { %v5298_v8 = vpack.c.bf16 %v3181_v24, %v3180_v23 }
 0x398   : > { %v5583_v15 = vpop.permute.xlu1 %5582 }
 0x399   : > { %v5585_v19 = vunpack.i.h.bf16 %v5583_v15  ;;  %v5584_v14 = vunpack.i.l.bf16 %v5583_v15 }
 0x39a   : > { %5642 = vrot.lane.b32.xlu1 %v5641_v32, %s5764_s14  ;;  %5637 = vrot.lane.b32.xlu0 %v8713_v59, %s5763_s24  ;;  %v5579_v32 = vunpack.i.l.bf16 %v5578_v62 }
 0x39e   : > { %5652 = vrot.lane.b32.xlu1 %v8714_v39, %s5763_s24  ;;  %5647 = vrot.lane.b32.xlu0 %v8715_v17, %s5762_s15 }
 0x3a2   : > { %5662 = vrot.lane.b32.xlu1 %v8716_v27, %s5762_s15  ;;  %5657 = vrot.lane.b32.xlu0 %v5656_v5, %s5764_s14 }
 0x3a6   : > { %5672 = vrot.lane.b32.xlu1 %v5671_v21, %s5764_s14  ;;  %5667 = vrot.lane.b32.xlu0 %v8717_v11, %s5763_s24 }
 0x3aa   : > { %5682 = vrot.lane.b32.xlu1 %v8718_v22, %s5763_s24  ;;  %5677 = vrot.lane.b32.xlu0 %v8719_v26, %s5762_s15 }
 0x3ae   : > { %5692 = vrot.lane.b32.xlu1 %v8720_v10, %s5762_s15  ;;  %5687 = vrot.lane.b32.xlu0 %v5686_v3, %s5764_s14 }
 0x3b2   : > { %5697 = vrot.lane.b32.xlu0 %v8721_v34, %s5763_s24 }
 0x3dc   : > { %v5593_v12 = vpop.permute.xlu0 %5592 }
 0x3dd   : > { %v5595_v40 = vunpack.i.h.bf16 %v5593_v12  ;;  %v5594_v55 = vunpack.i.l.bf16 %v5593_v12 }
 0x3df   : > { %v3092_v52 = vsel %vm1068_vm1, %v7933_v53, %v5595_v40  ;;  %v3121_v54 = vsel %vm1068_vm1, %v7574_v9, %v5594_v55  ;;  %v3182_v9 = vld [vmem:[%s8676_s2 + $0x110] sm:$0xff] }
 0x3e0   : > { %v5598_v57 = vpop.permute.xlu1 %5597  ;;  %v5301_v34 = vpack.c.bf16 %v3183_v36, %v3182_v9 }
 0x3e1   : > { %v5600_v46 = vunpack.i.h.bf16 %v5598_v57  ;;  %v5599_v20 = vunpack.i.l.bf16 %v5598_v57 }
 0x3e3   : > { %v3122_v27 = vsel %vm1068_vm1, %v7584_v56, %v5599_v20 }
 0x3e4   : > { %v5603_v0 = vpop.permute.xlu0 %5602 }
 0x3e5   : > { %v5604_v61 = vunpack.i.l.bf16 %v5603_v0  ;;  %v5605_v21 = vunpack.i.h.bf16 %v5603_v0 }
 0x3e7   : > { %v3123_v28 = vsel %vm1068_vm1, %v7594_v43, %v5604_v61  ;;  %v3093_v43 = vsel %vm1068_vm1, %v7935_v25, %v5600_v46  ;;  %v3094_v11 = vsel %vm1068_vm1, %v7937_v29, %v5605_v21  ;;  %v5590_v25 = vunpack.i.h.bf16 %v8034_v44 }
 0x3e8   : > { %v8036_v50 = vpop.permute.xlu1 %5607  ;;  %v3132_v10 = vsel %vm3101_vm14, %v3123_v28, %v5569_v51  ;;  %v3104_v12 = vsel %vm3101_vm14, %v3094_v11, %v5570_v33  ;;  %v5574_v61 = vunpack.i.l.bf16 %v8032_v63  ;;  %v5575_v44 = vunpack.i.h.bf16 %v8032_v63  ;;  %v8722_v28 = vld [vmem:[#allocation11_spill] sm:$0xff] }
 0x3e9   : > { %v5609_v17 = vunpack.i.l.bf16 %v8036_v50  ;;  %v5610_v29 = vunpack.i.h.bf16 %v8036_v50  ;;  %v3141_v55 = vsel %vm3111_vm15, %v3132_v10, %v5589_v35  ;;  %v3114_v33 = vsel %vm3111_vm15, %v3104_v12, %v5590_v25 }
 0x400   : > { %v5613_v18 = vpop.permute.xlu1 %5612 }
 0x401   : > { %v5615_v41 = vunpack.i.h.bf16 %v5613_v18  ;;  %v5614_v5 = vunpack.i.l.bf16 %v5613_v18 }
 0x403   : > { %v3102_v30 = vsel %vm3101_vm14, %v3092_v52, %v5615_v41  ;;  %v3130_v3 = vsel %vm3101_vm14, %v3121_v54, %v5614_v5 }
 0x404   : > { %v8052_v13 = vpop.permute.xlu1 %5617  ;;  %v5623_v49 = vpop.permute.xlu0 %5622  ;;  %v3139_v53 = vsel %vm3111_vm15, %v3130_v3, %v5579_v32  ;;  %v3112_v38 = vsel %vm3111_vm15, %v3102_v30, %v5580_v2  ;;  %v3124_v2 = vsel %vm1068_vm1, %v7604_v37, %v5609_v17  ;;  %v3095_v37 = vsel %vm1068_vm1, %v7939_v16, %v5610_v29 }
 0x405   : > { %v5625_v59 = vunpack.i.h.bf16 %v5623_v49  ;;  %v5624_v39 = vunpack.i.l.bf16 %v5623_v49  ;;  %3282 = vmatprep.mubr.f32.mxu1 %v3139_v53  ;;  %v5619_v40 = vunpack.i.l.bf16 %v8052_v13  ;;  %v5620_v24 = vunpack.i.h.bf16 %v8052_v13 }
 0x406   : > { %3283 = vmatmul.mubr.f32.vlgmr.msra.gmra.mrb[122].mxu1 %v3112_v38  ;;  %v3133_v52 = vsel %vm3101_vm14, %v3124_v2, %v5574_v61  ;;  %v3105_v3 = vsel %vm3101_vm14, %v3095_v37, %v5575_v44 }
 0x407   : > { %v3131_v22 = vsel %vm3101_vm14, %v3122_v27, %v5624_v39  ;;  %v3103_v26 = vsel %vm3101_vm14, %v3093_v43, %v5625_v59  ;;  %5299 = vmatpush3.bf16.msra.mxu1 %v5298_v8  ;;  %v3142_v63 = vsel %vm3111_vm15, %v3133_v52, %v5619_v40  ;;  %v3115_v13 = vsel %vm3111_vm15, %v3105_v3, %v5620_v24  ;;  %v8725_v3 = vld [vmem:[#allocation14_spill] sm:$0xff] }
 0x408   : > { %v5633_v62 = vpop.permute.xlu1 %5632  ;;  %v5628_v15 = vpop.permute.xlu0 %5627  ;;  %v3140_v56 = vsel %vm3111_vm15, %v3131_v22, %v5584_v14  ;;  %v3113_v57 = vsel %vm3111_vm15, %v3103_v26, %v5585_v19  ;;  %5300 = vmatprep.subr.bf16.mxu1 %v8698_v48 }
 0x409   : > { %3287 = vmatprep.mubr.f32.mxu1 %v3140_v56  ;;  %v5629_v0 = vunpack.i.l.bf16 %v5628_v15  ;;  %v5630_v18 = vunpack.i.h.bf16 %v5628_v15  ;;  %v5634_v32 = vunpack.i.l.bf16 %v5633_v62  ;;  %v5635_v20 = vunpack.i.h.bf16 %v5633_v62 }
 0x40a   : > { %3288 = vmatmul.mubr.f32.gmra.mrb[124].mxu1 %v3113_v57 }
 0x40b   : > { %3292 = vmatprep.mubr.f32.mxu1 %v3141_v55  ;;  %5302 = vmatpush3.bf16.msra.mxu1 %v5301_v34  ;;  %v3125_v46 = vsel %vm1068_vm1, %v7626_v42, %v5629_v0  ;;  %v3096_v8 = vsel %vm1068_vm1, %v7941_v60, %v5630_v18  ;;  %v8723_v34 = vld [vmem:[#allocation12_spill] sm:$0xff] }
 0x40c   : > { %v5643_v50 = vpop.permute.xlu1 %5642  ;;  %v5638_v23 = vpop.permute.xlu0 %5637  ;;  %5303 = vmatprep.subr.bf16.mxu1 %v8698_v48  ;;  %v3134_v49 = vsel %vm3101_vm14, %v3125_v46, %v5634_v32  ;;  %v3106_v36 = vsel %vm3101_vm14, %v3096_v8, %v5635_v20 }
 0x40d   : > { %v5644_v41 = vunpack.i.l.bf16 %v5643_v50  ;;  %v5639_v5 = vunpack.i.l.bf16 %v5638_v23  ;;  %v5640_v21 = vunpack.i.h.bf16 %v5638_v23  ;;  %v5645_v51 = vunpack.i.h.bf16 %v5643_v50 }
 0x40e   : > { %3293 = vmatmul.mubr.f32.gmra.mrb[126].mxu1 %v3114_v33  ;;  %v8724_v33 = vld [vmem:[#allocation13_spill] sm:$0xff] }
 0x40f   : > { %3297 = vmatprep.mubr.f32.mxu1 %v3142_v63  ;;  %v3143_v42 = vsel %vm3111_vm15, %v3134_v49, %v5639_v5  ;;  %v3126_v9 = vsel %vm1068_vm1, %v8722_v28, %v5644_v41  ;;  %v3116_v59 = vsel %vm3111_vm15, %v3106_v36, %v5640_v21  ;;  %v3097_v43 = vsel %vm1068_vm1, %v7943_v58, %v5645_v51 }
 0x410   : > { %v5653_v54 = vpop.permute.xlu1 %5652  ;;  %v5648_v30 = vpop.permute.xlu0 %5647  ;;  %v8726_v28 = vmov 0.0  }
 0x411   : > { %v5649_v16 = vunpack.i.l.bf16 %v5648_v30  ;;  %v5654_v53 = vunpack.i.l.bf16 %v5653_v54  ;;  %v5650_v38 = vunpack.i.h.bf16 %v5648_v30  ;;  %v5655_v39 = vunpack.i.h.bf16 %v5653_v54 }
 0x412   : > { %3298 = vmatmul.mubr.f32.gmra.mrb[128].mxu1 %v3115_v13 }
 0x413   : > { %3302 = vmatprep.mubr.f32.mxu1 %v3143_v42  ;;  %v3135_v19 = vsel %vm3101_vm14, %v3126_v9, %v5649_v16  ;;  %v3107_v26 = vsel %vm3101_vm14, %v3097_v43, %v5650_v38 }
 0x414   : > { %v5663_v60 = vpop.permute.xlu1 %5662  ;;  %v5658_v14 = vpop.permute.xlu0 %5657  ;;  %v3144_v22 = vsel %vm3111_vm15, %v3135_v19, %v5654_v53  ;;  %v3117_v58 = vsel %vm3111_vm15, %v3107_v26, %v5655_v39 }
 0x415   : > { %v5660_v17 = vunpack.i.h.bf16 %v5658_v14  ;;  %v5659_v27 = vunpack.i.l.bf16 %v5658_v14  ;;  %v5664_v11 = vunpack.i.l.bf16 %v5663_v60  ;;  %v5665_v10 = vunpack.i.h.bf16 %v5663_v60 }
 0x416   : > { %3303 = vmatmul.mubr.f32.gmra.mrb[130].mxu1 %v3116_v59 }
 0x417   : > { %3307 = vmatprep.mubr.f32.mxu1 %v3144_v22  ;;  %v3127_v35 = vsel %vm1068_vm1, %v8723_v34, %v5659_v27  ;;  %v3098_v56 = vsel %vm1068_vm1, %v7945_v7, %v5660_v17 }
 0x418   : > { %v5673_v62 = vpop.permute.xlu1 %5672  ;;  %v5668_v15 = vpop.permute.xlu0 %5667  ;;  %v3136_v40 = vsel %vm3101_vm14, %v3127_v35, %v5664_v11  ;;  %v3108_v55 = vsel %vm3101_vm14, %v3098_v56, %v5665_v10 }
 0x419   : > { %v5670_v57 = vunpack.i.h.bf16 %v5668_v15  ;;  %v5669_v25 = vunpack.i.l.bf16 %v5668_v15  ;;  %v5675_v29 = vunpack.i.h.bf16 %v5673_v62  ;;  %v5674_v12 = vunpack.i.l.bf16 %v5673_v62 }
 0x41a   : > { %3308 = vmatmul.mubr.f32.gmra.mrb[132].mxu1 %v3117_v58 }
 0x41b   : > { %v3145_v0 = vsel %vm3111_vm15, %v3136_v40, %v5669_v25  ;;  %v3118_v44 = vsel %vm3111_vm15, %v3108_v55, %v5670_v57  ;;  %v3128_v24 = vsel %vm1068_vm1, %v8724_v33, %v5674_v12  ;;  %v3099_v32 = vsel %vm1068_vm1, %v7947_v45, %v5675_v29  ;;  %v3438_v55 = vld [vmem:[#allocation4] sm:$0xff] }
 0x41c   : > { %v5683_v2 = vpop.permute.xlu1 %5682  ;;  %v5678_v61 = vpop.permute.xlu0 %5677  ;;  %3312 = vmatprep.mubr.f32.mxu1 %v3145_v0  ;;  %v8185_v0 = vld [vmem:[%s8677_s3] ss:$0 sm:$0xff]  ;;  %vm3447_vm0 = vcmp.gt.f32.partialorder %v3438_v55, 1.0 }
 0x41d   : > { %v5685_v18 = vunpack.i.h.bf16 %v5683_v2  ;;  %v5684_v7 = vunpack.i.l.bf16 %v5683_v2  ;;  %v5680_v50 = vunpack.i.h.bf16 %v5678_v61  ;;  %v5679_v23 = vunpack.i.l.bf16 %v5678_v61 }
 0x41e   : > { %3313 = vmatmul.mubr.f32.gmra.mrb[134].mxu1 %v3118_v44 }
 0x41f   : > { %v3137_v52 = vsel %vm3101_vm14, %v3128_v24, %v5679_v23  ;;  %v3109_v37 = vsel %vm3101_vm14, %v3099_v32, %v5680_v50  ;;  %v3439_v50 = vld [vmem:[#allocation4 + $0x8] sm:$0xff]  ;;  %v4498_v24 = vsel %vm3447_vm0, 1.0, %v8726_v28 }
 0x420   : > { %v5693_v41 = vpop.permute.xlu1 %5692  ;;  %v5688_v5 = vpop.permute.xlu0 %5687  ;;  %v3146_v63 = vsel %vm3111_vm15, %v3137_v52, %v5684_v7  ;;  %v3119_v46 = vsel %vm3111_vm15, %v3109_v37, %v5685_v18  ;;  %v3474_v18 = vmul.f32 0.9, %v3438_v55  ;;  %vm3448_vm2 = vcmp.gt.f32.partialorder %v3439_v50, 1.0  ;;  %v3445_v55 = vld [vmem:[#allocation4 + $0x38] sm:$0xff] }
 0x421   : > { %v5690_v20 = vunpack.i.h.bf16 %v5688_v5  ;;  %v5689_v21 = vunpack.i.l.bf16 %v5688_v5  ;;  %3317 = vmatprep.mubr.f32.mxu1 %v3146_v63  ;;  %v5695_v54 = vunpack.i.h.bf16 %v5693_v41  ;;  %v5694_v30 = vunpack.i.l.bf16 %v5693_v41  ;;  %v3440_v5 = vld [vmem:[#allocation4 + $0x10] sm:$0xff] }
 0x422   : > { %3318 = vmatmul.mubr.f32.gmra.mrb[136].mxu1 %v3119_v46  ;;  %v3475_v37 = vmul.f32 0.9, %v3439_v50  ;;  %vm3449_vm3 = vcmp.gt.f32.partialorder %v3440_v5, 1.0 }
 0x423   : > { %v3129_v8 = vsel %vm1068_vm1, %v8725_v3, %v5689_v21  ;;  %v3100_v45 = vsel %vm1068_vm1, %v7949_v6, %v5690_v20  ;;  %v8727_v6 = vld [vmem:[#allocation15_spill] sm:$0xff]  ;;  %v4499_v21 = vsel %vm3448_vm2, 1.0, %v8726_v28  ;;  %v3476_v3 = vmul.f32 0.9, %v3440_v5 }
 0x424   : > { %v5698_v51 = vpop.permute.xlu0 %5697  ;;  %v3138_v49 = vsel %vm3101_vm14, %v3129_v8, %v5694_v30  ;;  %v3110_v53 = vsel %vm3101_vm14, %v3100_v45, %v5695_v54  ;;  %v3441_v8 = vld [vmem:[#allocation4 + $0x18] sm:$0xff]  ;;  %vm3454_vm2 = vcmp.gt.f32.partialorder %v3445_v55, 1.0 }
 0x425   : > { %v5700_v16 = vunpack.i.h.bf16 %v5698_v51  ;;  %v5699_v13 = vunpack.i.l.bf16 %v5698_v51  ;;  %vm3450_vm4 = vcmp.gt.f32.partialorder %v3441_v8, 1.0  ;;  %v4505_v5 = vsel %vm3454_vm2, 1.0, %v8726_v28 }
 0x427   : > { %v3147_v38 = vsel %vm3111_vm15, %v3138_v49, %v5699_v13  ;;  %v3120_v42 = vsel %vm3111_vm15, %v3110_v53, %v5700_v16  ;;  %v4500_v49 = vsel %vm3449_vm3, 1.0, %v8726_v28  ;;  %v3477_v53 = vmul.f32 0.9, %v3441_v8 }
 0x428   : > { %3322 = vmatprep.mubr.f32.mxu1 %v3147_v38 }
 0x429   : > { %3323 = vmatmul.mubr.f32.gmra.mrb[138].mxu1 %v3120_v42 }
 0x42a   : > { %5099 = vmatprep.mubr.msk.f32.mxu1 %vm5761_vm8, %v8726_v28 }
 0x42d   : > { %5100 = vmatmul.mubr.msk.f32.vlgmr.msra.gmra.mrb[140].mxu1 %vm1068_vm1, %v7883_v1  ;;  %v8728_v1 = vld [vmem:[#allocation16_spill] sm:$0xff] }
 0x42e   : > { %5102 = vmatprep.mubr.msk.f32.mxu1 %vm5761_vm8, %v8726_v28 }
 0x431   : > { %5103 = vmatmul.mubr.msk.f32.gmra.mrb[142].mxu1 %vm1068_vm1, %v7886_v4  ;;  %v8729_v4 = vld [vmem:[#allocation17_spill] sm:$0xff] }
 0x432   : > { %5105 = vmatprep.mubr.msk.f32.mxu1 %vm5761_vm8, %v8726_v28 }
 0x435   : > { %5106 = vmatmul.mubr.msk.f32.gmra.mrb[144].mxu1 %vm1068_vm1, %v7889_v31  ;;  %v8730_v31 = vld [vmem:[#allocation18_spill] sm:$0xff] }
 0x436   : > { %5108 = vmatprep.mubr.msk.f32.mxu1 %vm5761_vm8, %v8726_v28 }
 0x439   : > { %5109 = vmatmul.mubr.msk.f32.gmra.mrb[146].mxu1 %vm1068_vm1, %v7892_v47  ;;  %v8731_v47 = vld [vmem:[#allocation19_spill] sm:$0xff] }
 0x43a   : > { %5111 = vmatprep.mubr.msk.f32.mxu1 %vm5761_vm8, %v8726_v28 }
 0x43d   : > { %5112 = vmatmul.mubr.msk.f32.gmra.mrb[148].mxu1 %vm1068_vm1, %v8727_v6 }
 0x43e   : > { %5114 = vmatprep.mubr.msk.f32.mxu1 %vm5761_vm8, %v8726_v28 }
 0x441   : > { %5115 = vmatmul.mubr.msk.f32.gmra.mrb[150].mxu1 %vm1068_vm1, %v8728_v1  ;;  %v3442_v1 = vld [vmem:[#allocation4 + $0x20] sm:$0xff] }
 0x442   : > { %5117 = vmatprep.mubr.msk.f32.mxu1 %vm5761_vm8, %v8726_v28  ;;  %vm3451_vm9 = vcmp.gt.f32.partialorder %v3442_v1, 1.0 }
 0x445   : > { %5118 = vmatmul.mubr.msk.f32.gmra.mrb[152].mxu1 %vm1068_vm1, %v8729_v4 }
 0x446   : > { %5120 = vmatprep.mubr.msk.f32.mxu1 %vm5761_vm8, %v8726_v28 }
 0x449   : > { %5121 = vmatmul.mubr.msk.f32.gmra.mrb[154].mxu1 %vm1068_vm1, %v8730_v31 }
 0x44a   : > { %5123 = vmatprep.mubr.msk.f32.mxu1 %vm5761_vm8, %v8726_v28 }
 0x44d   : > { %5124 = vmatmul.mubr.msk.f32.gmra.mrb[156].mxu1 %vm1068_vm1, %v8731_v47 }
 0x44e   : > { %5144 = vmatprep.mubr.msk.f32.mxu1 %vm5761_vm8, %v8726_v28 }
 0x4d9   : > { %v4678_v9 = vpop.f32.mrb[122].mxu1 }
 0x4da   : > { %v4679_v36 = vpop.f32.mrb[123].mxu1 }
 0x4db   : > { %v4680_v19 = vadd.f32 %v4679_v36, %v4678_v9  ;;  %v5765_v9 = vmov 1.0|1.0   ;;  %v4501_v36 = vsel %vm3450_vm4, 1.0, %v8726_v28 }
 0x4dd   : > { %v4681_v60 = vpop.f32.mrb[124].mxu1  ;;  %v3285_v44 = vadd.f32 %v4680_v19, %v8185_v0 }
 0x4de   : > { %v4682_v14 = vpop.f32.mrb[125].mxu1 }
 0x4df   : > { %v4683_v59 = vadd.f32 %v4682_v14, %v4681_v60  ;;  %v3478_v14 = vmul.f32 0.9, %v3442_v1  ;;  %v3730_v1 = vld [vmem:[%s8679_s5 + $0x80] sm:$0xff] }
 0x4e1   : > { %v4684_v39 = vpop.f32.mrb[126].mxu1  ;;  %v3290_v52 = vadd.f32 %v4683_v59, %v8185_v0  ;;  %v3443_v59 = vld [vmem:[#allocation4 + $0x28] sm:$0xff] }
 0x4e2   : > { %v4685_v17 = vpop.f32.mrb[127].mxu1  ;;  %vm3452_vm10 = vcmp.gt.f32.partialorder %v3443_v59, 1.0 }
 0x4e3   : > { %v4686_v27 = vadd.f32 %v4685_v17, %v4684_v39 }
 0x4e5   : > { %v4687_v43 = vpop.f32.mrb[128].mxu1  ;;  %v3295_v30 = vadd.f32 %v4686_v27, %v8185_v0 }
 0x4e6   : > { %v4688_v11 = vpop.f32.mrb[129].mxu1 }
 0x4e7   : > { %v4689_v22 = vadd.f32 %v4688_v11, %v4687_v43  ;;  %v4502_v11 = vsel %vm3451_vm9, 1.0, %v8726_v28 }
 0x4e9   : > { %v4690_v26 = vpop.f32.mrb[130].mxu1  ;;  %v3300_v42 = vadd.f32 %v4689_v22, %v8185_v0  ;;  %v3479_v22 = vmul.f32 0.9, %v3443_v59  ;;  %v3716_v59 = vld [vmem:[%s8679_s5 + $0x10] sm:$0xff] }
 0x4ea   : > { %v4691_v10 = vpop.f32.mrb[131].mxu1 }
 0x4eb   : > { %v8174_v34 = vadd.f32 %v4691_v10, %v4690_v26 }
 0x4ed   : > { %v4693_v35 = vpop.f32.mrb[132].mxu1  ;;  %v3305_v60 = vadd.f32 %v8174_v34, %v8185_v0 }
 0x4ee   : > { %v4694_v62 = vpop.f32.mrb[133].mxu1 }
 0x4ef   : > { %v8176_v15 = vadd.f32 %v4694_v62, %v4693_v35  ;;  %v3444_v35 = vld [vmem:[#allocation4 + $0x30] sm:$0xff] }
 0x4f0   : > { %vm3453_vm0 = vcmp.gt.f32.partialorder %v3444_v35, 1.0 }
 0x4f1   : > { %v4696_v56 = vpop.f32.mrb[134].mxu1  ;;  %v3310_v10 = vadd.f32 %v8176_v15, %v8185_v0  ;;  %v3480_v15 = vmul.f32 0.9, %v3444_v35  ;;  %v4504_v50 = vsel %vm3453_vm0, 1.0, %v8726_v28 }
 0x4f2   : > { %v4697_v57 = vpop.f32.mrb[135].mxu1 }
 0x4f3   : > { %v8178_v25 = vadd.f32 %v4697_v57, %v4696_v56 }
 0x4f5   : > { %v4699_v58 = vpop.f32.mrb[136].mxu1 }
 0x4f6   : > { %v4700_v29 = vpop.f32.mrb[137].mxu1 }
 0x4f7   : > { %v8180_v12 = vadd.f32 %v4700_v29, %v4699_v58  ;;  %v4503_v58 = vsel %vm3452_vm10, 1.0, %v8726_v28 }
 0x4fc   : > { %v4702_v40 = vpop.f32.mrb[138].mxu1 }
 0x4fd   : > { %v4703_v2 = vpop.f32.mrb[139].mxu1 }
 0x4fe   : > { %v8187_v61 = vadd.f32 %v4703_v2, %v4702_v40  ;;  %v3315_v40 = vadd.f32 %v8178_v25, %v8185_v0 }
 0x500   : > { %v3394_v7 = vpop.f32.mrb[140].mxu1 }
 0x501   : > { %v3395_v23 = vadd.f32 %v3394_v7, %v3285_v44  ;;  %v5101_v33 = vpop.f32.mrb[141].mxu1 }
 0x503   : > { %v3483_v32 = vadd.f32 %v3474_v18, %v3395_v23  ;;  %v3481_v23 = vmul.f32 0.9, %v3445_v55  ;;  %v3722_v55 = vld [vmem:[%s8679_s5 + $0x40] sm:$0xff] }
 0x504   : > { %v3399_v41 = vpop.f32.mrb[142].mxu1 }
 0x505   : > { %v3492_v63 = vsub.f32 %v3483_v32, %v4498_v24  ;;  %v3400_v46 = vadd.f32 %v3399_v41, %v3290_v52  ;;  %v5104_v20 = vpop.f32.mrb[143].mxu1  ;;  %v3320_v24 = vadd.f32 %v8180_v12, %v8185_v0  ;;  %v3446_v32 = vld [vmem:[#allocation4 + $0x40] sm:$0xff] }
 0x506   : > { %v3482_v12 = vmul.f32 0.9, %v3446_v32 }
 0x507   : > { %3528 = vst.msk [vmem:[#allocation4] sm:$0xff] %vm1068_vm1, %v3492_v63  ;;  %v3484_v54 = vadd.f32 %v3475_v37, %v3400_v46  ;;  %vm3501_vm5 = vcmp.gt.f32.partialorder %v3492_v63, 1.0  ;;  %v3325_v46 = vadd.f32 %v8187_v61, %v8185_v0  ;;  %v3537_v0 = vld [vmem:[%s8678_s4] sm:$0xff]  ;;  %v5766_v61 = vmov 1.0  }
 0x508   : > { %v3404_v45 = vpop.f32.mrb[144].mxu1 }
 0x509   : > { %v3493_v51 = vsub.f32 %v3484_v54, %v4499_v21  ;;  %v3405_v16 = vadd.f32 %v3404_v45, %v3295_v30  ;;  %v5107_v13 = vpop.f32.mrb[145].mxu1 }
 0x50a   : > { %v3540_v13 = vld [vmem:[%s8678_s4 + $0x18] sm:$0xff] }
 0x50b   : > { %vm3502_vm6 = vcmp.gt.f32.partialorder %v3493_v51, 1.0  ;;  %3529 = vst.msk [vmem:[#allocation4 + $0x8] sm:$0xff] %vm1068_vm1, %v3493_v51  ;;  %v3485_v38 = vadd.f32 %v3476_v3, %v3405_v16  ;;  %v3538_v51 = vld [vmem:[%s8678_s4 + $0x8] sm:$0xff]  ;;  %v3539_v16 = vld [vmem:[%s8678_s4 + $0x10] sm:$0xff] }
 0x50c   : > { %v3409_v6 = vpop.f32.mrb[146].mxu1  ;;  %vm5304_vm7 = vmpackc.low %vm3502_vm6, %vm3501_vm5  ;;  %vm3455_vm6 = vcmp.gt.f32.partialorder %v3446_v32, 1.0  ;;  %v3724_v32 = vld [vmem:[%s8679_s5 + $0x50] sm:$0xff] }
 0x50d   : > { %v3494_v4 = vsub.f32 %v3485_v38, %v4500_v49  ;;  %v3410_v31 = vadd.f32 %v3409_v6, %v3300_v42  ;;  %v5110_v47 = vpop.f32.mrb[147].mxu1  ;;  %5305 = vmatpush3.bf16.msk.msra.mxu1 %vm5304_vm7, %v5765_v9  ;;  %v4506_v3 = vsel %vm3455_vm6, 1.0, %v8726_v28  ;;  %v3541_v49 = vld [vmem:[%s8678_s4 + $0x20] sm:$0xff]  ;;  %v3543_v38 = vld [vmem:[%s8678_s4 + $0x30] sm:$0xff]  ;;  %v3544_v42 = vld [vmem:[%s8678_s4 + $0x38] sm:$0xff] }
 0x50e   : > { %5306 = vmatprep.subr.bf16.mxu1 %v8698_v48  ;;  %v3545_v6 = vld [vmem:[%s8678_s4 + $0x40] sm:$0xff] }
 0x50f   : > { %3530 = vst.msk [vmem:[#allocation4 + $0x10] sm:$0xff] %vm1068_vm1, %v3494_v4  ;;  %v3486_v19 = vadd.f32 %v3477_v53, %v3410_v31  ;;  %vm3503_vm11 = vcmp.gt.f32.partialorder %v3494_v4, 1.0  ;;  %v3542_v53 = vld [vmem:[%s8678_s4 + $0x28] sm:$0xff]  ;;  %v3714_v31 = vld [vmem:[%s8679_s5] sm:$0xff] }
 0x510   : > { %v3414_v39 = vpop.f32.mrb[148].mxu1  ;;  %v3731_v4 = vld [vmem:[%s8679_s5 + $0x88] sm:$0xff] }
 0x511   : > { %v3495_v17 = vsub.f32 %v3486_v19, %v4501_v36  ;;  %v3415_v27 = vadd.f32 %v3414_v39, %v3305_v60  ;;  %v5113_v43 = vpop.f32.mrb[149].mxu1  ;;  %v5315_v47 = vpack.c.bf16 %v3731_v4, %v3730_v1  ;;  %v3732_v36 = vld [vmem:[%s8679_s5 + $0x90] sm:$0xff]  ;;  %v3733_v19 = vld [vmem:[%s8679_s5 + $0x98] sm:$0xff] }
 0x512   : > { %v3717_v39 = vld [vmem:[%s8679_s5 + $0x18] sm:$0xff] }
 0x513   : > { %vm3504_vm12 = vcmp.gt.f32.partialorder %v3495_v17, 1.0  ;;  %3531 = vst.msk [vmem:[#allocation4 + $0x18] sm:$0xff] %vm1068_vm1, %v3495_v17  ;;  %v3487_v26 = vadd.f32 %v3478_v14, %v3415_v27  ;;  %v5319_v14 = vpack.c.bf16 %v3733_v19, %v3732_v36  ;;  %v3734_v17 = vld [vmem:[%s8679_s5 + $0xa0] sm:$0xff]  ;;  %v3735_v27 = vld [vmem:[%s8679_s5 + $0xa8] sm:$0xff]  ;;  %v5321_v43 = vpack.c.bf16 %v3717_v39, %v3716_v59 }
 0x514   : > { %v3419_v34 = vpop.f32.mrb[150].mxu1  ;;  %vm5307_vm13 = vmpackc.low %vm3504_vm12, %vm3503_vm11  ;;  %vm3546_vm12 = vcmask 588800  }
 0x515   : > { %v3496_v62 = vsub.f32 %v3487_v26, %v4502_v11  ;;  %v3420_v56 = vadd.f32 %v3419_v34, %v3310_v10  ;;  %v5116_v57 = vpop.f32.mrb[151].mxu1  ;;  %5308 = vmatpush3.bf16.msk.msra.mxu1 %vm5307_vm13, %v5765_v9  ;;  %v5323_v11 = vpack.c.bf16 %v3735_v27, %v3734_v17  ;;  %v3719_v26 = vld [vmem:[%s8679_s5 + $0x28] sm:$0xff]  ;;  %v3736_v10 = vld [vmem:[%s8679_s5 + $0xb0] sm:$0xff]  ;;  %v3737_v34 = vld [vmem:[%s8679_s5 + $0xb8] sm:$0xff] }
 0x516   : > { %5309 = vmatprep.subr.bf16.mxu1 %v8698_v48  ;;  %v3721_v57 = vld [vmem:[%s8679_s5 + $0x38] sm:$0xff] }
 0x517   : > { %3532 = vst.msk [vmem:[#allocation4 + $0x20] sm:$0xff] %vm1068_vm1, %v3496_v62  ;;  %v3488_v29 = vadd.f32 %v3479_v22, %v3420_v56  ;;  %vm3505_vm3 = vcmp.gt.f32.partialorder %v3496_v62, 1.0  ;;  %v3718_v22 = vld [vmem:[%s8679_s5 + $0x20] sm:$0xff]  ;;  %v5327_v62 = vpack.c.bf16 %v3737_v34, %v3736_v10  ;;  %v3720_v56 = vld [vmem:[%s8679_s5 + $0x30] sm:$0xff] }
 0x518   : > { %v3424_v2 = vpop.f32.mrb[152].mxu1  ;;  %v5325_v35 = vpack.c.bf16 %v3719_v26, %v3718_v22 }
 0x519   : > { %v3497_v44 = vsub.f32 %v3488_v29, %v4503_v58  ;;  %v3425_v18 = vadd.f32 %v3424_v2, %v3315_v40  ;;  %v5119_v7 = vpop.f32.mrb[153].mxu1  ;;  %v3738_v58 = vld [vmem:[%s8679_s5 + $0xc0] sm:$0xff]  ;;  %v3739_v29 = vld [vmem:[%s8679_s5 + $0xc8] sm:$0xff]  ;;  %v5329_v40 = vpack.c.bf16 %v3721_v57, %v3720_v56 }
 0x51a   : > { %v3723_v2 = vld [vmem:[%s8679_s5 + $0x48] sm:$0xff] }
 0x51b   : > { %vm3506_vm4 = vcmp.gt.f32.partialorder %v3497_v44, 1.0  ;;  %3533 = vst.msk [vmem:[#allocation4 + $0x28] sm:$0xff] %vm1068_vm1, %v3497_v44  ;;  %v3489_v33 = vadd.f32 %v3480_v15, %v3425_v18  ;;  %v5331_v15 = vpack.c.bf16 %v3739_v29, %v3738_v58  ;;  %v3740_v44 = vld [vmem:[%s8679_s5 + $0xd0] sm:$0xff]  ;;  %v3741_v18 = vld [vmem:[%s8679_s5 + $0xd8] sm:$0xff]  ;;  %v5333_v7 = vpack.c.bf16 %v3723_v2, %v3722_v55  ;;  %v3911_v2 = vld [vmem:[%s8681_s7] sm:$0xff] }
 0x51c   : > { %v3429_v25 = vpop.f32.mrb[154].mxu1  ;;  %vm5310_vm5 = vmpackc.low %vm3506_vm4, %vm3505_vm3 }
 0x51d   : > { %v3498_v52 = vsub.f32 %v3489_v33, %v4504_v50  ;;  %v3430_v37 = vadd.f32 %v3429_v25, %v3320_v24  ;;  %v5122_v41 = vpop.f32.mrb[155].mxu1  ;;  %5311 = vmatpush3.bf16.msk.msra.mxu1 %vm5310_vm5, %v5765_v9  ;;  %v5335_v50 = vpack.c.bf16 %v3741_v18, %v3740_v44  ;;  %v3912_v44 = vld [vmem:[%s8681_s7 + $0x8] sm:$0xff] }
 0x51e   : > { %5312 = vmatprep.subr.bf16.mxu1 %v8698_v48  ;;  %v5354_v18 = vpack.c.bf16 %v3912_v44, %v3911_v2  ;;  %v4043_v2 = vld [vmem:[%s8683_s9 + $0xa0] sm:$0xff]  ;;  %v4045_v44 = vld [vmem:[%s8683_s9 + $0xb0] sm:$0xff] }
 0x51f   : > { %3534 = vst.msk [vmem:[#allocation4 + $0x30] sm:$0xff] %vm1068_vm1, %v3498_v52  ;;  %v3490_v63 = vadd.f32 %v3481_v23, %v3430_v37  ;;  %vm3507_vm7 = vcmp.gt.f32.partialorder %v3498_v52, 1.0  ;;  %v3725_v52 = vld [vmem:[%s8679_s5 + $0x58] sm:$0xff] }
 0x520   : > { %v3434_v20 = vpop.f32.mrb[156].mxu1  ;;  %v5337_v41 = vpack.c.bf16 %v3725_v52, %v3724_v32  ;;  %v4534_v32 = vld [vmem:[%s8680_s6] ss:$0 sm:$0xff]  ;;  %v3900_v52 = vld [vmem:[#allocation5] sm:$0xff] }
 0x521   : > { %v3499_v21 = vsub.f32 %v3490_v63, %v4505_v5  ;;  %v3435_v54 = vadd.f32 %v3434_v20, %v3325_v46  ;;  %v5125_v30 = vpop.f32.mrb[157].mxu1  ;;  %v3742_v63 = vld [vmem:[%s8679_s5 + $0xe0] sm:$0xff]  ;;  %v3743_v46 = vld [vmem:[%s8679_s5 + $0xe8] sm:$0xff] }
 0x522   : > { %v3726_v20 = vld [vmem:[%s8679_s5 + $0x60] sm:$0xff] }
 0x523   : > { %vm3508_vm9 = vcmp.gt.f32.partialorder %v3499_v21, 1.0  ;;  %3535 = vst.msk [vmem:[#allocation4 + $0x38] sm:$0xff] %vm1068_vm1, %v3499_v21  ;;  %v3491_v8 = vadd.f32 %v3482_v12, %v3435_v54  ;;  %v5339_v12 = vpack.c.bf16 %v3743_v46, %v3742_v63  ;;  %v3727_v21 = vld [vmem:[%s8679_s5 + $0x68] sm:$0xff] }
 0x524   : > { %vm5313_vm10 = vmpackc.low %vm3508_vm9, %vm3507_vm7  ;;  %v5341_v30 = vpack.c.bf16 %v3727_v21, %v3726_v20 }
 0x525   : > { %v3500_v45 = vsub.f32 %v3491_v8, %v4506_v3  ;;  %5314 = vmatpush3.bf16.msk.msra.mxu1 %vm5313_vm10, %v5765_v9  ;;  %v3715_v9 = vld [vmem:[%s8679_s5 + $0x8] sm:$0xff]  ;;  %v3744_v8 = vld [vmem:[%s8679_s5 + $0xf0] sm:$0xff] }
 0x526   : > { %5142 = vmatprep.subr.mxu1 %v8726_v28  ;;  %v5317_v60 = vpack.c.bf16 %v3715_v9, %v3714_v31 }
 0x527   : > { %3536 = vst.msk [vmem:[#allocation4 + $0x40] sm:$0xff] %vm1068_vm1, %v3500_v45  ;;  %vm3509_vm11 = vcmp.gt.f32.partialorder %v3500_v45, 1.0  ;;  %v3745_v45 = vld [vmem:[%s8679_s5 + $0xf8] sm:$0xff] }
 0x529   : > { %5143 = vmatpush3.msk.msra.mxu1 %vm3509_vm11, %v5766_v61  ;;  %v3728_v61 = vld [vmem:[%s8679_s5 + $0x70] sm:$0xff] }
 0x52a   : > { %5145 = vmatmul.mubr.msk.f32.vlgmr.msra.gmra.mrb[158].mxu1 %vm3546_vm12, %v3537_v0  ;;  %5316 = vmatprep.subr.bf16.mxu1 %v5315_v47  ;;  %v5343_v0 = vpack.c.bf16 %v3745_v45, %v3744_v8 }
 0x52b   : > { %5147 = vmatprep.mubr.msk.f32.mxu1 %vm5761_vm8, %v8726_v28  ;;  %5318 = vmatpush3.bf16.msra.mxu1 %v5317_v60 }
 0x52c   : > { %5320 = vmatprep.subr.bf16.mxu1 %v5319_v14 }
 0x52e   : > { %5148 = vmatmul.mubr.msk.f32.gmra.mrb[160].mxu1 %vm3546_vm12, %v3538_v51  ;;  %v3729_v51 = vld [vmem:[%s8679_s5 + $0x78] sm:$0xff] }
 0x52f   : > { %5150 = vmatprep.mubr.msk.f32.mxu1 %vm5761_vm8, %v8726_v28  ;;  %5322 = vmatpush3.bf16.msra.mxu1 %v5321_v43  ;;  %v3746_v43 = vld [vmem:[%s8679_s5 + $0x100] sm:$0xff] }
 0x530   : > { %5324 = vmatprep.subr.bf16.mxu1 %v5323_v11  ;;  %v3747_v11 = vld [vmem:[%s8679_s5 + $0x108] sm:$0xff] }
 0x531   : > { %v5348_v57 = vpack.c.bf16 %v3747_v11, %v3746_v43  ;;  %v4038_v43 = vld [vmem:[%s8683_s9 + $0x78] sm:$0xff] }
 0x532   : > { %5151 = vmatmul.mubr.msk.f32.gmra.mrb[162].mxu1 %vm3546_vm12, %v3539_v16 }
 0x533   : > { %5153 = vmatprep.mubr.msk.f32.mxu1 %vm5761_vm8, %v8726_v28  ;;  %5326 = vmatpush3.bf16.msra.mxu1 %v5325_v35 }
 0x534   : > { %5328 = vmatprep.subr.bf16.mxu1 %v5327_v62 }
 0x536   : > { %5154 = vmatmul.mubr.msk.f32.gmra.mrb[164].mxu1 %vm3546_vm12, %v3540_v13  ;;  %v5345_v13 = vpack.c.bf16 %v3729_v51, %v3728_v61 }
 0x537   : > { %5156 = vmatprep.mubr.msk.f32.mxu1 %vm5761_vm8, %v8726_v28  ;;  %5330 = vmatpush3.bf16.msra.mxu1 %v5329_v40  ;;  %v3748_v40 = vld [vmem:[%s8679_s5 + $0x110] sm:$0xff] }
 0x538   : > { %5332 = vmatprep.subr.bf16.mxu1 %v5331_v15  ;;  %v3749_v15 = vld [vmem:[%s8679_s5 + $0x118] sm:$0xff] }
 0x539   : > { %v5351_v55 = vpack.c.bf16 %v3749_v15, %v3748_v40  ;;  %v4046_v40 = vld [vmem:[%s8683_s9 + $0xb8] sm:$0xff] }
 0x53a   : > { %5157 = vmatmul.mubr.msk.f32.gmra.mrb[166].mxu1 %vm3546_vm12, %v3541_v49 }
 0x53b   : > { %5159 = vmatprep.mubr.msk.f32.mxu1 %vm5761_vm8, %v8726_v28  ;;  %5334 = vmatpush3.bf16.msra.mxu1 %v5333_v7  ;;  %v3913_v7 = vld [vmem:[%s8681_s7 + $0x10] sm:$0xff] }
 0x53c   : > { %5336 = vmatprep.subr.bf16.mxu1 %v5335_v50  ;;  %v3914_v50 = vld [vmem:[%s8681_s7 + $0x18] sm:$0xff] }
 0x53e   : > { %5160 = vmatmul.mubr.msk.f32.gmra.mrb[168].mxu1 %vm3546_vm12, %v3542_v53 }
 0x53f   : > { %5162 = vmatprep.mubr.msk.f32.mxu1 %vm5761_vm8, %v8726_v28  ;;  %5338 = vmatpush3.bf16.msra.mxu1 %v5337_v41 }
 0x540   : > { %5340 = vmatprep.subr.bf16.mxu1 %v5339_v12 }
 0x542   : > { %5163 = vmatmul.mubr.msk.f32.gmra.mrb[170].mxu1 %vm3546_vm12, %v3543_v38 }
 0x543   : > { %5165 = vmatprep.mubr.msk.f32.mxu1 %vm5761_vm8, %v8726_v28  ;;  %5342 = vmatpush3.bf16.msra.mxu1 %v5341_v30 }
 0x544   : > { %5344 = vmatprep.subr.bf16.mxu1 %v5343_v0 }
 0x546   : > { %5166 = vmatmul.mubr.msk.f32.gmra.mrb[172].mxu1 %vm3546_vm12, %v3544_v42 }
 0x547   : > { %5168 = vmatprep.mubr.msk.f32.mxu1 %vm5761_vm8, %v8726_v28  ;;  %5346 = vmatpush3.bf16.msra.mxu1 %v5345_v13 }
 0x548   : > { %5347 = vmatprep.subr.bf16.mxu1 %v8698_v48 }
 0x54a   : > { %5169 = vmatmul.mubr.msk.f32.gmra.mrb[174].mxu1 %vm3546_vm12, %v3545_v6 }
 0x5fd   : > { %v3640_v23 = vpop.f32.mrb[158].mxu1 }
 0x5fe   : > { %v5146_v33 = vpop.f32.mrb[159].mxu1 }
 0x601   : > { %v3645_v24 = vpop.f32.mrb[160].mxu1 }
 0x602   : > { %v5149_v25 = vpop.f32.mrb[161].mxu1 }
 0x605   : > { %v3650_v37 = vpop.f32.mrb[162].mxu1 }
 0x606   : > { %v5152_v5 = vpop.f32.mrb[163].mxu1 }
 0x609   : > { %v3655_v54 = vpop.f32.mrb[164].mxu1 }
 0x60a   : > { %v5155_v3 = vpop.f32.mrb[165].mxu1 }
 0x60d   : > { %v3660_v16 = vpop.f32.mrb[166].mxu1 }
 0x60e   : > { %v5158_v49 = vpop.f32.mrb[167].mxu1 }
 0x60f   : > { %v4024_v49 = vld [vmem:[%s8683_s9 + $0x8] sm:$0xff] }
 0x611   : > { %v3665_v53 = vpop.f32.mrb[168].mxu1 }
 0x612   : > { %v5701_v38 = vpack.i.bf16 %v3645_v24, %v3665_v53  ;;  %v5161_v42 = vpop.f32.mrb[169].mxu1  ;;  %v4026_v53 = vld [vmem:[%s8683_s9 + $0x18] sm:$0xff] }
 0x613   : > { %v5359_v42 = vpack.c.bf16 %v4026_v53, %v4024_v49  ;;  %v4178_v49 = vld [vmem:[%s8685_s11 + $0x90] sm:$0xff]  ;;  %v4179_v53 = vld [vmem:[%s8685_s11 + $0x98] sm:$0xff] }
 0x614   : > { %5702 = vrot.lane.b32.xlu1 %v5701_v38, %s5764_s14  ;;  %v4023_v38 = vld [vmem:[%s8683_s9] sm:$0xff] }
 0x615   : > { %v3670_v6 = vpop.f32.mrb[170].mxu1 }
 0x616   : > { %v5706_v1 = vpack.i.bf16 %v3650_v37, %v3670_v6  ;;  %v5164_v4 = vpop.f32.mrb[171].mxu1  ;;  %v4025_v6 = vld [vmem:[%s8683_s9 + $0x10] sm:$0xff] }
 0x617   : > { %v4030_v4 = vld [vmem:[%s8683_s9 + $0x38] sm:$0xff] }
 0x618   : > { %5707 = vrot.lane.b32.xlu0 %v5706_v1, %s5762_s15  ;;  %v4028_v1 = vld [vmem:[%s8683_s9 + $0x28] sm:$0xff] }
 0x619   : > { %v3675_v31 = vpop.f32.mrb[172].mxu1 }
 0x61a   : > { %v5711_v47 = vpack.i.bf16 %v3655_v54, %v3675_v31  ;;  %v5167_v9 = vpop.f32.mrb[173].mxu1  ;;  %v4538_v54 = vld [vmem:[%s8682_s8] ss:$0 sm:$0xff]  ;;  %v5361_v31 = vpack.c.bf16 %v4025_v6, %v4023_v38 }
 0x61b   : > { %v4027_v9 = vld [vmem:[%s8683_s9 + $0x20] sm:$0xff] }
 0x61c   : > { %5712 = vrot.lane.b32.xlu1 %v5711_v47, %s5763_s24  ;;  %v5363_v47 = vpack.c.bf16 %v4030_v4, %v4028_v1  ;;  %v5395_v1 = vpack.c.bf16 %v4179_v53, %v4178_v49  ;;  %v4162_v4 = vld [vmem:[%s8685_s11 + $0x10] sm:$0xff] }
 0x61d   : > { %v3680_v36 = vpop.f32.mrb[174].mxu1 }
 0x61e   : > { %v5170_v19 = vpop.f32.mrb[175].mxu1 }
 0x61f   : > { %v4032_v19 = vld [vmem:[%s8683_s9 + $0x48] sm:$0xff] }
 0x686   : > { %v5703_v60 = vpop.permute.xlu1 %5702 }
 0x687   : > { %v5705_v59 = vunpack.i.h.bf16 %v5703_v60  ;;  %v5704_v39 = vunpack.i.l.bf16 %v5703_v60  ;;  %v4034_v60 = vld [vmem:[%s8683_s9 + $0x58] sm:$0xff] }
 0x689   : > { %v3708_v26 = vsel %vm1068_vm1, %v3640_v23, %v5705_v59  ;;  %v3711_v35 = vsel %vm1068_vm1, %v3660_v16, %v5704_v39  ;;  %v5357_v23 = vpack.c.bf16 %v3914_v50, %v3913_v7  ;;  %v5367_v59 = vpack.c.bf16 %v4034_v60, %v4032_v19  ;;  %v4031_v39 = vld [vmem:[%s8683_s9 + $0x40] sm:$0xff]  ;;  %v4050_v7 = vld [vmem:[%s8683_s9 + $0xd8] sm:$0xff] }
 0x68a   : > { %v5708_v14 = vpop.permute.xlu0 %5707  ;;  %v5381_v50 = vpack.c.bf16 %v4045_v44, %v4043_v2  ;;  %v4188_v44 = vld [vmem:[%s8685_s11 + $0xe0] sm:$0xff] }
 0x68b   : > { %v5710_v17 = vunpack.i.h.bf16 %v5708_v14  ;;  %v5709_v27 = vunpack.i.l.bf16 %v5708_v14 }
 0x68d   : > { %v3709_v62 = vsel %vm3101_vm14, %v3708_v26, %v5710_v17  ;;  %v3712_v56 = vsel %vm3101_vm14, %v3711_v35, %v5709_v27  ;;  %v4033_v17 = vld [vmem:[%s8683_s9 + $0x50] sm:$0xff]  ;;  %v4036_v27 = vld [vmem:[%s8683_s9 + $0x68] sm:$0xff]  ;;  %v4035_v26 = vld [vmem:[%s8683_s9 + $0x60] sm:$0xff] }
 0x68e   : > { %v5713_v22 = vpop.permute.xlu1 %5712  ;;  %v5369_v11 = vpack.c.bf16 %v4033_v17, %v4031_v39  ;;  %v4042_v35 = vld [vmem:[%s8683_s9 + $0x98] sm:$0xff]  ;;  %v4182_v39 = vld [vmem:[%s8685_s11 + $0xb0] sm:$0xff] }
 0x68f   : > { %v5715_v10 = vunpack.i.h.bf16 %v5713_v22  ;;  %v5714_v34 = vunpack.i.l.bf16 %v5713_v22  ;;  %v5371_v22 = vpack.c.bf16 %v4038_v43, %v4036_v27  ;;  %v4183_v17 = vld [vmem:[%s8685_s11 + $0xb8] sm:$0xff] }
 0x690   : > { %v5403_v43 = vpack.c.bf16 %v4183_v17, %v4182_v39 }
 0x691   : > { %v3713_v58 = vsel %vm3111_vm15, %v3712_v56, %v5714_v34  ;;  %v3710_v29 = vsel %vm3111_vm15, %v3709_v62, %v5715_v10  ;;  %v4037_v10 = vld [vmem:[%s8683_s9 + $0x70] sm:$0xff]  ;;  %v4040_v34 = vld [vmem:[%s8683_s9 + $0x88] sm:$0xff] }
 0x692   : > { %3824 = vmatprep.mubr.f32.mxu1 %v3713_v58  ;;  %v5373_v62 = vpack.c.bf16 %v4037_v10, %v4035_v26  ;;  %v5375_v56 = vpack.c.bf16 %v4042_v35, %v4040_v34  ;;  %v4041_v58 = vld [vmem:[%s8683_s9 + $0x90] sm:$0xff]  ;;  %v4184_v10 = vld [vmem:[%s8685_s11 + $0xc0] sm:$0xff]  ;;  %v4185_v34 = vld [vmem:[%s8685_s11 + $0xc8] sm:$0xff] }
 0x693   : > { %3825 = vmatmul.mubr.f32.vlgmr.msra.gmra.mrb[176].mxu1 %v3710_v29  ;;  %v4044_v29 = vld [vmem:[%s8683_s9 + $0xa8] sm:$0xff]  ;;  %v5407_v35 = vpack.c.bf16 %v4185_v34, %v4184_v10 }
 0x694   : > { %5349 = vmatpush3.bf16.msra.mxu1 %v5348_v57  ;;  %5179 = vmatprep.mubr.msk.f32.mxu1 %vm5761_vm8, %v8726_v28  ;;  %v4039_v57 = vld [vmem:[%s8683_s9 + $0x80] sm:$0xff] }
 0x695   : > { %5350 = vmatprep.subr.bf16.mxu1 %v8698_v48  ;;  %v5377_v15 = vpack.c.bf16 %v4041_v58, %v4039_v57  ;;  %v4186_v58 = vld [vmem:[%s8685_s11 + $0xd0] sm:$0xff] }
 0x698   : > { %5352 = vmatpush3.bf16.msra.mxu1 %v5351_v55  ;;  %v5379_v55 = vpack.c.bf16 %v4046_v40, %v4044_v29  ;;  %v4187_v29 = vld [vmem:[%s8685_s11 + $0xd8] sm:$0xff] }
 0x699   : > { %5353 = vmatprep.subr.bf16.mxu1 %v8698_v48  ;;  %v5411_v40 = vpack.c.bf16 %v4187_v29, %v4186_v58 }
 0x69b   : > { %5180 = vmatmul.mubr.msk.f32.vlgmr.msra.gmra.mrb[178].mxu1 %vm1068_vm1, %v3680_v36  ;;  %v4029_v36 = vld [vmem:[%s8683_s9 + $0x30] sm:$0xff] }
 0x69c   : > { %5190 = vmatprep.mubr.msk.f32.mxu1 %vm5761_vm8, %v8726_v28  ;;  %5355 = vmatpush3.bf16.msra.mxu1 %v5354_v18  ;;  %vm3901_vm8 = vcmp.gt.f32.partialorder %v3900_v52, 1.0  ;;  %v5365_v14 = vpack.c.bf16 %v4029_v36, %v4027_v9  ;;  %v4048_v18 = vld [vmem:[%s8683_s9 + $0xc8] sm:$0xff]  ;;  %v4180_v9 = vld [vmem:[%s8685_s11 + $0xa0] sm:$0xff] }
 0x69d   : > { %5356 = vmatprep.subr.bf16.mxu1 %v8698_v48  ;;  %v3904_v48 = vmul.f32 0.9, %v3900_v52  ;;  %v4536_v46 = vsel %vm3901_vm8, 1.0, %v8726_v28  ;;  %v4052_v52 = vld [vmem:[%s8683_s9 + $0xe8] sm:$0xff] }
 0x69e   : > { %v4181_v36 = vld [vmem:[%s8685_s11 + $0xa8] sm:$0xff] }
 0x69f   : > { %v5399_v60 = vpack.c.bf16 %v4181_v36, %v4180_v9  ;;  %v4542_v36 = vld [vmem:[%s8686_s12] ss:$0 sm:$0xff] }
 0x6a0   : > { %5358 = vmatpush3.bf16.msra.mxu1 %v5357_v23  ;;  %v5383_v23 = vpack.c.bf16 %v4050_v7, %v4048_v18  ;;  %v4189_v18 = vld [vmem:[%s8685_s11 + $0xe8] sm:$0xff] }
 0x6a1   : > { %5360 = vmatprep.subr.bf16.mxu1 %v5359_v42  ;;  %v5415_v7 = vpack.c.bf16 %v4189_v18, %v4188_v44 }
 0x766   : > { %v4768_v33 = vpop.f32.mrb[176].mxu1 }
 0x767   : > { %v4769_v24 = vpop.f32.mrb[177].mxu1 }
 0x768   : > { %v4770_v25 = vadd.f32 %v4769_v24, %v4768_v33  ;;  %v4047_v33 = vld [vmem:[%s8683_s9 + $0xc0] sm:$0xff]  ;;  %v4049_v24 = vld [vmem:[%s8683_s9 + $0xd0] sm:$0xff] }
 0x76a   : > { %v3827_v37 = vadd.f32 %v4770_v25, %v4534_v32  ;;  %v5385_v25 = vpack.c.bf16 %v4049_v24, %v4047_v33  ;;  %v4190_v24 = vld [vmem:[%s8685_s11 + $0xf0] sm:$0xff] }
 0x76e   : > { %v3896_v41 = vpop.f32.mrb[178].mxu1 }
 0x76f   : > { %v3897_v5 = vadd.f32 %v3896_v41, %v3827_v37  ;;  %v5181_v63 = vpop.f32.mrb[179].mxu1  ;;  %v4054_v37 = vld [vmem:[%s8683_s9 + $0xf8] sm:$0xff]  ;;  %v4051_v41 = vld [vmem:[%s8683_s9 + $0xe0] sm:$0xff] }
 0x771   : > { %v3905_v12 = vadd.f32 %v3904_v48, %v3897_v5  ;;  %v5387_v48 = vpack.c.bf16 %v4054_v37, %v4052_v52  ;;  %v4053_v5 = vld [vmem:[%s8683_s9 + $0xf0] sm:$0xff]  ;;  %v4175_v37 = vld [vmem:[%s8685_s11 + $0x78] sm:$0xff] }
 0x772   : > { %v5389_v63 = vpack.c.bf16 %v4053_v5, %v4051_v41  ;;  %v4057_v41 = vlaneseq }
 0x773   : > { %v3906_v20 = vsub.f32 %v3905_v12, %v4536_v46  ;;  %v4176_v46 = vld [vmem:[%s8685_s11 + $0x80] sm:$0xff]  ;;  %v4177_v12 = vld [vmem:[%s8685_s11 + $0x88] sm:$0xff] }
 0x774   : > { %v4058_v5 = vshrl.u32 %v4057_v41, 7 }
 0x775   : > { %vm3907_vm13 = vcmp.gt.f32.partialorder %v3906_v20, 1.0  ;;  %3910 = vst.msk [vmem:[#allocation5] sm:$0xff] %vm1068_vm1, %v3906_v20 }
 0x776   : > { %v8425_v21 = vsel %vm3907_vm13, 1.0, %v8726_v28 }
 0x777   : > { %5191 = vmatmul.mubr.msk.f32.vlgmr.msra.gmra.mrb[180].mxu1 %vm1068_vm1, %v8425_v21 }
 0x778   : > { %4131 = vmatprep.mubr.f32.mxu1 %v8726_v28  ;;  %5362 = vmatpush1.bf16.msra.mxu1 %v5361_v31  ;;  %v4163_v31 = vld [vmem:[%s8685_s11 + $0x18] sm:$0xff] }
 0x779   : > { %5364 = vmatprep.subr.bf16.mxu1 %v5363_v47  ;;  %v5397_v19 = vpack.c.bf16 %v4163_v31, %v4162_v4 }
 0x77c   : > { %5366 = vmatpush1.bf16.msra.mxu1 %v5365_v14  ;;  %v4164_v14 = vld [vmem:[%s8685_s11 + $0x20] sm:$0xff] }
 0x77d   : > { %5368 = vmatprep.subr.bf16.mxu1 %v5367_v59  ;;  %v4165_v59 = vld [vmem:[%s8685_s11 + $0x28] sm:$0xff] }
 0x77e   : > { %v5401_v27 = vpack.c.bf16 %v4165_v59, %v4164_v14 }
 0x780   : > { %5370 = vmatpush1.bf16.msra.mxu1 %v5369_v11  ;;  %v4166_v11 = vld [vmem:[%s8685_s11 + $0x30] sm:$0xff] }
 0x781   : > { %5372 = vmatprep.subr.bf16.mxu1 %v5371_v22  ;;  %v4167_v22 = vld [vmem:[%s8685_s11 + $0x38] sm:$0xff] }
 0x782   : > { %v5405_v26 = vpack.c.bf16 %v4167_v22, %v4166_v11 }
 0x784   : > { %5374 = vmatpush1.bf16.msra.mxu1 %v5373_v62  ;;  %v4168_v62 = vld [vmem:[%s8685_s11 + $0x40] sm:$0xff] }
 0x785   : > { %5376 = vmatprep.subr.bf16.mxu1 %v5375_v56  ;;  %v4169_v56 = vld [vmem:[%s8685_s11 + $0x48] sm:$0xff] }
 0x786   : > { %v5409_v57 = vpack.c.bf16 %v4169_v56, %v4168_v62 }
 0x788   : > { %5378 = vmatpush1.bf16.msra.mxu1 %v5377_v15  ;;  %v4170_v15 = vld [vmem:[%s8685_s11 + $0x50] sm:$0xff] }
 0x789   : > { %5380 = vmatprep.subr.bf16.mxu1 %v5379_v55  ;;  %v4171_v55 = vld [vmem:[%s8685_s11 + $0x58] sm:$0xff] }
 0x78a   : > { %v5413_v2 = vpack.c.bf16 %v4171_v55, %v4170_v15 }
 0x78c   : > { %5382 = vmatpush1.bf16.msra.mxu1 %v5381_v50  ;;  %v4172_v50 = vld [vmem:[%s8685_s11 + $0x60] sm:$0xff] }
 0x78d   : > { %5384 = vmatprep.subr.bf16.mxu1 %v5383_v23  ;;  %v4173_v23 = vld [vmem:[%s8685_s11 + $0x68] sm:$0xff] }
 0x78e   : > { %v5417_v33 = vpack.c.bf16 %v4173_v23, %v4172_v50 }
 0x790   : > { %5386 = vmatpush1.bf16.msra.mxu1 %v5385_v25  ;;  %v4191_v25 = vld [vmem:[%s8685_s11 + $0xf8] sm:$0xff] }
 0x791   : > { %5388 = vmatprep.subr.bf16.mxu1 %v5387_v48  ;;  %v5419_v52 = vpack.c.bf16 %v4191_v25, %v4190_v24 }
 0x794   : > { %5390 = vmatpush1.bf16.msra.mxu1 %v5389_v63  ;;  %v4059_v63 = vsub.s32 0, %v4058_v5 }
 0x84a   : > { %v3991_v30 = vpop.f32.mrb[180].mxu1 }
 0x84b   : > { %v3992_v3 = vadd.f32 %v4538_v54, %v3991_v30  ;;  %v5192_v8 = vpop.f32.mrb[181].mxu1  ;;  %v5391_v54 = vpack.c.bf16 %v4177_v12, %v4176_v46  ;;  %v4055_v46 = vld [vmem:[%s8684_s10] sm:$0x3]  ;;  %v4063_v12 = vsub.s32 1, %v4058_v5 }
 0x84d   : > { %v3995_v45 = vsel %vm1068_vm1, %v3992_v3, -inf  ;;  %5392 = vmatprep.subr.bf16.mxu1 %v5391_v54 }
 0x84e   : > { %3996 = vmax.xlane.f32.xlu0 %v3995_v45 }
 0x8db   : > { %v3997_v0 = vpop.xlane.xlu0 %3996 }
 0x8dc   : > { %v3998_v61 = vsub.f32 %v3992_v3, %v3997_v0 }
 0x8de   : > { %v3999_v51 = vmul.f32 1.442695, %v3998_v61 }
 0x8e0   : > { %5716 = vpow2.f32 %v3999_v51  ;;  %v4160_v51 = vld [vmem:[%s8685_s11] sm:$0xff] }
 0x8ea   : > { %v8434_v16 = vpop.eup %5716 }
 0x8eb   : > { %v4001_v13 = vsel %vm1068_vm1, %v8434_v16, 0.0 }
 0x8ec   : > { %4002 = vadd.xlane.f32.xlu1 %v4001_v13 }
 0x979   : > { %v4003_v32 = vpop.xlane.xlu1 %4002 }
 0x97a   : > { %5718 = vrcp.f32 %v4003_v32  ;;  %v4174_v32 = vld [vmem:[%s8685_s11 + $0x70] sm:$0xff] }
 0x97b   : > { %v5421_v48 = vpack.c.bf16 %v4175_v37, %v4174_v32 }
 0x984   : > { %v5719_v20 = vpop.eup %5718 }
 0x985   : > { %v4005_v30 = vmul.f32 %v5719_v20, %v8434_v16  ;;  %v4161_v16 = vld [vmem:[%s8685_s11 + $0x8] sm:$0xff]  ;;  %v5767_v20 = vmov 1983009808  }
 0x986   : > { %v5393_v38 = vpack.c.bf16 %v4161_v16, %v4160_v51  ;;  %v4147_v54 = vunpack.c.l.s4 %v5767_v20  ;;  %v4138_v51 = vld [vmem:[#allocation6] sm:$0xf] }
 0x987   : > { %v4006_v3 = vmul.f32 %v8425_v21, %v4005_v30  ;;  %v4060_v30 = vrot.slane %v4055_v46, %v4059_v63 }
 0x989   : > { %v4012_v8 = vrot.slane %v4006_v3, 4  ;;  %v4008_v45 = vrot.slane %v4006_v3, 2  ;;  %v4016_v0 = vrot.slane %v4006_v3, 6 }
 0x98b   : > { %4013 = vrot.lane.b32.xlu1 %v4012_v8, %s5762_s15  ;;  %4009 = vrot.lane.b32.xlu0 %v4008_v45, %s5764_s14  ;;  %v4148_v8 = vunpack.c.0.s8 %v4147_v54  ;;  %s5720_s15 = scalar_lea.vmem %s4300_s23, 32 }
 0x98c   : > { %p5721_p6 = scmp.ne.s32.totalorder %s4300_s23, %s5720_s15  ;;  %p5728_p10 = scmp.lt.s32.totalorder %s5720_s15, %s5720_s15 }
 0x98e   : > { %p5722_p7 = pnand %p5721_p6, %p5545_p5  ;;  %p5729_p11 = por %p5728_p10, %p5727_p9 }
 0x98f   : > { %4017 = vrot.lane.b32.xlu0 %v4016_v0, %s5763_s24 }
 0x990   : > { %p5723_p8 = pneg %p5722_p7 }
 0x992   : > { %p5730_p12 = pnand %p5729_p11, %p5723_p8 }
 0x9fd   : > { %v4010_v61 = vpop.permute.xlu0 %4009  ;;  %v4014_v13 = vpop.permute.xlu1 %4013 }
 0x9fe   : > { %v4020_v21 = vsel %vm1068_vm1, %v4006_v3, %v4010_v61  ;;  %v4064_v3 = vrot.slane %v4055_v46, %v4063_v12  ;;  %vm4139_vm1 = vcmp.gt.f32.partialorder %v4138_v51, 1.0 }
 0x9ff   : > { %v4021_v42 = vsel %vm3101_vm14, %v4020_v21, %v4014_v13  ;;  %v4151_v13 = vsub.s32 %v4148_v8, %v4058_v5  ;;  %v4142_v21 = vmul.f32 0.9, %v4138_v51 }
 0xa01   : > { %v4018_v6 = vpop.permute.xlu0 %4017 }
 0xa02   : > { %v4022_v47 = vsel %vm3111_vm15, %v4021_v42, %v4018_v6 }
 0xa03   : > { %4132 = vmatmul.mubr.f32.vlgmr.msra.gmra.mrb[182].mxu1 %v4022_v47  ;;  %v4280_v47 = vld [vmem:[#allocation7] sm:$0x3] }
 0xa04   : > { %5394 = vmatpush3.bf16.msra.mxu1 %v5393_v38  ;;  %v4540_v38 = vsel %vm4139_vm1, 1.0, %v8726_v28  ;;  %v4284_v14 = vmul.f32 0.9, %v4280_v47  ;;  %vm4281_vm15 = vcmp.gt.f32.partialorder %v4280_v47, 1.0 }
 0xa05   : > { %5396 = vmatprep.subr.bf16.mxu1 %v5395_v1  ;;  %v4543_v39 = vsel %vm4281_vm15, 1.0, %v8726_v28 }
 0xa08   : > { %5398 = vmatpush3.bf16.msra.mxu1 %v5397_v19 }
 0xa09   : > { %5400 = vmatprep.subr.bf16.mxu1 %v5399_v60 }
 0xa0c   : > { %5402 = vmatpush3.bf16.msra.mxu1 %v5401_v27 }
 0xa0d   : > { %5404 = vmatprep.subr.bf16.mxu1 %v5403_v43 }
 0xa10   : > { %5406 = vmatpush3.bf16.msra.mxu1 %v5405_v26 }
 0xa11   : > { %5408 = vmatprep.subr.bf16.mxu1 %v5407_v35 }
 0xa14   : > { %5410 = vmatpush3.bf16.msra.mxu1 %v5409_v57 }
 0xa15   : > { %5412 = vmatprep.subr.bf16.mxu1 %v5411_v40 }
 0xa18   : > { %5414 = vmatpush3.bf16.msra.mxu1 %v5413_v2 }
 0xa19   : > { %5416 = vmatprep.subr.bf16.mxu1 %v5415_v7 }
 0xa1c   : > { %5418 = vmatpush3.bf16.msra.mxu1 %v5417_v33 }
 0xa1d   : > { %5420 = vmatprep.subr.bf16.mxu1 %v5419_v52 }
 0xa20   : > { %5422 = vmatpush3.bf16.msra.mxu1 %v5421_v48 }
 0xad6   : > { %v4133_v45 = vpop.f32.mrb[182].mxu1 }
 0xad7   : > { %v4134_v0 = vadd.f32 %v4133_v45, %v4060_v30  ;;  %v4135_v61 = vpop.f32.mrb[183].mxu1 }
 0xad8   : > { %v4136_v16 = vadd.f32 %v4135_v61, %v4064_v3 }
 0xada   : > { %v4145_v49 = vcombine.low %v4134_v0, %v4136_v16 }
 0xadc   : > { %v4152_v53 = vrot.slane %v4145_v49, %v4151_v13 }
 0xade   : > { %v4154_v42 = vadd.f32 %v4152_v53, %v4142_v21 }
 0xae0   : > { %v4155_v6 = vsub.f32 %v4154_v42, %v4540_v38 }
 0xae2   : > { %4159 = vst [vmem:[#allocation6] sm:$0xf] %v4155_v6  ;;  %vm4156_vm14 = vcmp.gt.f32.partialorder %v4155_v6, 1.0 }
 0xae3   : > { %v4541_v1 = vsel %vm4156_vm14, 1.0, %v8726_v28 }
 0xae4   : > { %v4206_v4 = vrot.slane %v4541_v1, %v4151_v13 }
 0xae6   : > { %v4207_v31 = vcombine.high %v4206_v4, %v4206_v4 }
 0xae8   : > { %4274 = vmatprep.mubr.f32.mxu1 %v4207_v31 }
 0xae9   : > { %4275 = vmatmul.mubr.f32.vlgmr.msra.gmra.mrb[184].mxu1 %v4206_v4 }
 0xbbc   : > { %v4813_v9 = vpop.f32.mrb[184].mxu1 }
 0xbbd   : > { %v4814_v19 = vpop.f32.mrb[185].mxu1 }
 0xbbe   : > { %v4815_v60 = vadd.f32 %v4814_v19, %v4813_v9 }
 0xbc0   : > { %v4277_v59 = vadd.f32 %v4815_v60, %v4542_v36 }
 0xbc2   : > { %v4285_v17 = vadd.f32 %v4284_v14, %v4277_v59 }
 0xbc4   : > { %v4286_v27 = vsub.f32 %v4285_v17, %v4543_v39 }
 0xbc6   : > { %vm4287_vm0 = vcmp.gt.f32.partialorder %v4286_v27, 1.0  ;;  %4290 = vst [vmem:[#allocation7] sm:$0x3] %v4286_v27 }
 0xbc7   : > { %v4544_v43 = vsel %vm4287_vm0, 1.0, %v8726_v28 }
 0xbc8   : > { %4291 = vst [vmem:[#allocation8] sm:$0x3] %v4544_v43 }
 0xbc9   : > { %5733 = shalt.err (!%p5730_p12)
}
 0xbca   : > { %s5734_s27 = scalar_lea.hbm %s8687_s13, 32 }
 0xbcb   : > { %p5735_p13 = scmp.ne.s32.totalorder %s8687_s13, %s5734_s27  ;;  %p5740_p2 = scmp.lt.u32.totalorder %s5734_s27, %s8687_s13 }
 0xbcd   : > { %p5736_p0 = pnand %p5735_p13, %p5545_p5 }
 0xbcf   : > { %p5737_p1 = pneg %p5736_p0 }
 0xbd1   : > { %p5742_p3 = pnand %p5740_p2, %p5737_p1 }
 0xbd3   : > { %5745 = shalt.err (!%p5742_p3)
}
 0xbd4   : > { %5542 = dma.vmem_to_hbm [thread:$0]  (%p5545_p5), %s4300_s23, 32, %s8687_s13, [#allocation9]  }
 0xbd5   : > { %5751 = dma.done.wait (%p5545_p5), [#allocation9], 32  }
 0xbd6   : > { %5753 = vsyncadd (%p5545_p5), [#allocation9], 4294967264 }
 0xbd7 PF: > { %s24_s25 = sadd.s32 1, %s5756_s25  }
 0xbd8   : > { %p21_p4 = scmp.ge.s32.totalorder %s24_s25, 6  }
 0xbda   :  { %23 = sbr.rel (!%p21_p4) target bundleno = 1 (0x1), region = 103 }
 0xbe1   :  { %4312 = vsyncpa [#allocation9], 1 }
 0xbe2   :  { %4314 = vsyncpa [#allocation9 + $0x1], 1 }

</bundles_post_ra>
